<compile_context>
chip_gen: v7x
topology: tpu7x:2x2x1
jax: 0.10.0
libtpu: 0.0.40
codegen_flags: <defaults>
</compile_context>

<pallas_src>
import jax
import jax.numpy as jnp
from jax.experimental import pallas as pl
from jax.experimental.pallas import tpu as pltpu

HIDDEN = 768           # BERT hidden size
N_OUT = 1400           # prediction-head output size (n=1400 in the module)
N_PAD = 1536           # N_OUT padded to a multiple of 128 (12 * 128)
W_COLS = HIDDEN + N_PAD  # fused weight width: pooler | head = 2304


def _pooler_head_kernel(cls_ref, w_ref, b_ref, out_ref):
    """Fused BERT pooler + prediction head, single invocation (no grid).

    cls_ref : [B, 768]        f32   CLS row of last_hidden_state
    w_ref   : [768, 2304]     bf16  [W_pool.T | W_pred.T (zero-padded to 1536)]
    b_ref   : [1, 2304]       f32   [b_pool   | b_pred   (zero-padded)]
    out_ref : [B, 1536]       f32   padded logits
    """
    x = cls_ref[...].astype(jnp.bfloat16)                     # [B, 768]

    # BERT pooler: tanh(x @ W_pool + b_pool).  Static, 128-aligned column
    # views of the fused weight/bias buffers.
    wp = w_ref[:, :HIDDEN]                                    # [768, 768] bf16
    bp = b_ref[:, :HIDDEN]                                    # [1, 768]   f32
    pooled = jnp.tanh(
        jnp.dot(x, wp, preferred_element_type=jnp.float32) + bp
    )

    # Prediction head: pooled @ W_pred + b_pred (padded to 1536 lanes).
    wm = w_ref[:, HIDDEN:]                                    # [768, 1536] bf16
    bm = b_ref[:, HIDDEN:]                                    # [1, 1536]   f32
    logits = (
        jnp.dot(pooled.astype(jnp.bfloat16), wm,
                preferred_element_type=jnp.float32)
        + bm
    )
    out_ref[...] = logits.astype(out_ref.dtype)


def prepack_params(w_pool, b_pool, w_pred, b_pred):
    """One-time prepack (call at init, NOT per forward pass).

    PyTorch nn.Linear stores weight as [n_out, n_in]; transpose once to
    [n_in, n_out], cast to bf16, pad the head to N_PAD lanes, and fuse the
    pooler + head weights/biases into single contiguous buffers so the kernel
    issues one weight DMA.
    """
    w_all = jnp.zeros((HIDDEN, W_COLS), jnp.bfloat16)
    w_all = w_all.at[:, :HIDDEN].set(jnp.asarray(w_pool.T, jnp.bfloat16))
    w_all = w_all.at[:, HIDDEN:HIDDEN + N_OUT].set(
        jnp.asarray(w_pred.T, jnp.bfloat16))

    b_all = jnp.zeros((1, W_COLS), jnp.float32)
    b_all = b_all.at[0, :HIDDEN].set(jnp.asarray(b_pool, jnp.float32))
    b_all = b_all.at[0, HIDDEN:HIDDEN + N_OUT].set(
        jnp.asarray(b_pred, jnp.float32))
    return w_all, b_all


@jax.jit
def model_forward(last_hidden_state, w_all, b_all):
    """last_hidden_state: [B, S, 768] f32 (synthetic BERT encoder output).
    w_all/b_all: prepacked fused params from `prepack_params`.
    Returns logits [B, N_OUT] f32.
    """
    # Static slice of the CLS token (tiny; avoids a sub-(8,128) BlockSpec).
    cls = last_hidden_state[:, 0, :]                          # [B, 768]
    B = cls.shape[0]

    out_padded = pl.pallas_call(
        _pooler_head_kernel,
        out_shape=jax.ShapeDtypeStruct((B, N_PAD), jnp.float32),
        in_specs=[
            pl.BlockSpec(memory_space=pltpu.MemorySpace.VMEM),
            pl.BlockSpec(memory_space=pltpu.MemorySpace.VMEM),
            pl.BlockSpec(memory_space=pltpu.MemorySpace.VMEM),
        ],
        out_specs=pl.BlockSpec(memory_space=pltpu.MemorySpace.VMEM),
    )(cls, w_all, b_all)

    return out_padded[:, :N_OUT]


def _reference(last_hidden_state, w_pool, b_pool, w_pred, b_pred):
    cls = last_hidden_state[:, 0, :]
    pooled = jnp.tanh(cls @ w_pool.T + b_pool)
    return pooled @ w_pred.T + b_pred


if __name__ == "__main__":
    key = jax.random.PRNGKey(0)
    k_hidden, k_wp, k_bp, k_wm, k_bm = jax.random.split(key, 5)

    B, S = 2, 8  # small batch / sequence length

    # Synthetic encoder output (stands in for BertModel last_hidden_state).
    last_hidden_state = jax.random.normal(k_hidden, (B, S, HIDDEN), jnp.float32)

    # Deterministic parameter init in PyTorch layout ([n_out, n_in] weights).
    w_pool = jax.random.normal(k_wp, (HIDDEN, HIDDEN), jnp.float32) * 0.02
    b_pool = jax.random.normal(k_bp, (HIDDEN,), jnp.float32) * 0.02
    w_pred = jax.random.normal(k_wm, (N_OUT, HIDDEN), jnp.float32) * 0.02
    b_pred = jax.random.normal(k_bm, (N_OUT,), jnp.float32) * 0.02

    # One-time prepack (transpose + bf16 cast + pad + fuse) — outside the hot
    # path.
    w_all, b_all = prepack_params(w_pool, b_pool, w_pred, b_pred)

    out = model_forward(last_hidden_state, w_all, b_all)
    out = jax.block_until_ready(out)

    ref = _reference(last_hidden_state, w_pool, b_pool, w_pred, b_pred)
    assert out.shape == (B, N_OUT), out.shape
    # bf16 weights -> relaxed tolerance vs the f32 reference.
    assert jnp.allclose(out, ref, atol=2e-2, rtol=2e-2), float(
        jnp.max(jnp.abs(out - ref))
    )
    print("KERNEL_OK")
</pallas_src>

<mosaic_0001>
module attributes {stable_mosaic.version = 11 : i64} {
  func.func @_pooler_head_kernel(%arg0: memref<2x768xf32, #tpu.memory_space<vmem>>, %arg1: memref<768x2304xbf16, #tpu.memory_space<vmem>>, %arg2: memref<1x2304xf32, #tpu.memory_space<vmem>>, %arg3: memref<2x1536xf32, #tpu.memory_space<vmem>>) attributes {dimension_semantics = [], scalar_prefetch = 0 : i64, scratch_operands = 0 : i64, tpu.core_type = #tpu.core_type<tc>} {
    %c0 = arith.constant 0 : index
    %c0_0 = arith.constant 0 : index
    %0 = vector.load %arg0[%c0, %c0_0] : memref<2x768xf32, #tpu.memory_space<vmem>>, vector<2x768xf32>
    %1 = arith.truncf %0 : vector<2x768xf32> to vector<2x768xbf16>
    %c0_1 = arith.constant 0 : index
    %c0_2 = arith.constant 0 : index
    %2 = vector.load %arg1[%c0_1, %c0_2] : memref<768x2304xbf16, #tpu.memory_space<vmem>>, vector<768x768xbf16>
    %c0_3 = arith.constant 0 : index
    %c0_4 = arith.constant 0 : index
    %3 = vector.load %arg2[%c0_3, %c0_4] : memref<1x2304xf32, #tpu.memory_space<vmem>>, vector<1x768xf32>
    %cst = arith.constant dense<0.000000e+00> : vector<2x768xf32>
    %4 = tpu.matmul %1, %2, %cst {dimension_numbers = #tpu.dot_dimension_numbers<[1], [0], [0], [1], [0, 0, 1, 1], [], []>} : vector<2x768xbf16>, vector<768x768xbf16>, vector<2x768xf32> -> vector<2x768xf32>
    %5 = vector.broadcast %3 : vector<1x768xf32> to vector<2x768xf32>
    %6 = arith.addf %4, %5 : vector<2x768xf32>
    %7 = math.tanh %6 : vector<2x768xf32>
    %c0_5 = arith.constant 0 : index
    %c768 = arith.constant 768 : index
    %8 = vector.load %arg1[%c0_5, %c768] : memref<768x2304xbf16, #tpu.memory_space<vmem>>, vector<768x1536xbf16>
    %c0_6 = arith.constant 0 : index
    %c768_7 = arith.constant 768 : index
    %9 = vector.load %arg2[%c0_6, %c768_7] : memref<1x2304xf32, #tpu.memory_space<vmem>>, vector<1x1536xf32>
    %10 = arith.truncf %7 : vector<2x768xf32> to vector<2x768xbf16>
    %cst_8 = arith.constant dense<0.000000e+00> : vector<2x1536xf32>
    %11 = tpu.matmul %10, %8, %cst_8 {dimension_numbers = #tpu.dot_dimension_numbers<[1], [0], [0], [1], [0, 0, 1, 1], [], []>} : vector<2x768xbf16>, vector<768x1536xbf16>, vector<2x1536xf32> -> vector<2x1536xf32>
    %12 = vector.broadcast %9 : vector<1x1536xf32> to vector<2x1536xf32>
    %13 = arith.addf %11, %12 : vector<2x1536xf32>
    %c0_9 = arith.constant 0 : index
    %c0_10 = arith.constant 0 : index
    %14 = vector.load %arg3[%c0_9, %c0_10] : memref<2x1536xf32, #tpu.memory_space<vmem>>, vector<2x1536xf32>
    tpu.vector_store %arg3[%c0_9, %c0_10], %13 {strides = array<i32>} : memref<2x1536xf32, #tpu.memory_space<vmem>>, vector<2x1536xf32>,
    return
  }
}

</mosaic_0001>

<bundles_post_ra>
// kernel: model_forward.1
= control target key start
LH: loop header
LB: loop body
LE: loop exit
PB: predicated region body
PF: predicated region fallthrough
CT: control target
= control target key end

     0   :  { %8 = vsyncpa [#allocation3], 0  ;;  %s9090_s0 = inlined_call_operand.vmem [shape: f32[2,768], index: 0, kind: input, shape index: {}]   ;;  %s9091_s1 = inlined_call_operand.hbm [shape: bf16[768,2304], index: 1, kind: input, shape index: {}]   ;;  %s9092_s2 = inlined_call_operand.hbm [shape: f32[1,2304], index: 2, kind: input, shape index: {}]   ;;  %s9093_s3 = inlined_call_operand.vmem [shape: f32[2,1536], index: 3, kind: output, shape index: {}]  }
   0x1   :  { %9 = vsyncpa [#allocation5], 0  ;;  %s8871_s12 = smov [#allocation2]   ;;  %s8823_s16 = scalar_lea.hbm %s9091_s1, 110592 }
   0x2   :  { %s17_s13 = sshll.u32 %s8871_s12, 4  ;;  %p8824_p0 = scmp.ne.s32.totalorder %s9091_s1, %s8823_s16  ;;  %s18_s13 = int_to_ptr.vmem [resolvable:$true] %s17_s13 }
   0x3   :  { %p8827_p1 = scmp.lt.u32.totalorder %s8823_s16, %s9091_s1 }
   0x5   :  { %p8829_p2 = pnand %p8827_p1, %p8824_p0 }
   0x7   :  { %8832 = shalt.err (!%p8829_p2)
}
   0x8   :  { %s8833_s21 = scalar_lea.vmem %s18_s13, 110592  ;;  %p8838_p4 = scmp.lt.s32.totalorder %s18_s13, %s18_s13 }
   0x9   :  { %p8834_p3 = scmp.ne.s32.totalorder %s18_s13, %s8833_s21  ;;  %p8839_p5 = scmp.lt.s32.totalorder %s8833_s21, %s8833_s21 }
   0xb   :  { %p8840_p6 = por %p8839_p5, %p8838_p4 }
   0xd   :  { %p8841_p7 = pnand %p8840_p6, %p8834_p3 }
   0xf   :  { %8844 = shalt.err (!%p8841_p7)
}
  0x10   :  { %s8872_s22 = smov 1152   ;;  %s8873_s23 = smov 72  }
  0x11   :  { %23 = dma.hbm_to_vmem [thread:$0]  %s9091_s1, 110592, %s18_s13, [#allocation3], %s8872_s22, %s8872_s22, %s8873_s23  }
  0x12   :  { %s8874_s26 = smov [#allocation4]   ;;  %s8845_s30 = scalar_lea.hbm %s9092_s2, 288 }
  0x13   :  { %s30_s27 = sshll.u32 %s8874_s26, 4  ;;  %p8846_p8 = scmp.ne.s32.totalorder %s9092_s2, %s8845_s30  ;;  %s31_s27 = int_to_ptr.vmem [resolvable:$true] %s30_s27 }
  0x14   :  { %p8849_p9 = scmp.lt.u32.totalorder %s8845_s30, %s9092_s2 }
  0x16   :  { %p8851_p10 = pnand %p8849_p9, %p8846_p8 }
  0x18   :  { %8854 = shalt.err (!%p8851_p10)
}
  0x19   :  { %s8855_s8 = scalar_lea.vmem %s31_s27, 288  ;;  %p8860_p12 = scmp.lt.s32.totalorder %s31_s27, %s31_s27 }
  0x1a   :  { %p8856_p11 = scmp.ne.s32.totalorder %s31_s27, %s8855_s8  ;;  %p8861_p13 = scmp.lt.s32.totalorder %s8855_s8, %s8855_s8 }
  0x1c   :  { %p8862_p0 = por %p8861_p13, %p8860_p12 }
  0x1e   :  { %p8863_p1 = pnand %p8862_p0, %p8856_p11 }
  0x20   :  { %8866 = shalt.err (!%p8863_p1)
}
  0x21   :  { %33 = dma.hbm_to_vmem [thread:$0]  %s9092_s2, 288, %s31_s27, [#allocation5]  }
  0x22   :  { %8867 = dma.done.wait [#allocation3], 110592  }
  0x23   :  { %8868 = vsyncadd [#allocation3], 4294856704 }
  0x24   :  { %8869 = dma.done.wait [#allocation5], 288  }
  0x25   :  { %8870 = vsyncadd [#allocation5], 4294967008  ;;  %v7513_v0 = vld [vmem:[#allocation2 + $0x4] ss:$72 sps:$4 sm:$0xff]   ;;  %v7517_v2 = vld [vmem:[#allocation2] ss:$72 sps:$4 sm:$0xff]   ;;  %v48_v38 = vlaneseq }
  0x26   :  { %v7515_v1 = vld [vmem:[#allocation2 + $0x904] ss:$72 sps:$4 sm:$0xff]   ;;  %1841 = vmatprep.subr.bf16.mxu1 %v7513_v0  ;;  %v7518_v3 = vld [vmem:[#allocation2 + $0x900] ss:$72 sps:$4 sm:$0xff]   ;;  %v7519_v4 = vld [vmem:[#allocation2 + $0x94] ss:$72 sps:$4 sm:$0xff]  }
  0x27   :  { %1882 = vmatprep.subr.bf16.mxu0 %v7515_v1  ;;  %1842 = vmatpush1.bf16.msra.mxu1 %v7517_v2  ;;  %v7521_v5 = vld [vmem:[#allocation2 + $0x994] ss:$72 sps:$4 sm:$0xff]   ;;  %v7523_v6 = vld [vmem:[#allocation2 + $0x90] ss:$72 sps:$4 sm:$0xff]   ;;  %v7525_v8 = vld [vmem:[#allocation2 + $0x124] ss:$72 sps:$4 sm:$0xff]  }
  0x28   :  { %1883 = vmatpush1.bf16.msra.mxu0 %v7518_v3  ;;  %1843 = vmatprep.subr.bf16.mxu1 %v7519_v4  ;;  %v7524_v7 = vld [vmem:[#allocation2 + $0x990] ss:$72 sps:$4 sm:$0xff]   ;;  %v7527_v9 = vld [vmem:[#allocation2 + $0xa24] ss:$72 sps:$4 sm:$0xff]   ;;  %v7529_v10 = vld [vmem:[#allocation2 + $0x120] ss:$72 sps:$4 sm:$0xff]  }
  0x29   :  { %1884 = vmatprep.subr.bf16.mxu0 %v7521_v5  ;;  %v7530_v11 = vld [vmem:[#allocation2 + $0xa20] ss:$72 sps:$4 sm:$0xff]   ;;  %v7531_v12 = vld [vmem:[#allocation2 + $0x1b4] ss:$72 sps:$4 sm:$0xff]   ;;  %v7535_v14 = vld [vmem:[#allocation2 + $0x1b0] ss:$72 sps:$4 sm:$0xff]  }
  0x2a   :  { %v7533_v13 = vld [vmem:[#allocation2 + $0xab4] ss:$72 sps:$4 sm:$0xff]   ;;  %v7536_v15 = vld [vmem:[#allocation2 + $0xab0] ss:$72 sps:$4 sm:$0xff]   ;;  %v7537_v16 = vld [vmem:[#allocation2 + $0x244] ss:$72 sps:$4 sm:$0xff]  }
  0x2b   :  { %1844 = vmatpush1.bf16.msra.mxu1 %v7523_v6  ;;  %v7539_v17 = vld [vmem:[#allocation2 + $0xb44] ss:$72 sps:$4 sm:$0xff]   ;;  %v7541_v18 = vld [vmem:[#allocation2 + $0x240] ss:$72 sps:$4 sm:$0xff]   ;;  %v7543_v20 = vld [vmem:[#allocation2 + $0x2d4] ss:$72 sps:$4 sm:$0xff]  }
  0x2c   :  { %1885 = vmatpush1.bf16.msra.mxu0 %v7524_v7  ;;  %1845 = vmatprep.subr.bf16.mxu1 %v7525_v8  ;;  %v7542_v19 = vld [vmem:[#allocation2 + $0xb40] ss:$72 sps:$4 sm:$0xff]   ;;  %v7545_v21 = vld [vmem:[#allocation2 + $0xbd4] ss:$72 sps:$4 sm:$0xff]   ;;  %v7547_v22 = vld [vmem:[#allocation2 + $0x2d0] ss:$72 sps:$4 sm:$0xff]  }
  0x2d   :  { %1886 = vmatprep.subr.bf16.mxu0 %v7527_v9  ;;  %v7548_v23 = vld [vmem:[#allocation2 + $0xbd0] ss:$72 sps:$4 sm:$0xff]   ;;  %v7549_v24 = vld [vmem:[#allocation2 + $0x364] ss:$72 sps:$4 sm:$0xff]   ;;  %v7553_v26 = vld [vmem:[#allocation2 + $0x360] ss:$72 sps:$4 sm:$0xff]  }
  0x2e   :  { %v7551_v25 = vld [vmem:[#allocation2 + $0xc64] ss:$72 sps:$4 sm:$0xff]   ;;  %v7554_v27 = vld [vmem:[#allocation2 + $0xc60] ss:$72 sps:$4 sm:$0xff]   ;;  %v7555_v28 = vld [vmem:[#allocation2 + $0x3f4] ss:$72 sps:$4 sm:$0xff]  }
  0x2f   :  { %1846 = vmatpush1.bf16.msra.mxu1 %v7529_v10  ;;  %v7557_v29 = vld [vmem:[#allocation2 + $0xcf4] ss:$72 sps:$4 sm:$0xff]   ;;  %v7559_v30 = vld [vmem:[#allocation2 + $0x3f0] ss:$72 sps:$4 sm:$0xff]   ;;  %v7561_v32 = vld [vmem:[#allocation2 + $0x484] ss:$72 sps:$4 sm:$0xff]  }
  0x30   :  { %1887 = vmatpush1.bf16.msra.mxu0 %v7530_v11  ;;  %1847 = vmatprep.subr.bf16.mxu1 %v7531_v12  ;;  %v7560_v31 = vld [vmem:[#allocation2 + $0xcf0] ss:$72 sps:$4 sm:$0xff]   ;;  %v7563_v33 = vld [vmem:[#allocation2 + $0xd84] ss:$72 sps:$4 sm:$0xff]   ;;  %v7565_v34 = vld [vmem:[#allocation2 + $0x480] ss:$72 sps:$4 sm:$0xff]  }
  0x31   :  { %1888 = vmatprep.subr.bf16.mxu0 %v7533_v13  ;;  %v7566_v35 = vld [vmem:[#allocation2 + $0xd80] ss:$72 sps:$4 sm:$0xff]   ;;  %v8875_v36 = vmov 1983009808   ;;  %v7567_v39 = vld [vmem:[#allocation2 + $0x514] ss:$72 sps:$4 sm:$0xff]  }
  0x32   :  { %v46_v37 = vunpack.c.l.s4 %v8875_v36  ;;  %v7569_v40 = vld [vmem:[#allocation2 + $0xe14] ss:$72 sps:$4 sm:$0xff]   ;;  %v7571_v41 = vld [vmem:[#allocation2 + $0x510] ss:$72 sps:$4 sm:$0xff]   ;;  %v8920_v43 = vshrl.u32 %v48_v38, 7  ;;  %v40_v52 = vld [vmem:[%s9090_s0] sm:$0xff] }
  0x33   :  { %1848 = vmatpush1.bf16.msra.mxu1 %v7535_v14  ;;  %v7572_v44 = vld [vmem:[#allocation2 + $0xe10] ss:$72 sps:$4 sm:$0xff]   ;;  %v7573_v45 = vld [vmem:[#allocation2 + $0x5a4] ss:$72 sps:$4 sm:$0xff]   ;;  %v7577_v47 = vld [vmem:[#allocation2 + $0x5a0] ss:$72 sps:$4 sm:$0xff]   ;;  %v44_v55 = vcombine.high %v40_v52, %v40_v52 }
  0x34   :  { %1889 = vmatpush1.bf16.msra.mxu0 %v7536_v15  ;;  %1849 = vmatprep.subr.bf16.mxu1 %v7537_v16  ;;  %v47_v42 = vunpack.c.0.s8 %v46_v37  ;;  %v7575_v46 = vld [vmem:[#allocation2 + $0xea4] ss:$72 sps:$4 sm:$0xff]   ;;  %v7578_v48 = vld [vmem:[#allocation2 + $0xea0] ss:$72 sps:$4 sm:$0xff]   ;;  %v7579_v50 = vld [vmem:[#allocation2 + $0x634] ss:$72 sps:$4 sm:$0xff]  }
  0x35   :  { %1890 = vmatprep.subr.bf16.mxu0 %v7539_v17  ;;  %v7581_v51 = vld [vmem:[#allocation2 + $0xf34] ss:$72 sps:$4 sm:$0xff]   ;;  %v7583_v53 = vld [vmem:[#allocation2 + $0x630] ss:$72 sps:$4 sm:$0xff]   ;;  %v7585_v57 = vld [vmem:[#allocation2 + $0x6c4] ss:$72 sps:$4 sm:$0xff]  }
  0x36   :  { %v8923_v49 = vsub.s32 %v47_v42, %v8920_v43  ;;  %v7584_v56 = vld [vmem:[#allocation2 + $0xf30] ss:$72 sps:$4 sm:$0xff]   ;;  %v7587_v58 = vld [vmem:[#allocation2 + $0xfc4] ss:$72 sps:$4 sm:$0xff]   ;;  %v7589_v61 = vld [vmem:[#allocation2 + $0x6c0] ss:$72 sps:$4 sm:$0xff]  }
  0x37   :  { %1850 = vmatpush1.bf16.msra.mxu1 %v7541_v18  ;;  %v7590_v0 = vld [vmem:[#allocation2 + $0xfc0] ss:$72 sps:$4 sm:$0xff]   ;;  %v7591_v1 = vld [vmem:[#allocation2 + $0x754] ss:$72 sps:$4 sm:$0xff]   ;;  %v7595_v4 = vld [vmem:[#allocation2 + $0x750] ss:$72 sps:$4 sm:$0xff]  }
  0x38   :  { %1891 = vmatpush1.bf16.msra.mxu0 %v7542_v19  ;;  %1851 = vmatprep.subr.bf16.mxu1 %v7543_v20  ;;  %v51_v54 = vrot.slane %v40_v52, %v8923_v49  ;;  %v58_v60 = vrot.slane %v44_v55, %v8923_v49  ;;  %v7593_v2 = vld [vmem:[#allocation2 + $0x1054] ss:$72 sps:$4 sm:$0xff]   ;;  %v7596_v5 = vld [vmem:[#allocation2 + $0x1050] ss:$72 sps:$4 sm:$0xff]   ;;  %v7597_v6 = vld [vmem:[#allocation2 + $0x7e4] ss:$72 sps:$4 sm:$0xff]  }
  0x39   :  { %1892 = vmatprep.subr.bf16.mxu0 %v7545_v21  ;;  %v7599_v7 = vld [vmem:[#allocation2 + $0x10e4] ss:$72 sps:$4 sm:$0xff]   ;;  %v7601_v8 = vld [vmem:[#allocation2 + $0x7e0] ss:$72 sps:$4 sm:$0xff]   ;;  %v7603_v10 = vld [vmem:[#allocation2 + $0x874] ss:$72 sps:$4 sm:$0xff]  }
  0x3a   :  { %v59_v59 = vcombine.high %v51_v54, %v51_v54  ;;  %v60_v63 = vcombine.high %v58_v60, %v58_v60  ;;  %v7602_v9 = vld [vmem:[#allocation2 + $0x10e0] ss:$72 sps:$4 sm:$0xff]   ;;  %v7605_v11 = vld [vmem:[#allocation2 + $0x1174] ss:$72 sps:$4 sm:$0xff]   ;;  %v7607_v12 = vld [vmem:[#allocation2 + $0x870] ss:$72 sps:$4 sm:$0xff]   ;;  %v8936_v16 = vpack.c.bf16 %v51_v54, %v51_v54  ;;  %v8938_v18 = vpack.c.bf16 %v58_v60, %v58_v60 }
  0x3b   :  { %1852 = vmatpush1.bf16.msra.mxu1 %v7547_v22  ;;  %v7608_v13 = vld [vmem:[#allocation2 + $0x1170] ss:$72 sps:$4 sm:$0xff]   ;;  %v7612_v14 = vld [vmem:[#allocation2 + $0x1204] ss:$72 sps:$4 sm:$0xff]   ;;  %v7610_v17 = vld [vmem:[#allocation2 + $0x1200] ss:$72 sps:$4 sm:$0xff]  }
  0x3c   :  { %1893 = vmatpush1.bf16.msra.mxu0 %v7548_v23  ;;  %1853 = vmatprep.subr.bf16.mxu1 %v7549_v24  ;;  %v8930_v62 = vpack.c.bf16 %v59_v59, %v59_v59  ;;  %v8932_v3 = vpack.c.bf16 %v60_v63, %v60_v63  ;;  %v7615_v15 = vld [vmem:[#allocation2 + $0xc] ss:$72 sps:$4 sm:$0xff]   ;;  %v7613_v19 = vld [vmem:[#allocation2 + $0x8] ss:$72 sps:$4 sm:$0xff]   ;;  %v7621_v21 = vld [vmem:[#allocation2 + $0x9c] ss:$72 sps:$4 sm:$0xff]  }
  0x3d   :  { %1894 = vmatprep.subr.bf16.mxu0 %v7551_v25  ;;  %v7618_v20 = vld [vmem:[#allocation2 + $0x1294] ss:$72 sps:$4 sm:$0xff]   ;;  %v7616_v22 = vld [vmem:[#allocation2 + $0x1290] ss:$72 sps:$4 sm:$0xff]   ;;  %v7624_v24 = vld [vmem:[#allocation2 + $0x1324] ss:$72 sps:$4 sm:$0xff]  }
  0x3e   :  { %1873 = vmatprep.mubr.bf16.mxu1 %v8930_v62  ;;  %1914 = vmatprep.mubr.bf16.mxu0 %v8932_v3  ;;  %v7619_v23 = vld [vmem:[#allocation2 + $0x98] ss:$72 sps:$4 sm:$0xff]   ;;  %v7627_v25 = vld [vmem:[#allocation2 + $0x12c] ss:$72 sps:$4 sm:$0xff]   ;;  %v7645_v37 = vld [vmem:[#allocation2 + $0x2dc] ss:$72 sps:$4 sm:$0xff]  }
  0x3f   :  { %1854 = vmatpush1.bf16.msra.mxu1 %v7553_v26  ;;  %v7622_v26 = vld [vmem:[#allocation2 + $0x1320] ss:$72 sps:$4 sm:$0xff]   ;;  %v7642_v36 = vld [vmem:[#allocation2 + $0x14d4] ss:$72 sps:$4 sm:$0xff]   ;;  %v7640_v38 = vld [vmem:[#allocation2 + $0x14d0] ss:$72 sps:$4 sm:$0xff]  }
  0x40   :  { %1895 = vmatpush1.bf16.msra.mxu0 %v7554_v27  ;;  %1855 = vmatprep.subr.bf16.mxu1 %v7555_v28  ;;  %v7625_v27 = vld [vmem:[#allocation2 + $0x128] ss:$72 sps:$4 sm:$0xff]   ;;  %v7630_v28 = vld [vmem:[#allocation2 + $0x13b4] ss:$72 sps:$4 sm:$0xff]   ;;  %v7655_v52 = vld [vmem:[#allocation2 + $0x3f8] ss:$72 sps:$4 sm:$0xff]  }
  0x41   :  { %1896 = vmatprep.subr.bf16.mxu0 %v7557_v29  ;;  %v7633_v29 = vld [vmem:[#allocation2 + $0x1bc] ss:$72 sps:$4 sm:$0xff]   ;;  %v8946_v42 = vld.sshfl [vmem:[%s9090_s0 + $0x8] sm:$0x33 pattern:$0x76325410] }
  0x42   :  { %v7663_v54 = vld [vmem:[#allocation2 + $0x48c] ss:$72 sps:$4 sm:$0xff]   ;;  %v7658_v55 = vld [vmem:[#allocation2 + $0x1680] ss:$72 sps:$4 sm:$0xff]   ;;  %v7664_v59 = vld [vmem:[#allocation2 + $0x1710] ss:$72 sps:$4 sm:$0xff]  }
  0x43   :  { %1856 = vmatpush1.bf16.msra.mxu1 %v7559_v30  ;;  %v7628_v30 = vld [vmem:[#allocation2 + $0x13b0] ss:$72 sps:$4 sm:$0xff]   ;;  %v7675_v63 = vld [vmem:[#allocation2 + $0x5ac] ss:$72 sps:$4 sm:$0xff]  }
  0x44   :  { %1897 = vmatpush1.bf16.msra.mxu0 %v7560_v31  ;;  %1857 = vmatprep.subr.bf16.mxu1 %v7561_v32  ;;  %v7631_v31 = vld [vmem:[#allocation2 + $0x1b8] ss:$72 sps:$4 sm:$0xff]   ;;  %v7636_v32 = vld [vmem:[#allocation2 + $0x1444] ss:$72 sps:$4 sm:$0xff]  }
  0x45   :  { %1898 = vmatprep.subr.bf16.mxu0 %v7563_v33  ;;  %v7639_v33 = vld [vmem:[#allocation2 + $0x24c] ss:$72 sps:$4 sm:$0xff]   ;;  %v7667_v60 = vld [vmem:[#allocation2 + $0x518] ss:$72 sps:$4 sm:$0xff]  }
  0x47   :  { %1858 = vmatpush1.bf16.msra.mxu1 %v7565_v34  ;;  %v7634_v34 = vld [vmem:[#allocation2 + $0x1440] ss:$72 sps:$4 sm:$0xff]  }
  0x48   :  { %1899 = vmatpush1.bf16.msra.mxu0 %v7566_v35  ;;  %1859 = vmatprep.subr.bf16.mxu1 %v7567_v39  ;;  %v7637_v35 = vld [vmem:[#allocation2 + $0x248] ss:$72 sps:$4 sm:$0xff]   ;;  %v7643_v39 = vld [vmem:[#allocation2 + $0x2d8] ss:$72 sps:$4 sm:$0xff]  }
  0x49   :  { %1900 = vmatprep.subr.bf16.mxu0 %v7569_v40  ;;  %v7648_v40 = vld [vmem:[#allocation2 + $0x1564] ss:$72 sps:$4 sm:$0xff]  }
  0x4b   :  { %1860 = vmatpush1.bf16.msra.mxu1 %v7571_v41  ;;  %v7651_v41 = vld [vmem:[#allocation2 + $0x36c] ss:$72 sps:$4 sm:$0xff]  }
  0x4c   :  { %1901 = vmatpush1.bf16.msra.mxu0 %v7572_v44  ;;  %1861 = vmatprep.subr.bf16.mxu1 %v7573_v45  ;;  %v68_v44 = vcombine.high %v8946_v42, %v8946_v42  ;;  %v7646_v45 = vld [vmem:[#allocation2 + $0x1560] ss:$72 sps:$4 sm:$0xff]  }
  0x4d   :  { %1902 = vmatprep.subr.bf16.mxu0 %v7575_v46  ;;  %v7649_v46 = vld [vmem:[#allocation2 + $0x368] ss:$72 sps:$4 sm:$0xff]  }
  0x4f   :  { %1862 = vmatpush1.bf16.msra.mxu1 %v7577_v47  ;;  %v7654_v47 = vld [vmem:[#allocation2 + $0x15f4] ss:$72 sps:$4 sm:$0xff]  }
  0x50   :  { %1903 = vmatpush1.bf16.msra.mxu0 %v7578_v48  ;;  %1863 = vmatprep.subr.bf16.mxu1 %v7579_v50  ;;  %v7657_v48 = vld [vmem:[#allocation2 + $0x3fc] ss:$72 sps:$4 sm:$0xff]   ;;  %v8950_v50 = vpack.c.bf16 %v68_v44, %v68_v44 }
  0x51   :  { %1904 = vmatprep.subr.bf16.mxu0 %v7581_v51  ;;  %v7652_v51 = vld [vmem:[#allocation2 + $0x15f0] ss:$72 sps:$4 sm:$0xff]   ;;  %v7735_v44 = vld [vmem:[#allocation2 + $0x254] ss:$72 sps:$4 sm:$0xff]  }
  0x53   :  { %1864 = vmatpush1.bf16.msra.mxu1 %v7583_v53  ;;  %v7660_v53 = vld [vmem:[#allocation2 + $0x1684] ss:$72 sps:$4 sm:$0xff]  }
  0x54   :  { %1905 = vmatpush1.bf16.msra.mxu0 %v7584_v56  ;;  %1865 = vmatprep.subr.bf16.mxu1 %v7585_v57  ;;  %v7661_v56 = vld [vmem:[#allocation2 + $0x488] ss:$72 sps:$4 sm:$0xff]   ;;  %v7666_v57 = vld [vmem:[#allocation2 + $0x1714] ss:$72 sps:$4 sm:$0xff]  }
  0x55   :  { %1906 = vmatprep.subr.bf16.mxu0 %v7587_v58  ;;  %v7669_v58 = vld [vmem:[#allocation2 + $0x51c] ss:$72 sps:$4 sm:$0xff]  }
  0x57   :  { %1866 = vmatpush1.bf16.msra.mxu1 %v7589_v61  ;;  %v7672_v61 = vld [vmem:[#allocation2 + $0x17a4] ss:$72 sps:$4 sm:$0xff]  }
  0x58   :  { %1907 = vmatpush1.bf16.msra.mxu0 %v7590_v0  ;;  %1867 = vmatprep.subr.bf16.mxu1 %v7591_v1  ;;  %v7670_v0 = vld [vmem:[#allocation2 + $0x17a0] ss:$72 sps:$4 sm:$0xff]  }
  0x59   :  { %1908 = vmatprep.subr.bf16.mxu0 %v7593_v2  ;;  %v7673_v1 = vld [vmem:[#allocation2 + $0x5a8] ss:$72 sps:$4 sm:$0xff]   ;;  %v7678_v2 = vld [vmem:[#allocation2 + $0x1834] ss:$72 sps:$4 sm:$0xff]  }
  0x5b   :  { %1868 = vmatpush1.bf16.msra.mxu1 %v7595_v4  ;;  %v7681_v4 = vld [vmem:[#allocation2 + $0x63c] ss:$72 sps:$4 sm:$0xff]  }
  0x5c   :  { %1909 = vmatpush1.bf16.msra.mxu0 %v7596_v5  ;;  %1869 = vmatprep.subr.bf16.mxu1 %v7597_v6  ;;  %v7676_v5 = vld [vmem:[#allocation2 + $0x1830] ss:$72 sps:$4 sm:$0xff]  }
  0x5d   :  { %1910 = vmatprep.subr.bf16.mxu0 %v7599_v7  ;;  %v7679_v6 = vld [vmem:[#allocation2 + $0x638] ss:$72 sps:$4 sm:$0xff]   ;;  %v7684_v7 = vld [vmem:[#allocation2 + $0x18c4] ss:$72 sps:$4 sm:$0xff]  }
  0x5f   :  { %1870 = vmatpush1.bf16.msra.mxu1 %v7601_v8  ;;  %v7687_v8 = vld [vmem:[#allocation2 + $0x6cc] ss:$72 sps:$4 sm:$0xff]  }
  0x60   :  { %1911 = vmatpush1.bf16.msra.mxu0 %v7602_v9  ;;  %1871 = vmatprep.subr.bf16.mxu1 %v7603_v10  ;;  %v7682_v9 = vld [vmem:[#allocation2 + $0x18c0] ss:$72 sps:$4 sm:$0xff]  }
  0x61   :  { %1912 = vmatprep.subr.bf16.mxu0 %v7605_v11  ;;  %v7685_v10 = vld [vmem:[#allocation2 + $0x6c8] ss:$72 sps:$4 sm:$0xff]   ;;  %v7690_v11 = vld [vmem:[#allocation2 + $0x1954] ss:$72 sps:$4 sm:$0xff]  }
  0x63   :  { %1872 = vmatpush1.bf16.msra.mxu1 %v7607_v12  ;;  %v7693_v12 = vld [vmem:[#allocation2 + $0x75c] ss:$72 sps:$4 sm:$0xff]  }
  0x64   :  { %1913 = vmatpush1.bf16.msra.mxu0 %v7608_v13  ;;  %1964 = vmatprep.subr.bf16.mxu1 %v7615_v15  ;;  %v7688_v13 = vld [vmem:[#allocation2 + $0x1950] ss:$72 sps:$4 sm:$0xff]   ;;  %v7696_v15 = vld [vmem:[#allocation2 + $0x19e4] ss:$72 sps:$4 sm:$0xff]  }
  0x65   :  { %1923 = vmatprep.subr.bf16.mxu0 %v7612_v14  ;;  %v7691_v14 = vld [vmem:[#allocation2 + $0x758] ss:$72 sps:$4 sm:$0xff]  }
  0x66   :  { %1874 = vmatmul.mubr.bf16.vlgmr.msra.gmra.mrb[0].mxu1 %v8936_v16 }
  0x67   :  { %1915 = vmatmul.mubr.bf16.vlgmr.msra.gmra.mrb[0].mxu0 %v8938_v18  ;;  %1965 = vmatpush1.bf16.msra.mxu1 %v7613_v19  ;;  %v7694_v19 = vld [vmem:[#allocation2 + $0x19e0] ss:$72 sps:$4 sm:$0xff]  }
  0x68   :  { %1924 = vmatpush1.bf16.msra.mxu0 %v7610_v17  ;;  %1966 = vmatprep.subr.bf16.mxu1 %v7621_v21  ;;  %v7699_v17 = vld [vmem:[#allocation2 + $0x7ec] ss:$72 sps:$4 sm:$0xff]  }
  0x69   :  { %1925 = vmatprep.subr.bf16.mxu0 %v7618_v20  ;;  %1996 = vmatprep.mubr.bf16.mxu1 %v8930_v62  ;;  %v7697_v20 = vld [vmem:[#allocation2 + $0x7e8] ss:$72 sps:$4 sm:$0xff]   ;;  %v7702_v21 = vld [vmem:[#allocation2 + $0x1a74] ss:$72 sps:$4 sm:$0xff]  }
  0x6a   :  { %1955 = vmatprep.mubr.bf16.mxu0 %v8950_v50 }
  0x6b   :  { %1967 = vmatpush1.bf16.msra.mxu1 %v7619_v23  ;;  %v7700_v23 = vld [vmem:[#allocation2 + $0x1a70] ss:$72 sps:$4 sm:$0xff]  }
  0x6c   :  { %1926 = vmatpush1.bf16.msra.mxu0 %v7616_v22  ;;  %1968 = vmatprep.subr.bf16.mxu1 %v7627_v25  ;;  %v7705_v22 = vld [vmem:[#allocation2 + $0x87c] ss:$72 sps:$4 sm:$0xff]   ;;  %v7708_v25 = vld [vmem:[#allocation2 + $0x90c] ss:$72 sps:$4 sm:$0xff]  }
  0x6d   :  { %1927 = vmatprep.subr.bf16.mxu0 %v7624_v24  ;;  %v7703_v24 = vld [vmem:[#allocation2 + $0x878] ss:$72 sps:$4 sm:$0xff]  }
  0x6f   :  { %1969 = vmatpush1.bf16.msra.mxu1 %v7625_v27  ;;  %v8955_v27 = vpack.c.bf16 %v8946_v42, %v8946_v42  ;;  %v7732_v42 = vld [vmem:[#allocation2 + $0xb4c] ss:$72 sps:$4 sm:$0xff]  }
  0x70   :  { %1928 = vmatpush1.bf16.msra.mxu0 %v7622_v26  ;;  %1970 = vmatprep.subr.bf16.mxu1 %v7633_v29  ;;  %v7711_v26 = vld [vmem:[#allocation2 + $0x14] ss:$72 sps:$4 sm:$0xff]   ;;  %v7709_v29 = vld [vmem:[#allocation2 + $0x10] ss:$72 sps:$4 sm:$0xff]  }
  0x71   :  { %1929 = vmatprep.subr.bf16.mxu0 %v7630_v28  ;;  %v7706_v28 = vld [vmem:[#allocation2 + $0x908] ss:$72 sps:$4 sm:$0xff]  }
  0x73   :  { %1971 = vmatpush1.bf16.msra.mxu1 %v7631_v31  ;;  %v7717_v31 = vld [vmem:[#allocation2 + $0xa4] ss:$72 sps:$4 sm:$0xff]  }
  0x74   :  { %1930 = vmatpush1.bf16.msra.mxu0 %v7628_v30  ;;  %1972 = vmatprep.subr.bf16.mxu1 %v7639_v33  ;;  %v7714_v30 = vld [vmem:[#allocation2 + $0x99c] ss:$72 sps:$4 sm:$0xff]   ;;  %v7715_v33 = vld [vmem:[#allocation2 + $0xa0] ss:$72 sps:$4 sm:$0xff]  }
  0x75   :  { %1931 = vmatprep.subr.bf16.mxu0 %v7636_v32  ;;  %v7712_v32 = vld [vmem:[#allocation2 + $0x998] ss:$72 sps:$4 sm:$0xff]  }
  0x77   :  { %1973 = vmatpush1.bf16.msra.mxu1 %v7637_v35  ;;  %v7723_v35 = vld [vmem:[#allocation2 + $0x134] ss:$72 sps:$4 sm:$0xff]  }
  0x78   :  { %1932 = vmatpush1.bf16.msra.mxu0 %v7634_v34  ;;  %1974 = vmatprep.subr.bf16.mxu1 %v7645_v37  ;;  %v7720_v34 = vld [vmem:[#allocation2 + $0xa2c] ss:$72 sps:$4 sm:$0xff]   ;;  %v7721_v37 = vld [vmem:[#allocation2 + $0x130] ss:$72 sps:$4 sm:$0xff]  }
  0x79   :  { %1933 = vmatprep.subr.bf16.mxu0 %v7642_v36  ;;  %v7718_v36 = vld [vmem:[#allocation2 + $0xa28] ss:$72 sps:$4 sm:$0xff]  }
  0x7b   :  { %1975 = vmatpush1.bf16.msra.mxu1 %v7643_v39  ;;  %v7729_v39 = vld [vmem:[#allocation2 + $0x1c4] ss:$72 sps:$4 sm:$0xff]  }
  0x7c   :  { %1934 = vmatpush1.bf16.msra.mxu0 %v7640_v38  ;;  %1976 = vmatprep.subr.bf16.mxu1 %v7651_v41  ;;  %v7726_v38 = vld [vmem:[#allocation2 + $0xabc] ss:$72 sps:$4 sm:$0xff]   ;;  %v7727_v41 = vld [vmem:[#allocation2 + $0x1c0] ss:$72 sps:$4 sm:$0xff]  }
  0x7d   :  { %1935 = vmatprep.subr.bf16.mxu0 %v7648_v40  ;;  %v7724_v40 = vld [vmem:[#allocation2 + $0xab8] ss:$72 sps:$4 sm:$0xff]  }
  0x7f   :  { %1977 = vmatpush1.bf16.msra.mxu1 %v7649_v46  ;;  %v7738_v46 = vld [vmem:[#allocation2 + $0xbdc] ss:$72 sps:$4 sm:$0xff]  }
  0x80   :  { %1936 = vmatpush1.bf16.msra.mxu0 %v7646_v45  ;;  %1978 = vmatprep.subr.bf16.mxu1 %v7657_v48  ;;  %v7730_v45 = vld [vmem:[#allocation2 + $0xb48] ss:$72 sps:$4 sm:$0xff]   ;;  %v7736_v48 = vld [vmem:[#allocation2 + $0xbd8] ss:$72 sps:$4 sm:$0xff]  }
  0x81   :  { %1937 = vmatprep.subr.bf16.mxu0 %v7654_v47  ;;  %v7741_v47 = vld [vmem:[#allocation2 + $0x2e4] ss:$72 sps:$4 sm:$0xff]  }
  0x83   :  { %1979 = vmatpush1.bf16.msra.mxu1 %v7655_v52  ;;  %v7744_v52 = vld [vmem:[#allocation2 + $0xc6c] ss:$72 sps:$4 sm:$0xff]  }
  0x84   :  { %1938 = vmatpush1.bf16.msra.mxu0 %v7652_v51  ;;  %1980 = vmatprep.subr.bf16.mxu1 %v7663_v54  ;;  %v7739_v51 = vld [vmem:[#allocation2 + $0x2e0] ss:$72 sps:$4 sm:$0xff]  }
  0x85   :  { %1939 = vmatprep.subr.bf16.mxu0 %v7660_v53  ;;  %v7747_v53 = vld [vmem:[#allocation2 + $0x374] ss:$72 sps:$4 sm:$0xff]   ;;  %v7742_v54 = vld [vmem:[#allocation2 + $0xc68] ss:$72 sps:$4 sm:$0xff]  }
  0x87   :  { %1981 = vmatpush1.bf16.msra.mxu1 %v7661_v56  ;;  %v7750_v56 = vld [vmem:[#allocation2 + $0xcfc] ss:$72 sps:$4 sm:$0xff]  }
  0x88   :  { %1940 = vmatpush1.bf16.msra.mxu0 %v7658_v55  ;;  %1982 = vmatprep.subr.bf16.mxu1 %v7669_v58  ;;  %v7745_v55 = vld [vmem:[#allocation2 + $0x370] ss:$72 sps:$4 sm:$0xff]  }
  0x89   :  { %1941 = vmatprep.subr.bf16.mxu0 %v7666_v57  ;;  %v7753_v57 = vld [vmem:[#allocation2 + $0x404] ss:$72 sps:$4 sm:$0xff]   ;;  %v7748_v58 = vld [vmem:[#allocation2 + $0xcf8] ss:$72 sps:$4 sm:$0xff]  }
  0x8b   :  { %1983 = vmatpush1.bf16.msra.mxu1 %v7667_v60  ;;  %v7756_v60 = vld [vmem:[#allocation2 + $0xd8c] ss:$72 sps:$4 sm:$0xff]  }
  0x8c   :  { %1942 = vmatpush1.bf16.msra.mxu0 %v7664_v59  ;;  %1984 = vmatprep.subr.bf16.mxu1 %v7675_v63  ;;  %v7751_v59 = vld [vmem:[#allocation2 + $0x400] ss:$72 sps:$4 sm:$0xff]  }
  0x8d   :  { %1943 = vmatprep.subr.bf16.mxu0 %v7672_v61  ;;  %v7759_v61 = vld [vmem:[#allocation2 + $0x494] ss:$72 sps:$4 sm:$0xff]   ;;  %v7754_v63 = vld [vmem:[#allocation2 + $0xd88] ss:$72 sps:$4 sm:$0xff]  }
  0x8f   :  { %1985 = vmatpush1.bf16.msra.mxu1 %v7673_v1  ;;  %v7762_v1 = vld [vmem:[#allocation2 + $0xe1c] ss:$72 sps:$4 sm:$0xff]  }
  0x90   :  { %1944 = vmatpush1.bf16.msra.mxu0 %v7670_v0  ;;  %1986 = vmatprep.subr.bf16.mxu1 %v7681_v4  ;;  %v7757_v0 = vld [vmem:[#allocation2 + $0x490] ss:$72 sps:$4 sm:$0xff]  }
  0x91   :  { %1945 = vmatprep.subr.bf16.mxu0 %v7678_v2  ;;  %v7765_v2 = vld [vmem:[#allocation2 + $0x524] ss:$72 sps:$4 sm:$0xff]   ;;  %v7760_v4 = vld [vmem:[#allocation2 + $0xe18] ss:$72 sps:$4 sm:$0xff]  }
  0x93   :  { %1987 = vmatpush1.bf16.msra.mxu1 %v7679_v6  ;;  %v7768_v6 = vld [vmem:[#allocation2 + $0xeac] ss:$72 sps:$4 sm:$0xff]  }
  0x94   :  { %1946 = vmatpush1.bf16.msra.mxu0 %v7676_v5  ;;  %1988 = vmatprep.subr.bf16.mxu1 %v7687_v8  ;;  %v7763_v5 = vld [vmem:[#allocation2 + $0x520] ss:$72 sps:$4 sm:$0xff]  }
  0x95   :  { %1947 = vmatprep.subr.bf16.mxu0 %v7684_v7  ;;  %v7771_v7 = vld [vmem:[#allocation2 + $0x5b4] ss:$72 sps:$4 sm:$0xff]   ;;  %v7766_v8 = vld [vmem:[#allocation2 + $0xea8] ss:$72 sps:$4 sm:$0xff]  }
  0x97   :  { %1989 = vmatpush1.bf16.msra.mxu1 %v7685_v10  ;;  %v7774_v10 = vld [vmem:[#allocation2 + $0xf3c] ss:$72 sps:$4 sm:$0xff]  }
  0x98   :  { %1948 = vmatpush1.bf16.msra.mxu0 %v7682_v9  ;;  %1990 = vmatprep.subr.bf16.mxu1 %v7693_v12  ;;  %v7769_v9 = vld [vmem:[#allocation2 + $0x5b0] ss:$72 sps:$4 sm:$0xff]  }
  0x99   :  { %1949 = vmatprep.subr.bf16.mxu0 %v7690_v11  ;;  %v7777_v11 = vld [vmem:[#allocation2 + $0x644] ss:$72 sps:$4 sm:$0xff]   ;;  %v7772_v12 = vld [vmem:[#allocation2 + $0xf38] ss:$72 sps:$4 sm:$0xff]  }
  0x9b   :  { %1991 = vmatpush1.bf16.msra.mxu1 %v7691_v14  ;;  %v7780_v14 = vld [vmem:[#allocation2 + $0xfcc] ss:$72 sps:$4 sm:$0xff]  }
  0x9c   :  { %1950 = vmatpush1.bf16.msra.mxu0 %v7688_v13  ;;  %1992 = vmatprep.subr.bf16.mxu1 %v7699_v17  ;;  %v7775_v13 = vld [vmem:[#allocation2 + $0x640] ss:$72 sps:$4 sm:$0xff]  }
  0x9d   :  { %1951 = vmatprep.subr.bf16.mxu0 %v7696_v15  ;;  %v7783_v15 = vld [vmem:[#allocation2 + $0x6d4] ss:$72 sps:$4 sm:$0xff]   ;;  %v7778_v17 = vld [vmem:[#allocation2 + $0xfc8] ss:$72 sps:$4 sm:$0xff]  }
  0x9f   :  { %1993 = vmatpush1.bf16.msra.mxu1 %v7697_v20  ;;  %v7786_v20 = vld [vmem:[#allocation2 + $0x105c] ss:$72 sps:$4 sm:$0xff]  }
  0xa0   :  { %1952 = vmatpush1.bf16.msra.mxu0 %v7694_v19  ;;  %1994 = vmatprep.subr.bf16.mxu1 %v7705_v22  ;;  %v7781_v19 = vld [vmem:[#allocation2 + $0x6d0] ss:$72 sps:$4 sm:$0xff]  }
  0xa1   :  { %1953 = vmatprep.subr.bf16.mxu0 %v7702_v21  ;;  %v7789_v21 = vld [vmem:[#allocation2 + $0x764] ss:$72 sps:$4 sm:$0xff]   ;;  %v7784_v22 = vld [vmem:[#allocation2 + $0x1058] ss:$72 sps:$4 sm:$0xff]  }
  0xa3   :  { %1995 = vmatpush1.bf16.msra.mxu1 %v7703_v24  ;;  %v7792_v24 = vld [vmem:[#allocation2 + $0x10ec] ss:$72 sps:$4 sm:$0xff]  }
  0xa4   :  { %1954 = vmatpush1.bf16.msra.mxu0 %v7700_v23  ;;  %2005 = vmatprep.subr.bf16.mxu1 %v7708_v25  ;;  %v7787_v23 = vld [vmem:[#allocation2 + $0x760] ss:$72 sps:$4 sm:$0xff]   ;;  %v7795_v25 = vld [vmem:[#allocation2 + $0x7f4] ss:$72 sps:$4 sm:$0xff]  }
  0xa5   :  { %2087 = vmatprep.subr.bf16.mxu0 %v7711_v26  ;;  %v7790_v26 = vld [vmem:[#allocation2 + $0x10e8] ss:$72 sps:$4 sm:$0xff]  }
  0xa6   :  { %1997 = vmatmul.mubr.bf16.vlgmr.msra.gmra.mrb[4].mxu1 %v8936_v16 }
  0xa7   :  { %1956 = vmatmul.mubr.bf16.vlgmr.msra.gmra.mrb[0].mxu0 %v8955_v27  ;;  %2006 = vmatpush1.bf16.msra.mxu1 %v7706_v28  ;;  %v7793_v28 = vld [vmem:[#allocation2 + $0x7f0] ss:$72 sps:$4 sm:$0xff]  }
  0xa8   :  { %2088 = vmatpush1.bf16.msra.mxu0 %v7709_v29  ;;  %2007 = vmatprep.subr.bf16.mxu1 %v7714_v30  ;;  %v7798_v29 = vld [vmem:[#allocation2 + $0x117c] ss:$72 sps:$4 sm:$0xff]  }
  0xa9   :  { %2089 = vmatprep.subr.bf16.mxu0 %v7717_v31  ;;  %2037 = vmatprep.mubr.bf16.mxu1 %v8932_v3  ;;  %v7801_v30 = vld [vmem:[#allocation2 + $0x884] ss:$72 sps:$4 sm:$0xff]   ;;  %v7796_v31 = vld [vmem:[#allocation2 + $0x1178] ss:$72 sps:$4 sm:$0xff]  }
  0xaa   :  { %2119 = vmatprep.mubr.bf16.mxu0 %v8930_v62  ;;  %v7733_v62 = vld [vmem:[#allocation2 + $0x250] ss:$72 sps:$4 sm:$0xff]  }
  0xab   :  { %2008 = vmatpush1.bf16.msra.mxu1 %v7712_v32  ;;  %v7799_v32 = vld [vmem:[#allocation2 + $0x880] ss:$72 sps:$4 sm:$0xff]  }
  0xac   :  { %2090 = vmatpush1.bf16.msra.mxu0 %v7715_v33  ;;  %2009 = vmatprep.subr.bf16.mxu1 %v7720_v34  ;;  %v7804_v33 = vld [vmem:[#allocation2 + $0x120c] ss:$72 sps:$4 sm:$0xff]  }
  0xad   :  { %2091 = vmatprep.subr.bf16.mxu0 %v7723_v35  ;;  %v7807_v34 = vld [vmem:[#allocation2 + $0x914] ss:$72 sps:$4 sm:$0xff]   ;;  %v7802_v35 = vld [vmem:[#allocation2 + $0x1208] ss:$72 sps:$4 sm:$0xff]  }
  0xaf   :  { %2010 = vmatpush1.bf16.msra.mxu1 %v7718_v36  ;;  %v7805_v36 = vld [vmem:[#allocation2 + $0x910] ss:$72 sps:$4 sm:$0xff]  }
  0xb0   :  { %2092 = vmatpush1.bf16.msra.mxu0 %v7721_v37  ;;  %2011 = vmatprep.subr.bf16.mxu1 %v7726_v38  ;;  %v7810_v37 = vld [vmem:[#allocation2 + $0x129c] ss:$72 sps:$4 sm:$0xff]  }
  0xb1   :  { %2093 = vmatprep.subr.bf16.mxu0 %v7729_v39  ;;  %v7813_v38 = vld [vmem:[#allocation2 + $0x9a4] ss:$72 sps:$4 sm:$0xff]   ;;  %v7808_v39 = vld [vmem:[#allocation2 + $0x1298] ss:$72 sps:$4 sm:$0xff]  }
  0xb3   :  { %2012 = vmatpush1.bf16.msra.mxu1 %v7724_v40  ;;  %v7811_v40 = vld [vmem:[#allocation2 + $0x9a0] ss:$72 sps:$4 sm:$0xff]  }
  0xb4   :  { %2094 = vmatpush1.bf16.msra.mxu0 %v7727_v41  ;;  %2013 = vmatprep.subr.bf16.mxu1 %v7732_v42  ;;  %v7816_v41 = vld [vmem:[#allocation2 + $0x132c] ss:$72 sps:$4 sm:$0xff]  }
  0xb5   :  { %2095 = vmatprep.subr.bf16.mxu0 %v7735_v44  ;;  %v7819_v42 = vld [vmem:[#allocation2 + $0xa34] ss:$72 sps:$4 sm:$0xff]   ;;  %v7814_v44 = vld [vmem:[#allocation2 + $0x1328] ss:$72 sps:$4 sm:$0xff]  }
  0xb7   :  { %2014 = vmatpush1.bf16.msra.mxu1 %v7730_v45  ;;  %v7817_v45 = vld [vmem:[#allocation2 + $0xa30] ss:$72 sps:$4 sm:$0xff]  }
  0xb8   :  { %2096 = vmatpush1.bf16.msra.mxu0 %v7733_v62  ;;  %2015 = vmatprep.subr.bf16.mxu1 %v7738_v46  ;;  %v7822_v62 = vld [vmem:[#allocation2 + $0x13bc] ss:$72 sps:$4 sm:$0xff]   ;;  %v7820_v46 = vld [vmem:[#allocation2 + $0x13b8] ss:$72 sps:$4 sm:$0xff]  }
  0xb9   :  { %2097 = vmatprep.subr.bf16.mxu0 %v7741_v47  ;;  %v7823_v47 = vld [vmem:[#allocation2 + $0xac0] ss:$72 sps:$4 sm:$0xff]  }
  0xbb   :  { %2016 = vmatpush1.bf16.msra.mxu1 %v7736_v48  ;;  %v7828_v48 = vld [vmem:[#allocation2 + $0x144c] ss:$72 sps:$4 sm:$0xff]  }
  0xbc   :  { %2098 = vmatpush1.bf16.msra.mxu0 %v7739_v51  ;;  %2017 = vmatprep.subr.bf16.mxu1 %v7744_v52  ;;  %v7831_v51 = vld [vmem:[#allocation2 + $0xb54] ss:$72 sps:$4 sm:$0xff]   ;;  %v7826_v52 = vld [vmem:[#allocation2 + $0x1448] ss:$72 sps:$4 sm:$0xff]  }
  0xbd   :  { %2099 = vmatprep.subr.bf16.mxu0 %v7747_v53  ;;  %v7834_v53 = vld [vmem:[#allocation2 + $0x14dc] ss:$72 sps:$4 sm:$0xff]  }
  0xbf   :  { %2018 = vmatpush1.bf16.msra.mxu1 %v7742_v54  ;;  %v7837_v54 = vld [vmem:[#allocation2 + $0xbe4] ss:$72 sps:$4 sm:$0xff]  }
  0xc0   :  { %2100 = vmatpush1.bf16.msra.mxu0 %v7745_v55  ;;  %2019 = vmatprep.subr.bf16.mxu1 %v7750_v56  ;;  %v7832_v55 = vld [vmem:[#allocation2 + $0x14d8] ss:$72 sps:$4 sm:$0xff]  }
  0xc1   :  { %2101 = vmatprep.subr.bf16.mxu0 %v7753_v57  ;;  %v7835_v56 = vld [vmem:[#allocation2 + $0xbe0] ss:$72 sps:$4 sm:$0xff]   ;;  %v7840_v57 = vld [vmem:[#allocation2 + $0x156c] ss:$72 sps:$4 sm:$0xff]  }
  0xc3   :  { %2020 = vmatpush1.bf16.msra.mxu1 %v7748_v58  ;;  %v7843_v58 = vld [vmem:[#allocation2 + $0xc74] ss:$72 sps:$4 sm:$0xff]  }
  0xc4   :  { %2102 = vmatpush1.bf16.msra.mxu0 %v7751_v59  ;;  %2021 = vmatprep.subr.bf16.mxu1 %v7756_v60  ;;  %v7838_v59 = vld [vmem:[#allocation2 + $0x1568] ss:$72 sps:$4 sm:$0xff]  }
  0xc5   :  { %2103 = vmatprep.subr.bf16.mxu0 %v7759_v61  ;;  %v7841_v60 = vld [vmem:[#allocation2 + $0xc70] ss:$72 sps:$4 sm:$0xff]   ;;  %v7846_v61 = vld [vmem:[#allocation2 + $0x15fc] ss:$72 sps:$4 sm:$0xff]  }
  0xc7   :  { %2022 = vmatpush1.bf16.msra.mxu1 %v7754_v63  ;;  %v7849_v63 = vld [vmem:[#allocation2 + $0xd04] ss:$72 sps:$4 sm:$0xff]  }
  0xc8   :  { %2104 = vmatpush1.bf16.msra.mxu0 %v7757_v0  ;;  %2023 = vmatprep.subr.bf16.mxu1 %v7762_v1  ;;  %v7844_v0 = vld [vmem:[#allocation2 + $0x15f8] ss:$72 sps:$4 sm:$0xff]  }
  0xc9   :  { %2105 = vmatprep.subr.bf16.mxu0 %v7765_v2  ;;  %v7847_v1 = vld [vmem:[#allocation2 + $0xd00] ss:$72 sps:$4 sm:$0xff]   ;;  %v7852_v2 = vld [vmem:[#allocation2 + $0x168c] ss:$72 sps:$4 sm:$0xff]  }
  0xcb   :  { %2024 = vmatpush1.bf16.msra.mxu1 %v7760_v4  ;;  %v7855_v4 = vld [vmem:[#allocation2 + $0xd94] ss:$72 sps:$4 sm:$0xff]  }
  0xcc   :  { %2106 = vmatpush1.bf16.msra.mxu0 %v7763_v5  ;;  %2025 = vmatprep.subr.bf16.mxu1 %v7768_v6  ;;  %v7850_v5 = vld [vmem:[#allocation2 + $0x1688] ss:$72 sps:$4 sm:$0xff]  }
  0xcd   :  { %2107 = vmatprep.subr.bf16.mxu0 %v7771_v7  ;;  %v7853_v6 = vld [vmem:[#allocation2 + $0xd90] ss:$72 sps:$4 sm:$0xff]   ;;  %v7858_v7 = vld [vmem:[#allocation2 + $0x171c] ss:$72 sps:$4 sm:$0xff]  }
  0xcf   :  { %2026 = vmatpush1.bf16.msra.mxu1 %v7766_v8  ;;  %v7861_v8 = vld [vmem:[#allocation2 + $0xe24] ss:$72 sps:$4 sm:$0xff]  }
  0xd0   :  { %2108 = vmatpush1.bf16.msra.mxu0 %v7769_v9  ;;  %2027 = vmatprep.subr.bf16.mxu1 %v7774_v10  ;;  %v7856_v9 = vld [vmem:[#allocation2 + $0x1718] ss:$72 sps:$4 sm:$0xff]  }
  0xd1   :  { %2109 = vmatprep.subr.bf16.mxu0 %v7777_v11  ;;  %v7859_v10 = vld [vmem:[#allocation2 + $0xe20] ss:$72 sps:$4 sm:$0xff]   ;;  %v7864_v11 = vld [vmem:[#allocation2 + $0x17ac] ss:$72 sps:$4 sm:$0xff]  }
  0xd3   :  { %2028 = vmatpush1.bf16.msra.mxu1 %v7772_v12  ;;  %v7867_v12 = vld [vmem:[#allocation2 + $0xeb4] ss:$72 sps:$4 sm:$0xff]  }
  0xd4   :  { %2110 = vmatpush1.bf16.msra.mxu0 %v7775_v13  ;;  %2029 = vmatprep.subr.bf16.mxu1 %v7780_v14  ;;  %v7862_v13 = vld [vmem:[#allocation2 + $0x17a8] ss:$72 sps:$4 sm:$0xff]  }
  0xd5   :  { %2111 = vmatprep.subr.bf16.mxu0 %v7783_v15  ;;  %v7865_v14 = vld [vmem:[#allocation2 + $0xeb0] ss:$72 sps:$4 sm:$0xff]   ;;  %v7870_v15 = vld [vmem:[#allocation2 + $0x183c] ss:$72 sps:$4 sm:$0xff]  }
  0xd7   :  { %2030 = vmatpush1.bf16.msra.mxu1 %v7778_v17  ;;  %v7873_v17 = vld [vmem:[#allocation2 + $0xf44] ss:$72 sps:$4 sm:$0xff]  }
  0xd8   :  { %2112 = vmatpush1.bf16.msra.mxu0 %v7781_v19  ;;  %2031 = vmatprep.subr.bf16.mxu1 %v7786_v20  ;;  %v7868_v19 = vld [vmem:[#allocation2 + $0x1838] ss:$72 sps:$4 sm:$0xff]  }
  0xd9   :  { %2113 = vmatprep.subr.bf16.mxu0 %v7789_v21  ;;  %v7871_v20 = vld [vmem:[#allocation2 + $0xf40] ss:$72 sps:$4 sm:$0xff]   ;;  %v7876_v21 = vld [vmem:[#allocation2 + $0x18cc] ss:$72 sps:$4 sm:$0xff]  }
  0xdb   :  { %2032 = vmatpush1.bf16.msra.mxu1 %v7784_v22  ;;  %v7879_v22 = vld [vmem:[#allocation2 + $0xfd4] ss:$72 sps:$4 sm:$0xff]  }
  0xdc   :  { %2114 = vmatpush1.bf16.msra.mxu0 %v7787_v23  ;;  %2033 = vmatprep.subr.bf16.mxu1 %v7792_v24  ;;  %v7874_v23 = vld [vmem:[#allocation2 + $0x18c8] ss:$72 sps:$4 sm:$0xff]  }
  0xdd   :  { %2115 = vmatprep.subr.bf16.mxu0 %v7795_v25  ;;  %v7877_v24 = vld [vmem:[#allocation2 + $0xfd0] ss:$72 sps:$4 sm:$0xff]   ;;  %v7882_v25 = vld [vmem:[#allocation2 + $0x195c] ss:$72 sps:$4 sm:$0xff]  }
  0xdf   :  { %2034 = vmatpush1.bf16.msra.mxu1 %v7790_v26  ;;  %v7885_v26 = vld [vmem:[#allocation2 + $0x1064] ss:$72 sps:$4 sm:$0xff]  }
  0xe0   :  { %2116 = vmatpush1.bf16.msra.mxu0 %v7793_v28  ;;  %2035 = vmatprep.subr.bf16.mxu1 %v7798_v29  ;;  %v7880_v28 = vld [vmem:[#allocation2 + $0x1958] ss:$72 sps:$4 sm:$0xff]  }
  0xe1   :  { %2117 = vmatprep.subr.bf16.mxu0 %v7801_v30  ;;  %v7883_v29 = vld [vmem:[#allocation2 + $0x1060] ss:$72 sps:$4 sm:$0xff]   ;;  %v7888_v30 = vld [vmem:[#allocation2 + $0x19ec] ss:$72 sps:$4 sm:$0xff]  }
  0xe3   :  { %2036 = vmatpush1.bf16.msra.mxu1 %v7796_v31  ;;  %v7891_v31 = vld [vmem:[#allocation2 + $0x10f4] ss:$72 sps:$4 sm:$0xff]  }
  0xe4   :  { %2118 = vmatpush1.bf16.msra.mxu0 %v7799_v32  ;;  %2046 = vmatprep.subr.bf16.mxu1 %v7804_v33  ;;  %v7886_v32 = vld [vmem:[#allocation2 + $0x19e8] ss:$72 sps:$4 sm:$0xff]  }
  0xe5   :  { %2128 = vmatprep.subr.bf16.mxu0 %v7807_v34  ;;  %v7889_v33 = vld [vmem:[#allocation2 + $0x10f0] ss:$72 sps:$4 sm:$0xff]   ;;  %v7894_v34 = vld [vmem:[#allocation2 + $0x1a7c] ss:$72 sps:$4 sm:$0xff]  }
  0xe6   :  { %2038 = vmatmul.mubr.bf16.vlgmr.msra.gmra.mrb[4].mxu1 %v8938_v18 }
  0xe7   :  { %2120 = vmatmul.mubr.bf16.vlgmr.msra.gmra.mrb[4].mxu0 %v8936_v16  ;;  %2047 = vmatpush1.bf16.msra.mxu1 %v7802_v35  ;;  %v7825_v16 = vld [vmem:[#allocation2 + $0xac4] ss:$72 sps:$4 sm:$0xff]  }
  0xe8   :  { %2129 = vmatpush1.bf16.msra.mxu0 %v7805_v36  ;;  %2048 = vmatprep.subr.bf16.mxu1 %v7810_v37  ;;  %v7897_v35 = vld [vmem:[#allocation2 + $0x1184] ss:$72 sps:$4 sm:$0xff]   ;;  %v7892_v36 = vld [vmem:[#allocation2 + $0x1a78] ss:$72 sps:$4 sm:$0xff]  }
  0xe9   :  { %2130 = vmatprep.subr.bf16.mxu0 %v7813_v38  ;;  %2078 = vmatprep.mubr.bf16.mxu1 %v8950_v50  ;;  %v7895_v37 = vld [vmem:[#allocation2 + $0x1180] ss:$72 sps:$4 sm:$0xff]   ;;  %v7900_v38 = vld [vmem:[#allocation2 + $0x1214] ss:$72 sps:$4 sm:$0xff]  }
  0xea   :  { %2160 = vmatprep.mubr.bf16.mxu0 %v8932_v3  ;;  %v7829_v3 = vld [vmem:[#allocation2 + $0xb50] ss:$72 sps:$4 sm:$0xff]  }
  0xeb   :  { %2049 = vmatpush1.bf16.msra.mxu1 %v7808_v39  ;;  %v7930_v39 = vld [vmem:[#allocation2 + $0x1c] ss:$72 sps:$4 sm:$0xff]  }
  0xec   :  { %2131 = vmatpush1.bf16.msra.mxu0 %v7811_v40  ;;  %2050 = vmatprep.subr.bf16.mxu1 %v7816_v41  ;;  %v7898_v40 = vld [vmem:[#allocation2 + $0x1210] ss:$72 sps:$4 sm:$0xff]  }
  0xed   :  { %2132 = vmatprep.subr.bf16.mxu0 %v7819_v42  ;;  %v7928_v41 = vld [vmem:[#allocation2 + $0x18] ss:$72 sps:$4 sm:$0xff]   ;;  %v7903_v42 = vld [vmem:[#allocation2 + $0x12a4] ss:$72 sps:$4 sm:$0xff]  }
  0xef   :  { %2051 = vmatpush1.bf16.msra.mxu1 %v7814_v44  ;;  %v7936_v44 = vld [vmem:[#allocation2 + $0xac] ss:$72 sps:$4 sm:$0xff]  }
  0xf0   :  { %2133 = vmatpush1.bf16.msra.mxu0 %v7817_v45  ;;  %2052 = vmatprep.subr.bf16.mxu1 %v7822_v62  ;;  %v7901_v45 = vld [vmem:[#allocation2 + $0x12a0] ss:$72 sps:$4 sm:$0xff]  }
  0xf1   :  { %2134 = vmatprep.subr.bf16.mxu0 %v7825_v16  ;;  %v7934_v62 = vld [vmem:[#allocation2 + $0xa8] ss:$72 sps:$4 sm:$0xff]   ;;  %v7906_v16 = vld [vmem:[#allocation2 + $0x1334] ss:$72 sps:$4 sm:$0xff]  }
  0xf3   :  { %2053 = vmatpush1.bf16.msra.mxu1 %v7820_v46  ;;  %v7942_v46 = vld [vmem:[#allocation2 + $0x13c] ss:$72 sps:$4 sm:$0xff]  }
  0xf4   :  { %2135 = vmatpush1.bf16.msra.mxu0 %v7823_v47  ;;  %2054 = vmatprep.subr.bf16.mxu1 %v7828_v48  ;;  %v7904_v47 = vld [vmem:[#allocation2 + $0x1330] ss:$72 sps:$4 sm:$0xff]   ;;  %v7909_v48 = vld [vmem:[#allocation2 + $0x13c4] ss:$72 sps:$4 sm:$0xff]  }
  0xf5   :  { %2136 = vmatprep.subr.bf16.mxu0 %v7831_v51  ;;  %v7940_v51 = vld [vmem:[#allocation2 + $0x138] ss:$72 sps:$4 sm:$0xff]  }
  0xf7   :  { %2055 = vmatpush1.bf16.msra.mxu1 %v7826_v52  ;;  %v7948_v52 = vld [vmem:[#allocation2 + $0x1cc] ss:$72 sps:$4 sm:$0xff]  }
  0xf8   :  { %2137 = vmatpush1.bf16.msra.mxu0 %v7829_v3  ;;  %2056 = vmatprep.subr.bf16.mxu1 %v7834_v53  ;;  %v7912_v3 = vld [vmem:[#allocation2 + $0x1454] ss:$72 sps:$4 sm:$0xff]   ;;  %v7946_v53 = vld [vmem:[#allocation2 + $0x1c8] ss:$72 sps:$4 sm:$0xff]  }
  0xf9   :  { %2138 = vmatprep.subr.bf16.mxu0 %v7837_v54  ;;  %v7954_v54 = vld [vmem:[#allocation2 + $0x25c] ss:$72 sps:$4 sm:$0xff]  }
  0xfb   :  { %2057 = vmatpush1.bf16.msra.mxu1 %v7832_v55  ;;  %v7910_v55 = vld [vmem:[#allocation2 + $0x1450] ss:$72 sps:$4 sm:$0xff]  }
  0xfc   :  { %2139 = vmatpush1.bf16.msra.mxu0 %v7835_v56  ;;  %2058 = vmatprep.subr.bf16.mxu1 %v7840_v57  ;;  %v7915_v56 = vld [vmem:[#allocation2 + $0x14e4] ss:$72 sps:$4 sm:$0xff]  }
  0xfd   :  { %2140 = vmatprep.subr.bf16.mxu0 %v7843_v58  ;;  %v7960_v57 = vld [vmem:[#allocation2 + $0x2ec] ss:$72 sps:$4 sm:$0xff]   ;;  %v7913_v58 = vld [vmem:[#allocation2 + $0x14e0] ss:$72 sps:$4 sm:$0xff]  }
  0xff   :  { %2059 = vmatpush1.bf16.msra.mxu1 %v7838_v59  ;;  %v7918_v59 = vld [vmem:[#allocation2 + $0x1574] ss:$72 sps:$4 sm:$0xff]  }
 0x100   :  { %2141 = vmatpush1.bf16.msra.mxu0 %v7841_v60  ;;  %2060 = vmatprep.subr.bf16.mxu1 %v7846_v61  ;;  %v7958_v60 = vld [vmem:[#allocation2 + $0x2e8] ss:$72 sps:$4 sm:$0xff]   ;;  %v7966_v61 = vld [vmem:[#allocation2 + $0x37c] ss:$72 sps:$4 sm:$0xff]  }
 0x101   :  { %2142 = vmatprep.subr.bf16.mxu0 %v7849_v63 }
 0x103   :  { %2061 = vmatpush1.bf16.msra.mxu1 %v7844_v0 }
 0x104   :  { %2143 = vmatpush1.bf16.msra.mxu0 %v7847_v1  ;;  %2062 = vmatprep.subr.bf16.mxu1 %v7852_v2  ;;  %v7916_v2 = vld [vmem:[#allocation2 + $0x1570] ss:$72 sps:$4 sm:$0xff]  }
 0x105   :  { %2144 = vmatprep.subr.bf16.mxu0 %v7855_v4  ;;  %v7964_v4 = vld [vmem:[#allocation2 + $0x378] ss:$72 sps:$4 sm:$0xff]  }
 0x107   :  { %2063 = vmatpush1.bf16.msra.mxu1 %v7850_v5 }
 0x108   :  { %2145 = vmatpush1.bf16.msra.mxu0 %v7853_v6  ;;  %2064 = vmatprep.subr.bf16.mxu1 %v7858_v7  ;;  %v7921_v6 = vld [vmem:[#allocation2 + $0x1604] ss:$72 sps:$4 sm:$0xff]  }
 0x109   :  { %2146 = vmatprep.subr.bf16.mxu0 %v7861_v8  ;;  %v7972_v7 = vld [vmem:[#allocation2 + $0x40c] ss:$72 sps:$4 sm:$0xff]   ;;  %v7919_v8 = vld [vmem:[#allocation2 + $0x1600] ss:$72 sps:$4 sm:$0xff]  }
 0x10b   :  { %2065 = vmatpush1.bf16.msra.mxu1 %v7856_v9  ;;  %v7924_v9 = vld [vmem:[#allocation2 + $0x1694] ss:$72 sps:$4 sm:$0xff]  }
 0x10c   :  { %2147 = vmatpush1.bf16.msra.mxu0 %v7859_v10  ;;  %2066 = vmatprep.subr.bf16.mxu1 %v7864_v11  ;;  %v7970_v10 = vld [vmem:[#allocation2 + $0x408] ss:$72 sps:$4 sm:$0xff]   ;;  %v7978_v11 = vld [vmem:[#allocation2 + $0x49c] ss:$72 sps:$4 sm:$0xff]  }
 0x10d   :  { %2148 = vmatprep.subr.bf16.mxu0 %v7867_v12  ;;  %v7922_v12 = vld [vmem:[#allocation2 + $0x1690] ss:$72 sps:$4 sm:$0xff]  }
 0x10f   :  { %2067 = vmatpush1.bf16.msra.mxu1 %v7862_v13  ;;  %v7927_v13 = vld [vmem:[#allocation2 + $0x1724] ss:$72 sps:$4 sm:$0xff]  }
 0x110   :  { %2149 = vmatpush1.bf16.msra.mxu0 %v7865_v14  ;;  %2068 = vmatprep.subr.bf16.mxu1 %v7870_v15  ;;  %v7976_v14 = vld [vmem:[#allocation2 + $0x498] ss:$72 sps:$4 sm:$0xff]   ;;  %v7984_v15 = vld [vmem:[#allocation2 + $0x52c] ss:$72 sps:$4 sm:$0xff]  }
 0x111   :  { %2150 = vmatprep.subr.bf16.mxu0 %v7873_v17  ;;  %v7925_v17 = vld [vmem:[#allocation2 + $0x1720] ss:$72 sps:$4 sm:$0xff]  }
 0x113   :  { %2069 = vmatpush1.bf16.msra.mxu1 %v7868_v19  ;;  %v7933_v19 = vld [vmem:[#allocation2 + $0x17b4] ss:$72 sps:$4 sm:$0xff]  }
 0x114   :  { %2151 = vmatpush1.bf16.msra.mxu0 %v7871_v20  ;;  %2070 = vmatprep.subr.bf16.mxu1 %v7876_v21  ;;  %v7982_v20 = vld [vmem:[#allocation2 + $0x528] ss:$72 sps:$4 sm:$0xff]   ;;  %v7990_v21 = vld [vmem:[#allocation2 + $0x5bc] ss:$72 sps:$4 sm:$0xff]  }
 0x115   :  { %2152 = vmatprep.subr.bf16.mxu0 %v7879_v22  ;;  %v7931_v22 = vld [vmem:[#allocation2 + $0x17b0] ss:$72 sps:$4 sm:$0xff]  }
 0x117   :  { %2071 = vmatpush1.bf16.msra.mxu1 %v7874_v23  ;;  %v7939_v23 = vld [vmem:[#allocation2 + $0x1844] ss:$72 sps:$4 sm:$0xff]  }
 0x118   :  { %2153 = vmatpush1.bf16.msra.mxu0 %v7877_v24  ;;  %2072 = vmatprep.subr.bf16.mxu1 %v7882_v25  ;;  %v7988_v24 = vld [vmem:[#allocation2 + $0x5b8] ss:$72 sps:$4 sm:$0xff]   ;;  %v7996_v25 = vld [vmem:[#allocation2 + $0x64c] ss:$72 sps:$4 sm:$0xff]  }
 0x119   :  { %2154 = vmatprep.subr.bf16.mxu0 %v7885_v26  ;;  %v7937_v26 = vld [vmem:[#allocation2 + $0x1840] ss:$72 sps:$4 sm:$0xff]  }
 0x11b   :  { %2073 = vmatpush1.bf16.msra.mxu1 %v7880_v28  ;;  %v7945_v28 = vld [vmem:[#allocation2 + $0x18d4] ss:$72 sps:$4 sm:$0xff]  }
 0x11c   :  { %2155 = vmatpush1.bf16.msra.mxu0 %v7883_v29  ;;  %2074 = vmatprep.subr.bf16.mxu1 %v7888_v30  ;;  %v7994_v29 = vld [vmem:[#allocation2 + $0x648] ss:$72 sps:$4 sm:$0xff]   ;;  %v8002_v30 = vld [vmem:[#allocation2 + $0x6dc] ss:$72 sps:$4 sm:$0xff]  }
 0x11d   :  { %2156 = vmatprep.subr.bf16.mxu0 %v7891_v31  ;;  %v7943_v31 = vld [vmem:[#allocation2 + $0x18d0] ss:$72 sps:$4 sm:$0xff]  }
 0x11f   :  { %2075 = vmatpush1.bf16.msra.mxu1 %v7886_v32  ;;  %v8000_v32 = vld [vmem:[#allocation2 + $0x6d8] ss:$72 sps:$4 sm:$0xff]  }
 0x120   :  { %2157 = vmatpush1.bf16.msra.mxu0 %v7889_v33  ;;  %2076 = vmatprep.subr.bf16.mxu1 %v7894_v34  ;;  %v7951_v33 = vld [vmem:[#allocation2 + $0x1964] ss:$72 sps:$4 sm:$0xff]  }
 0x121   :  { %2158 = vmatprep.subr.bf16.mxu0 %v7897_v35  ;;  %v8008_v34 = vld [vmem:[#allocation2 + $0x76c] ss:$72 sps:$4 sm:$0xff]   ;;  %v7949_v35 = vld [vmem:[#allocation2 + $0x1960] ss:$72 sps:$4 sm:$0xff]  }
 0x123   :  { %2077 = vmatpush1.bf16.msra.mxu1 %v7892_v36  ;;  %v8006_v36 = vld [vmem:[#allocation2 + $0x768] ss:$72 sps:$4 sm:$0xff]  }
 0x124   :  { %2159 = vmatpush1.bf16.msra.mxu0 %v7895_v37  ;;  %5742 = vmatprep.subr.bf16.mxu1 %v7930_v39  ;;  %v7957_v37 = vld [vmem:[#allocation2 + $0x19f4] ss:$72 sps:$4 sm:$0xff]   ;;  %v7955_v39 = vld [vmem:[#allocation2 + $0x19f0] ss:$72 sps:$4 sm:$0xff]  }
 0x125   :  { %2169 = vmatprep.subr.bf16.mxu0 %v7900_v38  ;;  %v8014_v38 = vld [vmem:[#allocation2 + $0x7fc] ss:$72 sps:$4 sm:$0xff]  }
 0x126   :  { %2079 = vmatmul.mubr.bf16.vlgmr.msra.gmra.mrb[4].mxu1 %v8955_v27 }
 0x127   :  { %2161 = vmatmul.mubr.bf16.vlgmr.msra.gmra.mrb[4].mxu0 %v8938_v18  ;;  %5743 = vmatpush1.bf16.msra.mxu1 %v7928_v41  ;;  %v7907_v18 = vld [vmem:[#allocation2 + $0x13c0] ss:$72 sps:$4 sm:$0xff]   ;;  %v7963_v41 = vld [vmem:[#allocation2 + $0x1a84] ss:$72 sps:$4 sm:$0xff]  }
 0x128   :  { %2170 = vmatpush1.bf16.msra.mxu0 %v7898_v40  ;;  %5744 = vmatprep.subr.bf16.mxu1 %v7936_v44  ;;  %v8012_v40 = vld [vmem:[#allocation2 + $0x7f8] ss:$72 sps:$4 sm:$0xff]  }
 0x129   :  { %2171 = vmatprep.subr.bf16.mxu0 %v7903_v42  ;;  %2201 = vmatprep.mubr.bf16.mxu0 %v8950_v50  ;;  %v7952_v50 = vld [vmem:[#allocation2 + $0x258] ss:$72 sps:$4 sm:$0xff]   ;;  %v8020_v42 = vld [vmem:[#allocation2 + $0x88c] ss:$72 sps:$4 sm:$0xff]  }
 0x12a   :  { %v7961_v44 = vld [vmem:[#allocation2 + $0x1a80] ss:$72 sps:$4 sm:$0xff]  }
 0x12b   :  { %5745 = vmatpush1.bf16.msra.mxu1 %v7934_v62  ;;  %v7969_v62 = vld [vmem:[#allocation2 + $0x24] ss:$72 sps:$4 sm:$0xff]  }
 0x12c   :  { %2172 = vmatpush1.bf16.msra.mxu0 %v7901_v45  ;;  %5746 = vmatprep.subr.bf16.mxu1 %v7942_v46  ;;  %v8018_v45 = vld [vmem:[#allocation2 + $0x888] ss:$72 sps:$4 sm:$0xff]  }
 0x12d   :  { %2173 = vmatprep.subr.bf16.mxu0 %v7906_v16  ;;  %v8044_v16 = vld [vmem:[#allocation2 + $0x91c] ss:$72 sps:$4 sm:$0xff]   ;;  %v7967_v46 = vld [vmem:[#allocation2 + $0x20] ss:$72 sps:$4 sm:$0xff]  }
 0x12f   :  { %5747 = vmatpush1.bf16.msra.mxu1 %v7940_v51  ;;  %v7981_v51 = vld [vmem:[#allocation2 + $0x144] ss:$72 sps:$4 sm:$0xff]  }
 0x130   :  { %2174 = vmatpush1.bf16.msra.mxu0 %v7904_v47  ;;  %5748 = vmatprep.subr.bf16.mxu1 %v7948_v52  ;;  %v7975_v47 = vld [vmem:[#allocation2 + $0xb4] ss:$72 sps:$4 sm:$0xff]   ;;  %v7979_v52 = vld [vmem:[#allocation2 + $0x140] ss:$72 sps:$4 sm:$0xff]  }
 0x131   :  { %2175 = vmatprep.subr.bf16.mxu0 %v7909_v48  ;;  %v7973_v48 = vld [vmem:[#allocation2 + $0xb0] ss:$72 sps:$4 sm:$0xff]  }
 0x133   :  { %5749 = vmatpush1.bf16.msra.mxu1 %v7946_v53  ;;  %v7993_v53 = vld [vmem:[#allocation2 + $0x264] ss:$72 sps:$4 sm:$0xff]  }
 0x134   :  { %2176 = vmatpush1.bf16.msra.mxu0 %v7907_v18  ;;  %5750 = vmatprep.subr.bf16.mxu1 %v7954_v54  ;;  %v7987_v18 = vld [vmem:[#allocation2 + $0x1d4] ss:$72 sps:$4 sm:$0xff]   ;;  %v8973_v54 = vld [vmem:[#allocation4] sm:$0x3f] }
 0x135   :  { %2177 = vmatprep.subr.bf16.mxu0 %v7912_v3  ;;  %v7985_v3 = vld [vmem:[#allocation2 + $0x1d0] ss:$72 sps:$4 sm:$0xff]  }
 0x137   :  { %5751 = vmatpush1.bf16.msra.mxu1 %v7952_v50  ;;  %v7999_v50 = vld [vmem:[#allocation2 + $0x2f4] ss:$72 sps:$4 sm:$0xff]  }
 0x138   :  { %2178 = vmatpush1.bf16.msra.mxu0 %v7910_v55  ;;  %5752 = vmatprep.subr.bf16.mxu1 %v7960_v57  ;;  %v8976_v55 = vsub.s32 0, %v8920_v43 }
 0x139   :  { %2179 = vmatprep.subr.bf16.mxu0 %v7915_v56  ;;  %v8968_v63 = vpop.f32.mrb[0].mxu1  ;;  %v8979_v56 = vsub.s32 1, %v8920_v43 }
 0x13a   :  { %v8970_v0 = vpop.f32.mrb[1].mxu1  ;;  %v374_v57 = vrot.slane %v8973_v54, %v8976_v55 }
 0x13b   :  { %v1879_v1 = vpop.f32.mrb[2].mxu1  ;;  %5753 = vmatpush1.bf16.msra.mxu1 %v7958_v60 }
 0x13c   :  { %2180 = vmatpush1.bf16.msra.mxu0 %v7913_v58  ;;  %v1880_v5 = vpop.f32.mrb[3].mxu1  ;;  %5754 = vmatprep.subr.bf16.mxu1 %v7966_v61  ;;  %v378_v58 = vrot.slane %v8973_v54, %v8979_v56  ;;  %v1876_v60 = vadd.f32 %v8968_v63, %v374_v57  ;;  %v8005_v61 = vld [vmem:[#allocation2 + $0x384] ss:$72 sps:$4 sm:$0xff]   ;;  %v8065_v57 = vld [vmem:[#allocation2 + $0xad4] ss:$72 sps:$4 sm:$0xff]  }
 0x13d   :  { %2181 = vmatprep.subr.bf16.mxu0 %v7918_v59  ;;  %v7997_v59 = vld [vmem:[#allocation2 + $0x2f0] ss:$72 sps:$4 sm:$0xff]   ;;  %v8017_v63 = vld [vmem:[#allocation2 + $0x4a4] ss:$72 sps:$4 sm:$0xff]  }
 0x13e   :  { %v1878_v1 = vadd.f32 %v8970_v0, %v378_v58  ;;  %v8023_v0 = vld [vmem:[#allocation2 + $0x534] ss:$72 sps:$4 sm:$0xff]   ;;  %v8096_v58 = vld [vmem:[#allocation2 + $0xe28] ss:$72 sps:$4 sm:$0xff]  }
 0x13f   :  { %5755 = vmatpush1.bf16.msra.mxu1 %v7964_v4  ;;  %v8003_v4 = vld [vmem:[#allocation2 + $0x380] ss:$72 sps:$4 sm:$0xff]  }
 0x140   :  { %2182 = vmatpush1.bf16.msra.mxu0 %v7916_v2  ;;  %5756 = vmatprep.subr.bf16.mxu1 %v7972_v7 }
 0x141   :  { %2183 = vmatprep.subr.bf16.mxu0 %v7921_v6 }
 0x143   :  { %5757 = vmatpush1.bf16.msra.mxu1 %v7970_v10  ;;  %v8011_v10 = vld [vmem:[#allocation2 + $0x414] ss:$72 sps:$4 sm:$0xff]  }
 0x144   :  { %2184 = vmatpush1.bf16.msra.mxu0 %v7919_v8  ;;  %5758 = vmatprep.subr.bf16.mxu1 %v7978_v11  ;;  %v8009_v11 = vld [vmem:[#allocation2 + $0x410] ss:$72 sps:$4 sm:$0xff]  }
 0x145   :  { %2185 = vmatprep.subr.bf16.mxu0 %v7924_v9 }
 0x147   :  { %5759 = vmatpush1.bf16.msra.mxu1 %v7976_v14 }
 0x148   :  { %2186 = vmatpush1.bf16.msra.mxu0 %v7922_v12  ;;  %5760 = vmatprep.subr.bf16.mxu1 %v7984_v15  ;;  %v8015_v12 = vld [vmem:[#allocation2 + $0x4a0] ss:$72 sps:$4 sm:$0xff]  }
 0x149   :  { %2187 = vmatprep.subr.bf16.mxu0 %v7927_v13  ;;  %v8021_v13 = vld [vmem:[#allocation2 + $0x530] ss:$72 sps:$4 sm:$0xff]  }
 0x14b   :  { %5761 = vmatpush1.bf16.msra.mxu1 %v7982_v20  ;;  %v8042_v20 = vld [vmem:[#allocation2 + $0x918] ss:$72 sps:$4 sm:$0xff]  }
 0x14c   :  { %2188 = vmatpush1.bf16.msra.mxu0 %v7925_v17  ;;  %5762 = vmatprep.subr.bf16.mxu1 %v7990_v21 }
 0x14d   :  { %2189 = vmatprep.subr.bf16.mxu0 %v7933_v19  ;;  %v8026_v19 = vld [vmem:[#allocation2 + $0x5c4] ss:$72 sps:$4 sm:$0xff]  }
 0x14f   :  { %5763 = vmatpush1.bf16.msra.mxu1 %v7988_v24  ;;  %v8029_v24 = vld [vmem:[#allocation2 + $0x654] ss:$72 sps:$4 sm:$0xff]  }
 0x150   :  { %2190 = vmatpush1.bf16.msra.mxu0 %v7931_v22  ;;  %5764 = vmatprep.subr.bf16.mxu1 %v7996_v25  ;;  %v8024_v22 = vld [vmem:[#allocation2 + $0x5c0] ss:$72 sps:$4 sm:$0xff]  }
 0x151   :  { %2191 = vmatprep.subr.bf16.mxu0 %v7939_v23  ;;  %v8050_v23 = vld [vmem:[#allocation2 + $0x9ac] ss:$72 sps:$4 sm:$0xff]   ;;  %v8048_v25 = vld [vmem:[#allocation2 + $0x9a8] ss:$72 sps:$4 sm:$0xff]  }
 0x153   :  { %5765 = vmatpush1.bf16.msra.mxu1 %v7994_v29  ;;  %v8032_v29 = vld [vmem:[#allocation2 + $0x6e4] ss:$72 sps:$4 sm:$0xff]  }
 0x154   :  { %2192 = vmatpush1.bf16.msra.mxu0 %v7937_v26  ;;  %5766 = vmatprep.subr.bf16.mxu1 %v8002_v30  ;;  %v8027_v26 = vld [vmem:[#allocation2 + $0x650] ss:$72 sps:$4 sm:$0xff]  }
 0x155   :  { %2193 = vmatprep.subr.bf16.mxu0 %v7945_v28  ;;  %v8056_v28 = vld [vmem:[#allocation2 + $0xa3c] ss:$72 sps:$4 sm:$0xff]   ;;  %v8054_v30 = vld [vmem:[#allocation2 + $0xa38] ss:$72 sps:$4 sm:$0xff]  }
 0x157   :  { %5767 = vmatpush1.bf16.msra.mxu1 %v8000_v32  ;;  %v8062_v32 = vld [vmem:[#allocation2 + $0xacc] ss:$72 sps:$4 sm:$0xff]  }
 0x158   :  { %2194 = vmatpush1.bf16.msra.mxu0 %v7943_v31  ;;  %5768 = vmatprep.subr.bf16.mxu1 %v8008_v34  ;;  %v8030_v31 = vld [vmem:[#allocation2 + $0x6e0] ss:$72 sps:$4 sm:$0xff]  }
 0x159   :  { %2195 = vmatprep.subr.bf16.mxu0 %v7951_v33  ;;  %v8035_v33 = vld [vmem:[#allocation2 + $0x774] ss:$72 sps:$4 sm:$0xff]   ;;  %v8060_v34 = vld [vmem:[#allocation2 + $0xac8] ss:$72 sps:$4 sm:$0xff]  }
 0x15b   :  { %5769 = vmatpush1.bf16.msra.mxu1 %v8006_v36  ;;  %v8068_v36 = vld [vmem:[#allocation2 + $0xb5c] ss:$72 sps:$4 sm:$0xff]  }
 0x15c   :  { %2196 = vmatpush1.bf16.msra.mxu0 %v7949_v35  ;;  %5770 = vmatprep.subr.bf16.mxu1 %v8014_v38  ;;  %v8033_v35 = vld [vmem:[#allocation2 + $0x770] ss:$72 sps:$4 sm:$0xff]  }
 0x15d   :  { %2197 = vmatprep.subr.bf16.mxu0 %v7957_v37  ;;  %v8038_v37 = vld [vmem:[#allocation2 + $0x804] ss:$72 sps:$4 sm:$0xff]   ;;  %v8066_v38 = vld [vmem:[#allocation2 + $0xb58] ss:$72 sps:$4 sm:$0xff]  }
 0x15f   :  { %5771 = vmatpush1.bf16.msra.mxu1 %v8012_v40  ;;  %v8074_v40 = vld [vmem:[#allocation2 + $0xbec] ss:$72 sps:$4 sm:$0xff]  }
 0x160   :  { %2198 = vmatpush1.bf16.msra.mxu0 %v7955_v39  ;;  %5772 = vmatprep.subr.bf16.mxu1 %v8020_v42  ;;  %v8036_v39 = vld [vmem:[#allocation2 + $0x800] ss:$72 sps:$4 sm:$0xff]  }
 0x161   :  { %2199 = vmatprep.subr.bf16.mxu0 %v7963_v41  ;;  %v8041_v41 = vld [vmem:[#allocation2 + $0x894] ss:$72 sps:$4 sm:$0xff]   ;;  %v8072_v42 = vld [vmem:[#allocation2 + $0xbe8] ss:$72 sps:$4 sm:$0xff]  }
 0x163   :  { %5773 = vmatpush1.bf16.msra.mxu1 %v8018_v45  ;;  %v8080_v45 = vld [vmem:[#allocation2 + $0xc7c] ss:$72 sps:$4 sm:$0xff]  }
 0x164   :  { %2200 = vmatpush1.bf16.msra.mxu0 %v7961_v44  ;;  %5783 = vmatprep.subr.bf16.mxu1 %v8044_v16  ;;  %v8039_v44 = vld [vmem:[#allocation2 + $0x890] ss:$72 sps:$4 sm:$0xff]  }
 0x165   :  { %5865 = vmatprep.subr.bf16.mxu0 %v7969_v62  ;;  %v8047_v62 = vld [vmem:[#allocation2 + $0x924] ss:$72 sps:$4 sm:$0xff]   ;;  %v8078_v16 = vld [vmem:[#allocation2 + $0xc78] ss:$72 sps:$4 sm:$0xff]  }
 0x167   :  { %2202 = vmatmul.mubr.bf16.vlgmr.msra.gmra.mrb[4].mxu0 %v8955_v27  ;;  %v7991_v27 = vld [vmem:[#allocation2 + $0x260] ss:$72 sps:$4 sm:$0xff]  }
 0x168   :  { %5866 = vmatpush1.bf16.msra.mxu0 %v7967_v46  ;;  %v8045_v46 = vld [vmem:[#allocation2 + $0x920] ss:$72 sps:$4 sm:$0xff]  }
 0x169   :  { %5867 = vmatprep.subr.bf16.mxu0 %v7975_v47  ;;  %v8086_v47 = vld [vmem:[#allocation2 + $0xd0c] ss:$72 sps:$4 sm:$0xff]  }
 0x16c   :  { %5868 = vmatpush1.bf16.msra.mxu0 %v7973_v48  ;;  %v8053_v48 = vld [vmem:[#allocation2 + $0x9b4] ss:$72 sps:$4 sm:$0xff]  }
 0x16d   :  { %5869 = vmatprep.subr.bf16.mxu0 %v7981_v51  ;;  %v8084_v51 = vld [vmem:[#allocation2 + $0xd08] ss:$72 sps:$4 sm:$0xff]  }
 0x170   :  { %5870 = vmatpush1.bf16.msra.mxu0 %v7979_v52  ;;  %v8051_v52 = vld [vmem:[#allocation2 + $0x9b0] ss:$72 sps:$4 sm:$0xff]  }
 0x171   :  { %5871 = vmatprep.subr.bf16.mxu0 %v7987_v18  ;;  %v8092_v18 = vld [vmem:[#allocation2 + $0xd9c] ss:$72 sps:$4 sm:$0xff]  }
 0x174   :  { %5872 = vmatpush1.bf16.msra.mxu0 %v7985_v3  ;;  %v8059_v3 = vld [vmem:[#allocation2 + $0xa44] ss:$72 sps:$4 sm:$0xff]  }
 0x175   :  { %5873 = vmatprep.subr.bf16.mxu0 %v7993_v53  ;;  %v8090_v53 = vld [vmem:[#allocation2 + $0xd98] ss:$72 sps:$4 sm:$0xff]  }
 0x178   :  { %5874 = vmatpush1.bf16.msra.mxu0 %v7991_v27  ;;  %v8057_v27 = vld [vmem:[#allocation2 + $0xa40] ss:$72 sps:$4 sm:$0xff]  }
 0x179   :  { %5875 = vmatprep.subr.bf16.mxu0 %v7999_v50  ;;  %v8098_v50 = vld [vmem:[#allocation2 + $0xe2c] ss:$72 sps:$4 sm:$0xff]  }
 0x17a   :  { %v1957_v2 = vpop.f32.mrb[0].mxu0 }
 0x17b   :  { %v7421_v5 = vadd.f32 %v1957_v2, %v1876_v60  ;;  %v1959_v6 = vpop.f32.mrb[1].mxu0  ;;  %v8104_v60 = vld [vmem:[#allocation2 + $0xebc] ss:$72 sps:$4 sm:$0xff]   ;;  %v8069_v2 = vld [vmem:[#allocation2 + $0xb60] ss:$72 sps:$4 sm:$0xff]  }
 0x17c   :  { %v7423_v7 = vadd.f32 %v1959_v6, %v1878_v1  ;;  %v1961_v8 = vpop.f32.mrb[2].mxu0  ;;  %5876 = vmatpush1.bf16.msra.mxu0 %v7997_v59  ;;  %v8063_v59 = vld [vmem:[#allocation2 + $0xad0] ss:$72 sps:$4 sm:$0xff]  }
 0x17d   :  { %8810 = vtanh.f32 %v7421_v5  ;;  %v1962_v9 = vpop.f32.mrb[3].mxu0  ;;  %5877 = vmatprep.subr.bf16.mxu0 %v8005_v61  ;;  %v8071_v61 = vld [vmem:[#allocation2 + $0xb64] ss:$72 sps:$4 sm:$0xff]   ;;  %v8102_v1 = vld [vmem:[#allocation2 + $0xeb8] ss:$72 sps:$4 sm:$0xff]  }
 0x17e   :  { %8812 = vtanh.f32 %v7423_v7  ;;  %v8077_v5 = vld [vmem:[#allocation2 + $0xbf4] ss:$72 sps:$4 sm:$0xff]   ;;  %v8108_v6 = vld [vmem:[#allocation2 + $0xf48] ss:$72 sps:$4 sm:$0xff]   ;;  %v8083_v9 = vld [vmem:[#allocation2 + $0xc84] ss:$72 sps:$4 sm:$0xff]  }
 0x17f   :  { %v8075_v7 = vld [vmem:[#allocation2 + $0xbf0] ss:$72 sps:$4 sm:$0xff]   ;;  %v8116_v8 = vld [vmem:[#allocation2 + $0xfdc] ss:$72 sps:$4 sm:$0xff]  }
 0x180   :  { %5878 = vmatpush1.bf16.msra.mxu0 %v8003_v4  ;;  %v8110_v4 = vld [vmem:[#allocation2 + $0xf4c] ss:$72 sps:$4 sm:$0xff]  }
 0x181   :  { %5879 = vmatprep.subr.bf16.mxu0 %v8011_v10  ;;  %v8114_v10 = vld [vmem:[#allocation2 + $0xfd8] ss:$72 sps:$4 sm:$0xff]  }
 0x184   :  { %5880 = vmatpush1.bf16.msra.mxu0 %v8009_v11  ;;  %v8081_v11 = vld [vmem:[#allocation2 + $0xc80] ss:$72 sps:$4 sm:$0xff]  }
 0x185   :  { %5881 = vmatprep.subr.bf16.mxu0 %v8017_v63  ;;  %v8122_v63 = vld [vmem:[#allocation2 + $0x106c] ss:$72 sps:$4 sm:$0xff]  }
 0x187   :  { %v8811_v14 = vpop.eup %8810 }
 0x188   :  { %v8813_v15 = vpop.eup %8812  ;;  %5882 = vmatpush1.bf16.msra.mxu0 %v8015_v12  ;;  %v8989_v21 = vpack.c.bf16 %v8811_v14, %v8811_v14  ;;  %v8089_v12 = vld [vmem:[#allocation2 + $0xd14] ss:$72 sps:$4 sm:$0xff]  }
 0x189   :  { %v8987_v17 = vpack.c.bf16 %v8813_v15, %v8813_v15  ;;  %5883 = vmatprep.subr.bf16.mxu0 %v8023_v0  ;;  %v8120_v0 = vld [vmem:[#allocation2 + $0x1068] ss:$72 sps:$4 sm:$0xff]   ;;  %v8128_v14 = vld [vmem:[#allocation2 + $0x10fc] ss:$72 sps:$4 sm:$0xff]  }
 0x18a   :  { %v8095_v15 = vld [vmem:[#allocation2 + $0xda4] ss:$72 sps:$4 sm:$0xff]  }
 0x18b   :  { %5774 = vmatprep.mubr.bf16.mxu1 %v8987_v17  ;;  %5897 = vmatprep.mubr.bf16.mxu0 %v8987_v17 }
 0x18c   :  { %5775 = vmatmul.mubr.bf16.vlgmr.msra.gmra.mrb[8].mxu1 %v8989_v21  ;;  %5884 = vmatpush1.bf16.msra.mxu0 %v8021_v13  ;;  %v8087_v13 = vld [vmem:[#allocation2 + $0xd10] ss:$72 sps:$4 sm:$0xff]  }
 0x18d   :  { %5885 = vmatprep.subr.bf16.mxu0 %v8026_v19  ;;  %5784 = vmatpush1.bf16.msra.mxu1 %v8042_v20  ;;  %v8126_v19 = vld [vmem:[#allocation2 + $0x10f8] ss:$72 sps:$4 sm:$0xff]  }
 0x18e   :  { %5785 = vmatprep.subr.bf16.mxu1 %v8050_v23  ;;  %v8093_v20 = vld [vmem:[#allocation2 + $0xda0] ss:$72 sps:$4 sm:$0xff]   ;;  %v8101_v23 = vld [vmem:[#allocation2 + $0xe34] ss:$72 sps:$4 sm:$0xff]  }
 0x190   :  { %5886 = vmatpush1.bf16.msra.mxu0 %v8024_v22  ;;  %v8134_v22 = vld [vmem:[#allocation2 + $0x118c] ss:$72 sps:$4 sm:$0xff]  }
 0x191   :  { %5887 = vmatprep.subr.bf16.mxu0 %v8029_v24  ;;  %5786 = vmatpush1.bf16.msra.mxu1 %v8048_v25  ;;  %v8132_v24 = vld [vmem:[#allocation2 + $0x1188] ss:$72 sps:$4 sm:$0xff]   ;;  %v8140_v25 = vld [vmem:[#allocation2 + $0x121c] ss:$72 sps:$4 sm:$0xff]  }
 0x192   :  { %5787 = vmatprep.subr.bf16.mxu1 %v8056_v28  ;;  %v8107_v28 = vld [vmem:[#allocation2 + $0xec4] ss:$72 sps:$4 sm:$0xff]  }
 0x194   :  { %5888 = vmatpush1.bf16.msra.mxu0 %v8027_v26  ;;  %v8099_v26 = vld [vmem:[#allocation2 + $0xe30] ss:$72 sps:$4 sm:$0xff]  }
 0x195   :  { %5889 = vmatprep.subr.bf16.mxu0 %v8032_v29  ;;  %5788 = vmatpush1.bf16.msra.mxu1 %v8054_v30  ;;  %v8105_v29 = vld [vmem:[#allocation2 + $0xec0] ss:$72 sps:$4 sm:$0xff]   ;;  %v8113_v30 = vld [vmem:[#allocation2 + $0xf54] ss:$72 sps:$4 sm:$0xff]  }
 0x196   :  { %5789 = vmatprep.subr.bf16.mxu1 %v8062_v32  ;;  %v8119_v32 = vld [vmem:[#allocation2 + $0xfe4] ss:$72 sps:$4 sm:$0xff]  }
 0x198   :  { %5890 = vmatpush1.bf16.msra.mxu0 %v8030_v31  ;;  %v8111_v31 = vld [vmem:[#allocation2 + $0xf50] ss:$72 sps:$4 sm:$0xff]  }
 0x199   :  { %5891 = vmatprep.subr.bf16.mxu0 %v8035_v33  ;;  %5790 = vmatpush1.bf16.msra.mxu1 %v8060_v34  ;;  %v8117_v33 = vld [vmem:[#allocation2 + $0xfe0] ss:$72 sps:$4 sm:$0xff]   ;;  %v8125_v34 = vld [vmem:[#allocation2 + $0x1074] ss:$72 sps:$4 sm:$0xff]  }
 0x19a   :  { %5791 = vmatprep.subr.bf16.mxu1 %v8068_v36  ;;  %v8131_v36 = vld [vmem:[#allocation2 + $0x1104] ss:$72 sps:$4 sm:$0xff]  }
 0x19c   :  { %5892 = vmatpush1.bf16.msra.mxu0 %v8033_v35  ;;  %v8123_v35 = vld [vmem:[#allocation2 + $0x1070] ss:$72 sps:$4 sm:$0xff]  }
 0x19d   :  { %5893 = vmatprep.subr.bf16.mxu0 %v8038_v37  ;;  %5792 = vmatpush1.bf16.msra.mxu1 %v8066_v38  ;;  %v8129_v37 = vld [vmem:[#allocation2 + $0x1100] ss:$72 sps:$4 sm:$0xff]   ;;  %v8137_v38 = vld [vmem:[#allocation2 + $0x1194] ss:$72 sps:$4 sm:$0xff]  }
 0x19e   :  { %5793 = vmatprep.subr.bf16.mxu1 %v8074_v40  ;;  %v8143_v40 = vld [vmem:[#allocation2 + $0x1224] ss:$72 sps:$4 sm:$0xff]  }
 0x1a0   :  { %5894 = vmatpush1.bf16.msra.mxu0 %v8036_v39  ;;  %v8135_v39 = vld [vmem:[#allocation2 + $0x1190] ss:$72 sps:$4 sm:$0xff]  }
 0x1a1   :  { %5895 = vmatprep.subr.bf16.mxu0 %v8041_v41  ;;  %5794 = vmatpush1.bf16.msra.mxu1 %v8072_v42  ;;  %v8996_v41 = vsub.s32 2, %v8920_v43  ;;  %v8999_v42 = vsub.s32 3, %v8920_v43 }
 0x1a2   :  { %5795 = vmatprep.subr.bf16.mxu1 %v8080_v45 }
 0x1a3   :  { %v386_v45 = vrot.slane %v8973_v54, %v8999_v42 }
 0x1a4   :  { %5896 = vmatpush1.bf16.msra.mxu0 %v8039_v44  ;;  %v382_v44 = vrot.slane %v8973_v54, %v8996_v41  ;;  %v8144_v54 = vld [vmem:[#allocation2 + $0x12a8] ss:$72 sps:$4 sm:$0xff]  }
 0x1a5   :  { %5906 = vmatprep.subr.bf16.mxu0 %v8047_v62  ;;  %5796 = vmatpush1.bf16.msra.mxu1 %v8078_v16 }
 0x1a6   :  { %5797 = vmatprep.subr.bf16.mxu1 %v8086_v47 }
 0x1a7   :  { %5898 = vmatmul.mubr.bf16.vlgmr.msra.gmra.mrb[8].mxu0 %v8989_v21 }
 0x1a8   :  { %5907 = vmatpush1.bf16.msra.mxu0 %v8045_v46 }
 0x1a9   :  { %5908 = vmatprep.subr.bf16.mxu0 %v8053_v48  ;;  %5798 = vmatpush1.bf16.msra.mxu1 %v8084_v51 }
 0x1aa   :  { %5799 = vmatprep.subr.bf16.mxu1 %v8092_v18 }
 0x1ac   :  { %5909 = vmatpush1.bf16.msra.mxu0 %v8051_v52 }
 0x1ad   :  { %5910 = vmatprep.subr.bf16.mxu0 %v8059_v3  ;;  %5800 = vmatpush1.bf16.msra.mxu1 %v8090_v53  ;;  %v8138_v53 = vld [vmem:[#allocation2 + $0x1218] ss:$72 sps:$4 sm:$0xff]  }
 0x1ae   :  { %5801 = vmatprep.subr.bf16.mxu1 %v8098_v50 }
 0x1b0   :  { %5911 = vmatpush1.bf16.msra.mxu0 %v8057_v27  ;;  %v8141_v27 = vld [vmem:[#allocation2 + $0x1220] ss:$72 sps:$4 sm:$0xff]  }
 0x1b1   :  { %5912 = vmatprep.subr.bf16.mxu0 %v8065_v57  ;;  %5802 = vmatpush1.bf16.msra.mxu1 %v8096_v58  ;;  %v8146_v57 = vld [vmem:[#allocation2 + $0x12ac] ss:$72 sps:$4 sm:$0xff]  }
 0x1b2   :  { %5803 = vmatprep.subr.bf16.mxu1 %v8104_v60  ;;  %v8149_v58 = vld [vmem:[#allocation2 + $0x12b4] ss:$72 sps:$4 sm:$0xff]  }
 0x1b3   :  { %v8152_v60 = vld [vmem:[#allocation2 + $0x133c] ss:$72 sps:$4 sm:$0xff]  }
 0x1b4   :  { %5913 = vmatpush1.bf16.msra.mxu0 %v8063_v59  ;;  %v8147_v59 = vld [vmem:[#allocation2 + $0x12b0] ss:$72 sps:$4 sm:$0xff]  }
 0x1b5   :  { %5914 = vmatprep.subr.bf16.mxu0 %v8071_v61  ;;  %5804 = vmatpush1.bf16.msra.mxu1 %v8102_v1  ;;  %v8155_v61 = vld [vmem:[#allocation2 + $0x1344] ss:$72 sps:$4 sm:$0xff]   ;;  %v8150_v1 = vld [vmem:[#allocation2 + $0x1338] ss:$72 sps:$4 sm:$0xff]  }
 0x1b6   :  { %5805 = vmatprep.subr.bf16.mxu1 %v8110_v4  ;;  %v8158_v4 = vld [vmem:[#allocation2 + $0x13cc] ss:$72 sps:$4 sm:$0xff]  }
 0x1b8   :  { %5915 = vmatpush1.bf16.msra.mxu0 %v8069_v2  ;;  %v8153_v2 = vld [vmem:[#allocation2 + $0x1340] ss:$72 sps:$4 sm:$0xff]  }
 0x1b9   :  { %5916 = vmatprep.subr.bf16.mxu0 %v8077_v5  ;;  %5806 = vmatpush1.bf16.msra.mxu1 %v8108_v6  ;;  %v8161_v5 = vld [vmem:[#allocation2 + $0x13d4] ss:$72 sps:$4 sm:$0xff]   ;;  %v8156_v6 = vld [vmem:[#allocation2 + $0x13c8] ss:$72 sps:$4 sm:$0xff]  }
 0x1ba   :  { %5807 = vmatprep.subr.bf16.mxu1 %v8116_v8  ;;  %v8164_v8 = vld [vmem:[#allocation2 + $0x145c] ss:$72 sps:$4 sm:$0xff]  }
 0x1bc   :  { %5917 = vmatpush1.bf16.msra.mxu0 %v8075_v7  ;;  %v8159_v7 = vld [vmem:[#allocation2 + $0x13d0] ss:$72 sps:$4 sm:$0xff]  }
 0x1bd   :  { %5918 = vmatprep.subr.bf16.mxu0 %v8083_v9  ;;  %5808 = vmatpush1.bf16.msra.mxu1 %v8114_v10  ;;  %v8167_v9 = vld [vmem:[#allocation2 + $0x1464] ss:$72 sps:$4 sm:$0xff]   ;;  %v8162_v10 = vld [vmem:[#allocation2 + $0x1458] ss:$72 sps:$4 sm:$0xff]  }
 0x1be   :  { %5809 = vmatprep.subr.bf16.mxu1 %v8122_v63  ;;  %v8170_v63 = vld [vmem:[#allocation2 + $0x14ec] ss:$72 sps:$4 sm:$0xff]  }
 0x1c0   :  { %5919 = vmatpush1.bf16.msra.mxu0 %v8081_v11  ;;  %v8165_v11 = vld [vmem:[#allocation2 + $0x1460] ss:$72 sps:$4 sm:$0xff]  }
 0x1c1   :  { %5920 = vmatprep.subr.bf16.mxu0 %v8089_v12  ;;  %5810 = vmatpush1.bf16.msra.mxu1 %v8120_v0  ;;  %v8173_v12 = vld [vmem:[#allocation2 + $0x14f4] ss:$72 sps:$4 sm:$0xff]   ;;  %v8168_v0 = vld [vmem:[#allocation2 + $0x14e8] ss:$72 sps:$4 sm:$0xff]  }
 0x1c2   :  { %5811 = vmatprep.subr.bf16.mxu1 %v8128_v14  ;;  %v8176_v14 = vld [vmem:[#allocation2 + $0x157c] ss:$72 sps:$4 sm:$0xff]  }
 0x1c4   :  { %5921 = vmatpush1.bf16.msra.mxu0 %v8087_v13  ;;  %v8171_v13 = vld [vmem:[#allocation2 + $0x14f0] ss:$72 sps:$4 sm:$0xff]  }
 0x1c5   :  { %5922 = vmatprep.subr.bf16.mxu0 %v8095_v15  ;;  %5812 = vmatpush1.bf16.msra.mxu1 %v8126_v19  ;;  %v8179_v15 = vld [vmem:[#allocation2 + $0x1584] ss:$72 sps:$4 sm:$0xff]   ;;  %v8174_v19 = vld [vmem:[#allocation2 + $0x1578] ss:$72 sps:$4 sm:$0xff]  }
 0x1c6   :  { %5813 = vmatprep.subr.bf16.mxu1 %v8134_v22  ;;  %v8182_v22 = vld [vmem:[#allocation2 + $0x160c] ss:$72 sps:$4 sm:$0xff]  }
 0x1c8   :  { %5923 = vmatpush1.bf16.msra.mxu0 %v8093_v20  ;;  %v8177_v20 = vld [vmem:[#allocation2 + $0x1580] ss:$72 sps:$4 sm:$0xff]  }
 0x1c9   :  { %5924 = vmatprep.subr.bf16.mxu0 %v8101_v23  ;;  %5814 = vmatpush1.bf16.msra.mxu1 %v8132_v24  ;;  %v8185_v23 = vld [vmem:[#allocation2 + $0x1614] ss:$72 sps:$4 sm:$0xff]   ;;  %v8180_v24 = vld [vmem:[#allocation2 + $0x1608] ss:$72 sps:$4 sm:$0xff]  }
 0x1ca   :  { %5824 = vmatprep.subr.bf16.mxu1 %v8140_v25  ;;  %v8183_v25 = vld [vmem:[#allocation2 + $0x1610] ss:$72 sps:$4 sm:$0xff]  }
 0x1cc   :  { %5925 = vmatpush1.bf16.msra.mxu0 %v8099_v26  ;;  %v8188_v26 = vld [vmem:[#allocation2 + $0x169c] ss:$72 sps:$4 sm:$0xff]  }
 0x1cd   :  { %5926 = vmatprep.subr.bf16.mxu0 %v8107_v28  ;;  %v8191_v28 = vld [vmem:[#allocation2 + $0x16a4] ss:$72 sps:$4 sm:$0xff]  }
 0x1d0   :  { %5927 = vmatpush1.bf16.msra.mxu0 %v8105_v29  ;;  %v8186_v29 = vld [vmem:[#allocation2 + $0x1698] ss:$72 sps:$4 sm:$0xff]  }
 0x1d1   :  { %5928 = vmatprep.subr.bf16.mxu0 %v8113_v30  ;;  %v8189_v30 = vld [vmem:[#allocation2 + $0x16a0] ss:$72 sps:$4 sm:$0xff]  }
 0x1d4   :  { %5929 = vmatpush1.bf16.msra.mxu0 %v8111_v31  ;;  %v8194_v31 = vld [vmem:[#allocation2 + $0x172c] ss:$72 sps:$4 sm:$0xff]  }
 0x1d5   :  { %5930 = vmatprep.subr.bf16.mxu0 %v8119_v32  ;;  %v8197_v32 = vld [vmem:[#allocation2 + $0x1734] ss:$72 sps:$4 sm:$0xff]  }
 0x1d8   :  { %5931 = vmatpush1.bf16.msra.mxu0 %v8117_v33  ;;  %v8192_v33 = vld [vmem:[#allocation2 + $0x1728] ss:$72 sps:$4 sm:$0xff]  }
 0x1d9   :  { %5932 = vmatprep.subr.bf16.mxu0 %v8125_v34  ;;  %v8195_v34 = vld [vmem:[#allocation2 + $0x1730] ss:$72 sps:$4 sm:$0xff]  }
 0x1dc   :  { %5933 = vmatpush1.bf16.msra.mxu0 %v8123_v35  ;;  %v8200_v35 = vld [vmem:[#allocation2 + $0x17bc] ss:$72 sps:$4 sm:$0xff]  }
 0x1dd   :  { %5934 = vmatprep.subr.bf16.mxu0 %v8131_v36  ;;  %v8203_v36 = vld [vmem:[#allocation2 + $0x17c4] ss:$72 sps:$4 sm:$0xff]  }
 0x1e0   :  { %5935 = vmatpush1.bf16.msra.mxu0 %v8129_v37  ;;  %v8198_v37 = vld [vmem:[#allocation2 + $0x17b8] ss:$72 sps:$4 sm:$0xff]  }
 0x1e1   :  { %5936 = vmatprep.subr.bf16.mxu0 %v8137_v38  ;;  %v8201_v38 = vld [vmem:[#allocation2 + $0x17c0] ss:$72 sps:$4 sm:$0xff]  }
 0x1e4   :  { %5937 = vmatpush1.bf16.msra.mxu0 %v8135_v39  ;;  %v8206_v39 = vld [vmem:[#allocation2 + $0x184c] ss:$72 sps:$4 sm:$0xff]  }
 0x1e5   :  { %5947 = vmatprep.subr.bf16.mxu0 %v8143_v40  ;;  %v8209_v40 = vld [vmem:[#allocation2 + $0x1854] ss:$72 sps:$4 sm:$0xff]  }
 0x1f9   :  { %v2080_v62 = vpop.f32.mrb[4].mxu1 }
 0x1fa   :  { %v7424_v16 = vadd.f32 %v2080_v62, %v382_v44  ;;  %v2082_v46 = vpop.f32.mrb[5].mxu1  ;;  %v389_v44 = vsub.s32 4, %v8920_v43  ;;  %v8204_v62 = vld [vmem:[#allocation2 + $0x1848] ss:$72 sps:$4 sm:$0xff]  }
 0x1fb   :  { %v7425_v47 = vadd.f32 %v2082_v46, %v386_v45  ;;  %v2084_v48 = vpop.f32.mrb[6].mxu1  ;;  %v393_v45 = vsub.s32 5, %v8920_v43  ;;  %v8212_v46 = vld [vmem:[#allocation2 + $0x18dc] ss:$72 sps:$4 sm:$0xff]  }
 0x1fc   :  { %8814 = vtanh.f32 %v7424_v16  ;;  %v2085_v51 = vpop.f32.mrb[7].mxu1  ;;  %v8207_v16 = vld [vmem:[#allocation2 + $0x1850] ss:$72 sps:$4 sm:$0xff]   ;;  %v8822_v48 = vld [vmem:[#allocation4] sm:$0x3f] }
 0x1fd   :  { %8816 = vtanh.f32 %v7425_v47  ;;  %v8215_v47 = vld [vmem:[#allocation2 + $0x18e4] ss:$72 sps:$4 sm:$0xff]   ;;  %v390_v51 = vrot.slane %v8822_v48, %v389_v44 }
 0x206   :  { %v8815_v52 = vpop.eup %8814 }
 0x207   :  { %v8817_v18 = vpop.eup %8816  ;;  %v9007_v50 = vpack.c.bf16 %v8815_v52, %v8815_v52  ;;  %v394_v52 = vrot.slane %v8822_v48, %v393_v45  ;;  %v8275_v48 = vld [vmem:[#allocation2 + $0x394] ss:$72 sps:$4 sm:$0xff]  }
 0x208   :  { %v9005_v3 = vpack.c.bf16 %v8817_v18, %v8817_v18  ;;  %v8210_v18 = vld [vmem:[#allocation2 + $0x18d8] ss:$72 sps:$4 sm:$0xff]  }
 0x20a   :  { %5815 = vmatprep.mubr.bf16.mxu1 %v9005_v3  ;;  %5938 = vmatprep.mubr.bf16.mxu0 %v9005_v3 }
 0x20b   :  { %5816 = vmatmul.mubr.bf16.vlgmr.msra.gmra.mrb[8].mxu1 %v9007_v50  ;;  %5939 = vmatmul.mubr.bf16.vlgmr.msra.gmra.mrb[8].mxu0 %v9007_v50 }
 0x20c   :  { %5825 = vmatpush1.bf16.msra.mxu1 %v8138_v53  ;;  %5948 = vmatpush1.bf16.msra.mxu0 %v8141_v27  ;;  %v8213_v53 = vld [vmem:[#allocation2 + $0x18e0] ss:$72 sps:$4 sm:$0xff]  }
 0x20d   :  { %5826 = vmatprep.subr.bf16.mxu1 %v8146_v57  ;;  %5949 = vmatprep.subr.bf16.mxu0 %v8149_v58  ;;  %v8218_v57 = vld [vmem:[#allocation2 + $0x196c] ss:$72 sps:$4 sm:$0xff]  }
 0x20e   :  { %v8221_v58 = vld [vmem:[#allocation2 + $0x1974] ss:$72 sps:$4 sm:$0xff]  }
 0x210   :  { %5827 = vmatpush1.bf16.msra.mxu1 %v8144_v54  ;;  %5950 = vmatpush1.bf16.msra.mxu0 %v8147_v59 }
 0x211   :  { %5828 = vmatprep.subr.bf16.mxu1 %v8152_v60  ;;  %5951 = vmatprep.subr.bf16.mxu0 %v8155_v61 }
 0x214   :  { %5829 = vmatpush1.bf16.msra.mxu1 %v8150_v1  ;;  %5952 = vmatpush1.bf16.msra.mxu0 %v8153_v2  ;;  %v8216_v2 = vld [vmem:[#allocation2 + $0x1968] ss:$72 sps:$4 sm:$0xff]  }
 0x215   :  { %5830 = vmatprep.subr.bf16.mxu1 %v8158_v4  ;;  %5953 = vmatprep.subr.bf16.mxu0 %v8161_v5  ;;  %v8219_v4 = vld [vmem:[#allocation2 + $0x1970] ss:$72 sps:$4 sm:$0xff]   ;;  %v8224_v5 = vld [vmem:[#allocation2 + $0x19fc] ss:$72 sps:$4 sm:$0xff]  }
 0x218   :  { %5831 = vmatpush1.bf16.msra.mxu1 %v8156_v6  ;;  %5954 = vmatpush1.bf16.msra.mxu0 %v8159_v7  ;;  %v8227_v6 = vld [vmem:[#allocation2 + $0x1a04] ss:$72 sps:$4 sm:$0xff]   ;;  %v8222_v7 = vld [vmem:[#allocation2 + $0x19f8] ss:$72 sps:$4 sm:$0xff]  }
 0x219   :  { %5832 = vmatprep.subr.bf16.mxu1 %v8164_v8  ;;  %5955 = vmatprep.subr.bf16.mxu0 %v8167_v9  ;;  %v8225_v8 = vld [vmem:[#allocation2 + $0x1a00] ss:$72 sps:$4 sm:$0xff]   ;;  %v8230_v9 = vld [vmem:[#allocation2 + $0x1a8c] ss:$72 sps:$4 sm:$0xff]  }
 0x21c   :  { %5833 = vmatpush1.bf16.msra.mxu1 %v8162_v10  ;;  %5956 = vmatpush1.bf16.msra.mxu0 %v8165_v11  ;;  %v8233_v10 = vld [vmem:[#allocation2 + $0x1a94] ss:$72 sps:$4 sm:$0xff]   ;;  %v8228_v11 = vld [vmem:[#allocation2 + $0x1a88] ss:$72 sps:$4 sm:$0xff]  }
 0x21d   :  { %5834 = vmatprep.subr.bf16.mxu1 %v8170_v63  ;;  %5957 = vmatprep.subr.bf16.mxu0 %v8173_v12  ;;  %v8231_v63 = vld [vmem:[#allocation2 + $0x1a90] ss:$72 sps:$4 sm:$0xff]   ;;  %v8236_v12 = vld [vmem:[#allocation2 + $0x2c] ss:$72 sps:$4 sm:$0xff]  }
 0x220   :  { %5835 = vmatpush1.bf16.msra.mxu1 %v8168_v0  ;;  %5958 = vmatpush1.bf16.msra.mxu0 %v8171_v13  ;;  %v8239_v0 = vld [vmem:[#allocation2 + $0x34] ss:$72 sps:$4 sm:$0xff]  }
 0x221   :  { %5836 = vmatprep.subr.bf16.mxu1 %v8176_v14  ;;  %5959 = vmatprep.subr.bf16.mxu0 %v8179_v15 }
 0x224   :  { %5837 = vmatpush1.bf16.msra.mxu1 %v8174_v19  ;;  %5960 = vmatpush1.bf16.msra.mxu0 %v8177_v20  ;;  %v8234_v19 = vld [vmem:[#allocation2 + $0x28] ss:$72 sps:$4 sm:$0xff]  }
 0x225   :  { %5838 = vmatprep.subr.bf16.mxu1 %v8182_v22  ;;  %5961 = vmatprep.subr.bf16.mxu0 %v8185_v23  ;;  %v8237_v20 = vld [vmem:[#allocation2 + $0x30] ss:$72 sps:$4 sm:$0xff]   ;;  %v8242_v23 = vld [vmem:[#allocation2 + $0xbc] ss:$72 sps:$4 sm:$0xff]  }
 0x228   :  { %5839 = vmatpush1.bf16.msra.mxu1 %v8180_v24  ;;  %5962 = vmatpush1.bf16.msra.mxu0 %v8183_v25  ;;  %v8245_v24 = vld [vmem:[#allocation2 + $0xc4] ss:$72 sps:$4 sm:$0xff]   ;;  %v8240_v25 = vld [vmem:[#allocation2 + $0xb8] ss:$72 sps:$4 sm:$0xff]  }
 0x229   :  { %5840 = vmatprep.subr.bf16.mxu1 %v8188_v26  ;;  %5963 = vmatprep.subr.bf16.mxu0 %v8191_v28  ;;  %v8243_v26 = vld [vmem:[#allocation2 + $0xc0] ss:$72 sps:$4 sm:$0xff]   ;;  %v8248_v28 = vld [vmem:[#allocation2 + $0x14c] ss:$72 sps:$4 sm:$0xff]  }
 0x22c   :  { %5841 = vmatpush1.bf16.msra.mxu1 %v8186_v29  ;;  %5964 = vmatpush1.bf16.msra.mxu0 %v8189_v30  ;;  %v8251_v29 = vld [vmem:[#allocation2 + $0x154] ss:$72 sps:$4 sm:$0xff]   ;;  %v8246_v30 = vld [vmem:[#allocation2 + $0x148] ss:$72 sps:$4 sm:$0xff]  }
 0x22d   :  { %5842 = vmatprep.subr.bf16.mxu1 %v8194_v31  ;;  %5965 = vmatprep.subr.bf16.mxu0 %v8197_v32  ;;  %v8249_v31 = vld [vmem:[#allocation2 + $0x150] ss:$72 sps:$4 sm:$0xff]   ;;  %v8254_v32 = vld [vmem:[#allocation2 + $0x1dc] ss:$72 sps:$4 sm:$0xff]  }
 0x230   :  { %5843 = vmatpush1.bf16.msra.mxu1 %v8192_v33  ;;  %5966 = vmatpush1.bf16.msra.mxu0 %v8195_v34  ;;  %v8257_v33 = vld [vmem:[#allocation2 + $0x1e4] ss:$72 sps:$4 sm:$0xff]   ;;  %v8252_v34 = vld [vmem:[#allocation2 + $0x1d8] ss:$72 sps:$4 sm:$0xff]  }
 0x231   :  { %5844 = vmatprep.subr.bf16.mxu1 %v8200_v35  ;;  %5967 = vmatprep.subr.bf16.mxu0 %v8203_v36  ;;  %v8255_v35 = vld [vmem:[#allocation2 + $0x1e0] ss:$72 sps:$4 sm:$0xff]   ;;  %v8260_v36 = vld [vmem:[#allocation2 + $0x26c] ss:$72 sps:$4 sm:$0xff]  }
 0x234   :  { %5845 = vmatpush1.bf16.msra.mxu1 %v8198_v37  ;;  %5968 = vmatpush1.bf16.msra.mxu0 %v8201_v38  ;;  %v8263_v37 = vld [vmem:[#allocation2 + $0x274] ss:$72 sps:$4 sm:$0xff]   ;;  %v8258_v38 = vld [vmem:[#allocation2 + $0x268] ss:$72 sps:$4 sm:$0xff]  }
 0x235   :  { %5846 = vmatprep.subr.bf16.mxu1 %v8206_v39  ;;  %5969 = vmatprep.subr.bf16.mxu0 %v8209_v40  ;;  %v8261_v39 = vld [vmem:[#allocation2 + $0x270] ss:$72 sps:$4 sm:$0xff]   ;;  %v8266_v40 = vld [vmem:[#allocation2 + $0x2fc] ss:$72 sps:$4 sm:$0xff]  }
 0x238   :  { %5847 = vmatpush1.bf16.msra.mxu1 %v8204_v62  ;;  %5970 = vmatpush1.bf16.msra.mxu0 %v8207_v16  ;;  %v8269_v62 = vld [vmem:[#allocation2 + $0x304] ss:$72 sps:$4 sm:$0xff]   ;;  %v8264_v16 = vld [vmem:[#allocation2 + $0x2f8] ss:$72 sps:$4 sm:$0xff]  }
 0x239   :  { %5848 = vmatprep.subr.bf16.mxu1 %v8212_v46  ;;  %5971 = vmatprep.subr.bf16.mxu0 %v8215_v47  ;;  %v8267_v46 = vld [vmem:[#allocation2 + $0x300] ss:$72 sps:$4 sm:$0xff]   ;;  %v8272_v47 = vld [vmem:[#allocation2 + $0x38c] ss:$72 sps:$4 sm:$0xff]  }
 0x23a   :  { %v2203_v27 = vpop.f32.mrb[4].mxu0 }
 0x23b   :  { %v7426_v54 = vadd.f32 %v2203_v27, %v390_v51  ;;  %v2205_v59 = vpop.f32.mrb[5].mxu0  ;;  %v8270_v51 = vld [vmem:[#allocation2 + $0x388] ss:$72 sps:$4 sm:$0xff]   ;;  %v8276_v27 = vld [vmem:[#allocation2 + $0x418] ss:$72 sps:$4 sm:$0xff]  }
 0x23c   :  { %v7427_v60 = vadd.f32 %v2205_v59, %v394_v52  ;;  %v2207_v61 = vpop.f32.mrb[6].mxu0  ;;  %5849 = vmatpush1.bf16.msra.mxu1 %v8210_v18  ;;  %5972 = vmatpush1.bf16.msra.mxu0 %v8213_v53  ;;  %v8273_v52 = vld [vmem:[#allocation2 + $0x390] ss:$72 sps:$4 sm:$0xff]   ;;  %v8278_v18 = vld [vmem:[#allocation2 + $0x41c] ss:$72 sps:$4 sm:$0xff]  }
 0x23d   :  { %8818 = vtanh.f32 %v7426_v54  ;;  %v2208_v1 = vpop.f32.mrb[7].mxu0  ;;  %5850 = vmatprep.subr.bf16.mxu1 %v8218_v57  ;;  %5973 = vmatprep.subr.bf16.mxu0 %v8221_v58  ;;  %v8281_v53 = vld [vmem:[#allocation2 + $0x424] ss:$72 sps:$4 sm:$0xff]   ;;  %v8279_v57 = vld [vmem:[#allocation2 + $0x420] ss:$72 sps:$4 sm:$0xff]  }
 0x23e   :  { %8820 = vtanh.f32 %v7427_v60  ;;  %v8284_v58 = vld [vmem:[#allocation2 + $0x4ac] ss:$72 sps:$4 sm:$0xff]   ;;  %v8282_v59 = vld [vmem:[#allocation2 + $0x4a8] ss:$72 sps:$4 sm:$0xff]   ;;  %v8290_v61 = vld [vmem:[#allocation2 + $0x53c] ss:$72 sps:$4 sm:$0xff]  }
 0x23f   :  { %v8287_v54 = vld [vmem:[#allocation2 + $0x4b4] ss:$72 sps:$4 sm:$0xff]   ;;  %v8285_v60 = vld [vmem:[#allocation2 + $0x4b0] ss:$72 sps:$4 sm:$0xff]   ;;  %v8293_v1 = vld [vmem:[#allocation2 + $0x544] ss:$72 sps:$4 sm:$0xff]  }
 0x240   :  { %5851 = vmatpush1.bf16.msra.mxu1 %v8216_v2  ;;  %5974 = vmatpush1.bf16.msra.mxu0 %v8219_v4  ;;  %v8288_v2 = vld [vmem:[#allocation2 + $0x538] ss:$72 sps:$4 sm:$0xff]  }
 0x241   :  { %5852 = vmatprep.subr.bf16.mxu1 %v8224_v5  ;;  %5975 = vmatprep.subr.bf16.mxu0 %v8227_v6  ;;  %v8291_v4 = vld [vmem:[#allocation2 + $0x540] ss:$72 sps:$4 sm:$0xff]   ;;  %v8296_v5 = vld [vmem:[#allocation2 + $0x5cc] ss:$72 sps:$4 sm:$0xff]  }
 0x242   :  { %v8299_v6 = vld [vmem:[#allocation2 + $0x5d4] ss:$72 sps:$4 sm:$0xff]  }
 0x244   :  { %5853 = vmatpush1.bf16.msra.mxu1 %v8222_v7  ;;  %5976 = vmatpush1.bf16.msra.mxu0 %v8225_v8  ;;  %v8294_v7 = vld [vmem:[#allocation2 + $0x5c8] ss:$72 sps:$4 sm:$0xff]  }
 0x245   :  { %5854 = vmatprep.subr.bf16.mxu1 %v8230_v9  ;;  %5977 = vmatprep.subr.bf16.mxu0 %v8233_v10  ;;  %v8297_v8 = vld [vmem:[#allocation2 + $0x5d0] ss:$72 sps:$4 sm:$0xff]   ;;  %v8302_v9 = vld [vmem:[#allocation2 + $0x65c] ss:$72 sps:$4 sm:$0xff]  }
 0x246   :  { %v8305_v10 = vld [vmem:[#allocation2 + $0x664] ss:$72 sps:$4 sm:$0xff]  }
 0x247   :  { %v8819_v13 = vpop.eup %8818 }
 0x248   :  { %v8821_v14 = vpop.eup %8820  ;;  %5855 = vmatpush1.bf16.msra.mxu1 %v8228_v11  ;;  %5978 = vmatpush1.bf16.msra.mxu0 %v8231_v63  ;;  %v9021_v22 = vpack.c.bf16 %v8819_v13, %v8819_v13  ;;  %v8300_v11 = vld [vmem:[#allocation2 + $0x658] ss:$72 sps:$4 sm:$0xff]   ;;  %v8306_v13 = vld [vmem:[#allocation2 + $0x6e8] ss:$72 sps:$4 sm:$0xff]  }
 0x249   :  { %v9019_v15 = vpack.c.bf16 %v8821_v14, %v8821_v14  ;;  %5988 = vmatprep.subr.bf16.mxu1 %v8236_v12  ;;  %6111 = vmatprep.subr.bf16.mxu0 %v8239_v0  ;;  %v8303_v63 = vld [vmem:[#allocation2 + $0x660] ss:$72 sps:$4 sm:$0xff]   ;;  %v8308_v12 = vld [vmem:[#allocation2 + $0x6ec] ss:$72 sps:$4 sm:$0xff]   ;;  %v8309_v14 = vld [vmem:[#allocation2 + $0x6f0] ss:$72 sps:$4 sm:$0xff]  }
 0x24a   :  { %v8311_v0 = vld [vmem:[#allocation2 + $0x6f4] ss:$72 sps:$4 sm:$0xff]  }
 0x24b   :  { %5856 = vmatprep.mubr.bf16.mxu1 %v9019_v15  ;;  %5979 = vmatprep.mubr.bf16.mxu0 %v9019_v15 }
 0x24c   :  { %5857 = vmatmul.mubr.bf16.vlgmr.msra.gmra.mrb[8].mxu1 %v9021_v22  ;;  %5980 = vmatmul.mubr.bf16.vlgmr.msra.gmra.mrb[8].mxu0 %v9021_v22 }
 0x24d   :  { %5989 = vmatpush1.bf16.msra.mxu1 %v8234_v19  ;;  %6112 = vmatpush1.bf16.msra.mxu0 %v8237_v20  ;;  %v8314_v19 = vld [vmem:[#allocation2 + $0x77c] ss:$72 sps:$4 sm:$0xff]  }
 0x24e   :  { %6020 = vmatprep.mubr.bf16.mxu1 %v8987_v17  ;;  %6143 = vmatprep.mubr.bf16.mxu0 %v8987_v17  ;;  %v8317_v20 = vld [vmem:[#allocation2 + $0x784] ss:$72 sps:$4 sm:$0xff]  }
 0x24f   :  { %5990 = vmatprep.subr.bf16.mxu1 %v8242_v23  ;;  %6113 = vmatprep.subr.bf16.mxu0 %v8245_v24  ;;  %v8312_v23 = vld [vmem:[#allocation2 + $0x778] ss:$72 sps:$4 sm:$0xff]  }
 0x250   :  { %v8315_v24 = vld [vmem:[#allocation2 + $0x780] ss:$72 sps:$4 sm:$0xff]  }
 0x251   :  { %5991 = vmatpush1.bf16.msra.mxu1 %v8240_v25  ;;  %6114 = vmatpush1.bf16.msra.mxu0 %v8243_v26  ;;  %v8320_v25 = vld [vmem:[#allocation2 + $0x80c] ss:$72 sps:$4 sm:$0xff]  }
 0x252   :  { %5992 = vmatprep.subr.bf16.mxu1 %v8248_v28  ;;  %6115 = vmatprep.subr.bf16.mxu0 %v8251_v29  ;;  %v8323_v26 = vld [vmem:[#allocation2 + $0x814] ss:$72 sps:$4 sm:$0xff]   ;;  %v8318_v28 = vld [vmem:[#allocation2 + $0x808] ss:$72 sps:$4 sm:$0xff]  }
 0x253   :  { %v8321_v29 = vld [vmem:[#allocation2 + $0x810] ss:$72 sps:$4 sm:$0xff]  }
 0x255   :  { %5993 = vmatpush1.bf16.msra.mxu1 %v8246_v30  ;;  %6116 = vmatpush1.bf16.msra.mxu0 %v8249_v31  ;;  %v8326_v30 = vld [vmem:[#allocation2 + $0x89c] ss:$72 sps:$4 sm:$0xff]  }
 0x256   :  { %5994 = vmatprep.subr.bf16.mxu1 %v8254_v32  ;;  %6117 = vmatprep.subr.bf16.mxu0 %v8257_v33  ;;  %v8329_v31 = vld [vmem:[#allocation2 + $0x8a4] ss:$72 sps:$4 sm:$0xff]   ;;  %v8324_v32 = vld [vmem:[#allocation2 + $0x898] ss:$72 sps:$4 sm:$0xff]  }
 0x257   :  { %v8327_v33 = vld [vmem:[#allocation2 + $0x8a0] ss:$72 sps:$4 sm:$0xff]  }
 0x259   :  { %5995 = vmatpush1.bf16.msra.mxu1 %v8252_v34  ;;  %6118 = vmatpush1.bf16.msra.mxu0 %v8255_v35  ;;  %v8332_v34 = vld [vmem:[#allocation2 + $0x92c] ss:$72 sps:$4 sm:$0xff]  }
 0x25a   :  { %5996 = vmatprep.subr.bf16.mxu1 %v8260_v36  ;;  %6119 = vmatprep.subr.bf16.mxu0 %v8263_v37  ;;  %v8335_v35 = vld [vmem:[#allocation2 + $0x934] ss:$72 sps:$4 sm:$0xff]   ;;  %v8330_v36 = vld [vmem:[#allocation2 + $0x928] ss:$72 sps:$4 sm:$0xff]  }
 0x25b   :  { %v8333_v37 = vld [vmem:[#allocation2 + $0x930] ss:$72 sps:$4 sm:$0xff]  }
 0x25d   :  { %5997 = vmatpush1.bf16.msra.mxu1 %v8258_v38  ;;  %6120 = vmatpush1.bf16.msra.mxu0 %v8261_v39  ;;  %v8338_v38 = vld [vmem:[#allocation2 + $0x9bc] ss:$72 sps:$4 sm:$0xff]  }
 0x25e   :  { %5998 = vmatprep.subr.bf16.mxu1 %v8266_v40  ;;  %6121 = vmatprep.subr.bf16.mxu0 %v8269_v62  ;;  %v8341_v39 = vld [vmem:[#allocation2 + $0x9c4] ss:$72 sps:$4 sm:$0xff]   ;;  %v8336_v40 = vld [vmem:[#allocation2 + $0x9b8] ss:$72 sps:$4 sm:$0xff]  }
 0x25f   :  { %v8339_v62 = vld [vmem:[#allocation2 + $0x9c0] ss:$72 sps:$4 sm:$0xff]  }
 0x261   :  { %5999 = vmatpush1.bf16.msra.mxu1 %v8264_v16  ;;  %6122 = vmatpush1.bf16.msra.mxu0 %v8267_v46  ;;  %v8344_v16 = vld [vmem:[#allocation2 + $0xa4c] ss:$72 sps:$4 sm:$0xff]  }
 0x262   :  { %6000 = vmatprep.subr.bf16.mxu1 %v8272_v47  ;;  %6123 = vmatprep.subr.bf16.mxu0 %v8275_v48  ;;  %v8347_v46 = vld [vmem:[#allocation2 + $0xa54] ss:$72 sps:$4 sm:$0xff]   ;;  %v8342_v47 = vld [vmem:[#allocation2 + $0xa48] ss:$72 sps:$4 sm:$0xff]  }
 0x263   :  { %v8345_v48 = vld [vmem:[#allocation2 + $0xa50] ss:$72 sps:$4 sm:$0xff]  }
 0x265   :  { %6001 = vmatpush1.bf16.msra.mxu1 %v8270_v51  ;;  %6124 = vmatpush1.bf16.msra.mxu0 %v8273_v52  ;;  %v8350_v51 = vld [vmem:[#allocation2 + $0xadc] ss:$72 sps:$4 sm:$0xff]  }
 0x266   :  { %6002 = vmatprep.subr.bf16.mxu1 %v8278_v18  ;;  %6125 = vmatprep.subr.bf16.mxu0 %v8281_v53  ;;  %v8353_v52 = vld [vmem:[#allocation2 + $0xae4] ss:$72 sps:$4 sm:$0xff]   ;;  %v8348_v18 = vld [vmem:[#allocation2 + $0xad8] ss:$72 sps:$4 sm:$0xff]  }
 0x267   :  { %v8351_v53 = vld [vmem:[#allocation2 + $0xae0] ss:$72 sps:$4 sm:$0xff]  }
 0x269   :  { %6003 = vmatpush1.bf16.msra.mxu1 %v8276_v27  ;;  %6126 = vmatpush1.bf16.msra.mxu0 %v8279_v57  ;;  %v8356_v27 = vld [vmem:[#allocation2 + $0xb6c] ss:$72 sps:$4 sm:$0xff]  }
 0x26a   :  { %6004 = vmatprep.subr.bf16.mxu1 %v8284_v58  ;;  %6127 = vmatprep.subr.bf16.mxu0 %v8287_v54  ;;  %v8359_v57 = vld [vmem:[#allocation2 + $0xb74] ss:$72 sps:$4 sm:$0xff]   ;;  %v8354_v58 = vld [vmem:[#allocation2 + $0xb68] ss:$72 sps:$4 sm:$0xff]  }
 0x26b   :  { %v8357_v54 = vld [vmem:[#allocation2 + $0xb70] ss:$72 sps:$4 sm:$0xff]  }
 0x26d   :  { %6005 = vmatpush1.bf16.msra.mxu1 %v8282_v59  ;;  %6128 = vmatpush1.bf16.msra.mxu0 %v8285_v60  ;;  %v8362_v59 = vld [vmem:[#allocation2 + $0xbfc] ss:$72 sps:$4 sm:$0xff]  }
 0x26e   :  { %6006 = vmatprep.subr.bf16.mxu1 %v8290_v61  ;;  %6129 = vmatprep.subr.bf16.mxu0 %v8293_v1  ;;  %v8365_v60 = vld [vmem:[#allocation2 + $0xc04] ss:$72 sps:$4 sm:$0xff]   ;;  %v8360_v61 = vld [vmem:[#allocation2 + $0xbf8] ss:$72 sps:$4 sm:$0xff]  }
 0x26f   :  { %v8363_v1 = vld [vmem:[#allocation2 + $0xc00] ss:$72 sps:$4 sm:$0xff]  }
 0x271   :  { %6007 = vmatpush1.bf16.msra.mxu1 %v8288_v2  ;;  %6130 = vmatpush1.bf16.msra.mxu0 %v8291_v4  ;;  %v8368_v2 = vld [vmem:[#allocation2 + $0xc8c] ss:$72 sps:$4 sm:$0xff]  }
 0x272   :  { %6008 = vmatprep.subr.bf16.mxu1 %v8296_v5  ;;  %6131 = vmatprep.subr.bf16.mxu0 %v8299_v6  ;;  %v8371_v4 = vld [vmem:[#allocation2 + $0xc94] ss:$72 sps:$4 sm:$0xff]   ;;  %v8366_v5 = vld [vmem:[#allocation2 + $0xc88] ss:$72 sps:$4 sm:$0xff]  }
 0x273   :  { %v8369_v6 = vld [vmem:[#allocation2 + $0xc90] ss:$72 sps:$4 sm:$0xff]  }
 0x275   :  { %6009 = vmatpush1.bf16.msra.mxu1 %v8294_v7  ;;  %6132 = vmatpush1.bf16.msra.mxu0 %v8297_v8  ;;  %v8374_v7 = vld [vmem:[#allocation2 + $0xd1c] ss:$72 sps:$4 sm:$0xff]  }
 0x276   :  { %6010 = vmatprep.subr.bf16.mxu1 %v8302_v9  ;;  %6133 = vmatprep.subr.bf16.mxu0 %v8305_v10  ;;  %v8377_v8 = vld [vmem:[#allocation2 + $0xd24] ss:$72 sps:$4 sm:$0xff]   ;;  %v8372_v9 = vld [vmem:[#allocation2 + $0xd18] ss:$72 sps:$4 sm:$0xff]  }
 0x277   :  { %v8375_v10 = vld [vmem:[#allocation2 + $0xd20] ss:$72 sps:$4 sm:$0xff]  }
 0x279   :  { %6011 = vmatpush1.bf16.msra.mxu1 %v8300_v11  ;;  %6134 = vmatpush1.bf16.msra.mxu0 %v8303_v63  ;;  %v8380_v11 = vld [vmem:[#allocation2 + $0xdac] ss:$72 sps:$4 sm:$0xff]  }
 0x27a   :  { %6012 = vmatprep.subr.bf16.mxu1 %v8308_v12  ;;  %6135 = vmatprep.subr.bf16.mxu0 %v8311_v0  ;;  %v8383_v63 = vld [vmem:[#allocation2 + $0xdb4] ss:$72 sps:$4 sm:$0xff]   ;;  %v8378_v12 = vld [vmem:[#allocation2 + $0xda8] ss:$72 sps:$4 sm:$0xff]  }
 0x27b   :  { %v8381_v0 = vld [vmem:[#allocation2 + $0xdb0] ss:$72 sps:$4 sm:$0xff]  }
 0x27d   :  { %6013 = vmatpush1.bf16.msra.mxu1 %v8306_v13  ;;  %6136 = vmatpush1.bf16.msra.mxu0 %v8309_v14  ;;  %v8386_v13 = vld [vmem:[#allocation2 + $0xe3c] ss:$72 sps:$4 sm:$0xff]  }
 0x27e   :  { %6014 = vmatprep.subr.bf16.mxu1 %v8314_v19  ;;  %6137 = vmatprep.subr.bf16.mxu0 %v8317_v20  ;;  %v8389_v14 = vld [vmem:[#allocation2 + $0xe44] ss:$72 sps:$4 sm:$0xff]   ;;  %v8384_v19 = vld [vmem:[#allocation2 + $0xe38] ss:$72 sps:$4 sm:$0xff]  }
 0x27f   :  { %v8387_v20 = vld [vmem:[#allocation2 + $0xe40] ss:$72 sps:$4 sm:$0xff]  }
 0x281   :  { %6015 = vmatpush1.bf16.msra.mxu1 %v8312_v23  ;;  %6138 = vmatpush1.bf16.msra.mxu0 %v8315_v24  ;;  %v8392_v23 = vld [vmem:[#allocation2 + $0xecc] ss:$72 sps:$4 sm:$0xff]  }
 0x282   :  { %6016 = vmatprep.subr.bf16.mxu1 %v8320_v25  ;;  %6139 = vmatprep.subr.bf16.mxu0 %v8323_v26  ;;  %v8395_v24 = vld [vmem:[#allocation2 + $0xed4] ss:$72 sps:$4 sm:$0xff]   ;;  %v8390_v25 = vld [vmem:[#allocation2 + $0xec8] ss:$72 sps:$4 sm:$0xff]  }
 0x283   :  { %v8393_v26 = vld [vmem:[#allocation2 + $0xed0] ss:$72 sps:$4 sm:$0xff]  }
 0x285   :  { %6017 = vmatpush1.bf16.msra.mxu1 %v8318_v28  ;;  %6140 = vmatpush1.bf16.msra.mxu0 %v8321_v29  ;;  %v8398_v28 = vld [vmem:[#allocation2 + $0xf5c] ss:$72 sps:$4 sm:$0xff]  }
 0x286   :  { %6018 = vmatprep.subr.bf16.mxu1 %v8326_v30  ;;  %6141 = vmatprep.subr.bf16.mxu0 %v8329_v31  ;;  %v8401_v29 = vld [vmem:[#allocation2 + $0xf64] ss:$72 sps:$4 sm:$0xff]   ;;  %v8396_v30 = vld [vmem:[#allocation2 + $0xf58] ss:$72 sps:$4 sm:$0xff]  }
 0x287   :  { %v8399_v31 = vld [vmem:[#allocation2 + $0xf60] ss:$72 sps:$4 sm:$0xff]  }
 0x289   :  { %6019 = vmatpush1.bf16.msra.mxu1 %v8324_v32  ;;  %6142 = vmatpush1.bf16.msra.mxu0 %v8327_v33  ;;  %v8404_v32 = vld [vmem:[#allocation2 + $0xfec] ss:$72 sps:$4 sm:$0xff]  }
 0x28a   :  { %6029 = vmatprep.subr.bf16.mxu1 %v8332_v34  ;;  %6152 = vmatprep.subr.bf16.mxu0 %v8335_v35  ;;  %v8407_v33 = vld [vmem:[#allocation2 + $0xff4] ss:$72 sps:$4 sm:$0xff]   ;;  %v8402_v34 = vld [vmem:[#allocation2 + $0xfe8] ss:$72 sps:$4 sm:$0xff]  }
 0x28b   :  { %v8405_v35 = vld [vmem:[#allocation2 + $0xff0] ss:$72 sps:$4 sm:$0xff]  }
 0x28c   :  { %6021 = vmatmul.mubr.bf16.vlgmr.msra.gmra.mrb[12].mxu1 %v8989_v21  ;;  %6144 = vmatmul.mubr.bf16.vlgmr.msra.gmra.mrb[12].mxu0 %v8989_v21 }
 0x28d   :  { %6030 = vmatpush1.bf16.msra.mxu1 %v8330_v36  ;;  %6061 = vmatprep.mubr.bf16.mxu1 %v9005_v3  ;;  %v8410_v36 = vld [vmem:[#allocation2 + $0x107c] ss:$72 sps:$4 sm:$0xff]  }
 0x28e   :  { %6153 = vmatpush1.bf16.msra.mxu0 %v8333_v37  ;;  %6184 = vmatprep.mubr.bf16.mxu0 %v9005_v3  ;;  %v8413_v37 = vld [vmem:[#allocation2 + $0x1084] ss:$72 sps:$4 sm:$0xff]  }
 0x28f   :  { %6031 = vmatprep.subr.bf16.mxu1 %v8338_v38  ;;  %6154 = vmatprep.subr.bf16.mxu0 %v8341_v39  ;;  %v8408_v38 = vld [vmem:[#allocation2 + $0x1078] ss:$72 sps:$4 sm:$0xff]  }
 0x290   :  { %v8411_v39 = vld [vmem:[#allocation2 + $0x1080] ss:$72 sps:$4 sm:$0xff]  }
 0x291   :  { %6032 = vmatpush1.bf16.msra.mxu1 %v8336_v40  ;;  %v8416_v40 = vld [vmem:[#allocation2 + $0x110c] ss:$72 sps:$4 sm:$0xff]  }
 0x292   :  { %6155 = vmatpush1.bf16.msra.mxu0 %v8339_v62  ;;  %6033 = vmatprep.subr.bf16.mxu1 %v8344_v16  ;;  %v8419_v62 = vld [vmem:[#allocation2 + $0x1114] ss:$72 sps:$4 sm:$0xff]   ;;  %v8414_v16 = vld [vmem:[#allocation2 + $0x1108] ss:$72 sps:$4 sm:$0xff]  }
 0x293   :  { %6156 = vmatprep.subr.bf16.mxu0 %v8347_v46  ;;  %v8417_v46 = vld [vmem:[#allocation2 + $0x1110] ss:$72 sps:$4 sm:$0xff]  }
 0x295   :  { %6034 = vmatpush1.bf16.msra.mxu1 %v8342_v47  ;;  %v8422_v47 = vld [vmem:[#allocation2 + $0x119c] ss:$72 sps:$4 sm:$0xff]  }
 0x296   :  { %6157 = vmatpush1.bf16.msra.mxu0 %v8345_v48  ;;  %6035 = vmatprep.subr.bf16.mxu1 %v8350_v51  ;;  %v8425_v48 = vld [vmem:[#allocation2 + $0x11a4] ss:$72 sps:$4 sm:$0xff]   ;;  %v8420_v51 = vld [vmem:[#allocation2 + $0x1198] ss:$72 sps:$4 sm:$0xff]  }
 0x297   :  { %6158 = vmatprep.subr.bf16.mxu0 %v8353_v52  ;;  %v8423_v52 = vld [vmem:[#allocation2 + $0x11a0] ss:$72 sps:$4 sm:$0xff]  }
 0x299   :  { %6036 = vmatpush1.bf16.msra.mxu1 %v8348_v18  ;;  %v8428_v18 = vld [vmem:[#allocation2 + $0x122c] ss:$72 sps:$4 sm:$0xff]  }
 0x29a   :  { %6159 = vmatpush1.bf16.msra.mxu0 %v8351_v53  ;;  %6037 = vmatprep.subr.bf16.mxu1 %v8356_v27  ;;  %v8431_v53 = vld [vmem:[#allocation2 + $0x1234] ss:$72 sps:$4 sm:$0xff]   ;;  %v8426_v27 = vld [vmem:[#allocation2 + $0x1228] ss:$72 sps:$4 sm:$0xff]  }
 0x29b   :  { %6160 = vmatprep.subr.bf16.mxu0 %v8359_v57  ;;  %v8429_v57 = vld [vmem:[#allocation2 + $0x1230] ss:$72 sps:$4 sm:$0xff]  }
 0x29d   :  { %6038 = vmatpush1.bf16.msra.mxu1 %v8354_v58  ;;  %v8434_v58 = vld [vmem:[#allocation2 + $0x12bc] ss:$72 sps:$4 sm:$0xff]  }
 0x29e   :  { %6161 = vmatpush1.bf16.msra.mxu0 %v8357_v54  ;;  %6039 = vmatprep.subr.bf16.mxu1 %v8362_v59  ;;  %v8437_v54 = vld [vmem:[#allocation2 + $0x12c4] ss:$72 sps:$4 sm:$0xff]   ;;  %v8432_v59 = vld [vmem:[#allocation2 + $0x12b8] ss:$72 sps:$4 sm:$0xff]  }
 0x29f   :  { %6162 = vmatprep.subr.bf16.mxu0 %v8365_v60  ;;  %v8435_v60 = vld [vmem:[#allocation2 + $0x12c0] ss:$72 sps:$4 sm:$0xff]  }
 0x2a1   :  { %6040 = vmatpush1.bf16.msra.mxu1 %v8360_v61  ;;  %v8440_v61 = vld [vmem:[#allocation2 + $0x134c] ss:$72 sps:$4 sm:$0xff]  }
 0x2a2   :  { %6163 = vmatpush1.bf16.msra.mxu0 %v8363_v1  ;;  %6041 = vmatprep.subr.bf16.mxu1 %v8368_v2  ;;  %v8443_v1 = vld [vmem:[#allocation2 + $0x1354] ss:$72 sps:$4 sm:$0xff]   ;;  %v8438_v2 = vld [vmem:[#allocation2 + $0x1348] ss:$72 sps:$4 sm:$0xff]  }
 0x2a3   :  { %6164 = vmatprep.subr.bf16.mxu0 %v8371_v4  ;;  %v8441_v4 = vld [vmem:[#allocation2 + $0x1350] ss:$72 sps:$4 sm:$0xff]  }
 0x2a5   :  { %6042 = vmatpush1.bf16.msra.mxu1 %v8366_v5  ;;  %v8446_v5 = vld [vmem:[#allocation2 + $0x13dc] ss:$72 sps:$4 sm:$0xff]  }
 0x2a6   :  { %6165 = vmatpush1.bf16.msra.mxu0 %v8369_v6  ;;  %6043 = vmatprep.subr.bf16.mxu1 %v8374_v7  ;;  %v8449_v6 = vld [vmem:[#allocation2 + $0x13e4] ss:$72 sps:$4 sm:$0xff]   ;;  %v8444_v7 = vld [vmem:[#allocation2 + $0x13d8] ss:$72 sps:$4 sm:$0xff]  }
 0x2a7   :  { %6166 = vmatprep.subr.bf16.mxu0 %v8377_v8  ;;  %v8447_v8 = vld [vmem:[#allocation2 + $0x13e0] ss:$72 sps:$4 sm:$0xff]  }
 0x2a9   :  { %6044 = vmatpush1.bf16.msra.mxu1 %v8372_v9  ;;  %v8452_v9 = vld [vmem:[#allocation2 + $0x146c] ss:$72 sps:$4 sm:$0xff]  }
 0x2aa   :  { %6167 = vmatpush1.bf16.msra.mxu0 %v8375_v10  ;;  %6045 = vmatprep.subr.bf16.mxu1 %v8380_v11  ;;  %v8455_v10 = vld [vmem:[#allocation2 + $0x1474] ss:$72 sps:$4 sm:$0xff]   ;;  %v8450_v11 = vld [vmem:[#allocation2 + $0x1468] ss:$72 sps:$4 sm:$0xff]  }
 0x2ab   :  { %6168 = vmatprep.subr.bf16.mxu0 %v8383_v63  ;;  %v8453_v63 = vld [vmem:[#allocation2 + $0x1470] ss:$72 sps:$4 sm:$0xff]  }
 0x2ad   :  { %6046 = vmatpush1.bf16.msra.mxu1 %v8378_v12  ;;  %v8458_v12 = vld [vmem:[#allocation2 + $0x14fc] ss:$72 sps:$4 sm:$0xff]  }
 0x2ae   :  { %6169 = vmatpush1.bf16.msra.mxu0 %v8381_v0  ;;  %6047 = vmatprep.subr.bf16.mxu1 %v8386_v13  ;;  %v8461_v0 = vld [vmem:[#allocation2 + $0x1504] ss:$72 sps:$4 sm:$0xff]   ;;  %v8456_v13 = vld [vmem:[#allocation2 + $0x14f8] ss:$72 sps:$4 sm:$0xff]  }
 0x2af   :  { %6170 = vmatprep.subr.bf16.mxu0 %v8389_v14  ;;  %v8459_v14 = vld [vmem:[#allocation2 + $0x1500] ss:$72 sps:$4 sm:$0xff]  }
 0x2b1   :  { %6048 = vmatpush1.bf16.msra.mxu1 %v8384_v19  ;;  %v8464_v19 = vld [vmem:[#allocation2 + $0x158c] ss:$72 sps:$4 sm:$0xff]  }
 0x2b2   :  { %6171 = vmatpush1.bf16.msra.mxu0 %v8387_v20  ;;  %6049 = vmatprep.subr.bf16.mxu1 %v8392_v23  ;;  %v8467_v20 = vld [vmem:[#allocation2 + $0x1594] ss:$72 sps:$4 sm:$0xff]   ;;  %v8462_v23 = vld [vmem:[#allocation2 + $0x1588] ss:$72 sps:$4 sm:$0xff]  }
 0x2b3   :  { %6172 = vmatprep.subr.bf16.mxu0 %v8395_v24  ;;  %v8465_v24 = vld [vmem:[#allocation2 + $0x1590] ss:$72 sps:$4 sm:$0xff]  }
 0x2b5   :  { %6050 = vmatpush1.bf16.msra.mxu1 %v8390_v25  ;;  %v8470_v25 = vld [vmem:[#allocation2 + $0x161c] ss:$72 sps:$4 sm:$0xff]  }
 0x2b6   :  { %6173 = vmatpush1.bf16.msra.mxu0 %v8393_v26  ;;  %6051 = vmatprep.subr.bf16.mxu1 %v8398_v28  ;;  %v8473_v26 = vld [vmem:[#allocation2 + $0x1624] ss:$72 sps:$4 sm:$0xff]   ;;  %v8468_v28 = vld [vmem:[#allocation2 + $0x1618] ss:$72 sps:$4 sm:$0xff]  }
 0x2b7   :  { %6174 = vmatprep.subr.bf16.mxu0 %v8401_v29  ;;  %v8471_v29 = vld [vmem:[#allocation2 + $0x1620] ss:$72 sps:$4 sm:$0xff]  }
 0x2b9   :  { %6052 = vmatpush1.bf16.msra.mxu1 %v8396_v30  ;;  %v8476_v30 = vld [vmem:[#allocation2 + $0x16ac] ss:$72 sps:$4 sm:$0xff]  }
 0x2ba   :  { %6175 = vmatpush1.bf16.msra.mxu0 %v8399_v31  ;;  %6053 = vmatprep.subr.bf16.mxu1 %v8404_v32  ;;  %v8479_v31 = vld [vmem:[#allocation2 + $0x16b4] ss:$72 sps:$4 sm:$0xff]   ;;  %v8474_v32 = vld [vmem:[#allocation2 + $0x16a8] ss:$72 sps:$4 sm:$0xff]  }
 0x2bb   :  { %6176 = vmatprep.subr.bf16.mxu0 %v8407_v33  ;;  %v8477_v33 = vld [vmem:[#allocation2 + $0x16b0] ss:$72 sps:$4 sm:$0xff]  }
 0x2bd   :  { %6054 = vmatpush1.bf16.msra.mxu1 %v8402_v34  ;;  %v8482_v34 = vld [vmem:[#allocation2 + $0x173c] ss:$72 sps:$4 sm:$0xff]  }
 0x2be   :  { %6177 = vmatpush1.bf16.msra.mxu0 %v8405_v35  ;;  %6055 = vmatprep.subr.bf16.mxu1 %v8410_v36  ;;  %v8485_v35 = vld [vmem:[#allocation2 + $0x1744] ss:$72 sps:$4 sm:$0xff]   ;;  %v8480_v36 = vld [vmem:[#allocation2 + $0x1738] ss:$72 sps:$4 sm:$0xff]  }
 0x2bf   :  { %6178 = vmatprep.subr.bf16.mxu0 %v8413_v37  ;;  %v8483_v37 = vld [vmem:[#allocation2 + $0x1740] ss:$72 sps:$4 sm:$0xff]  }
 0x2c1   :  { %6056 = vmatpush1.bf16.msra.mxu1 %v8408_v38  ;;  %v8488_v38 = vld [vmem:[#allocation2 + $0x17cc] ss:$72 sps:$4 sm:$0xff]  }
 0x2c2   :  { %6179 = vmatpush1.bf16.msra.mxu0 %v8411_v39  ;;  %6057 = vmatprep.subr.bf16.mxu1 %v8416_v40  ;;  %v8491_v39 = vld [vmem:[#allocation2 + $0x17d4] ss:$72 sps:$4 sm:$0xff]   ;;  %v8486_v40 = vld [vmem:[#allocation2 + $0x17c8] ss:$72 sps:$4 sm:$0xff]  }
 0x2c3   :  { %6180 = vmatprep.subr.bf16.mxu0 %v8419_v62  ;;  %v8489_v62 = vld [vmem:[#allocation2 + $0x17d0] ss:$72 sps:$4 sm:$0xff]  }
 0x2c5   :  { %6058 = vmatpush1.bf16.msra.mxu1 %v8414_v16  ;;  %v8494_v16 = vld [vmem:[#allocation2 + $0x185c] ss:$72 sps:$4 sm:$0xff]  }
 0x2c6   :  { %6181 = vmatpush1.bf16.msra.mxu0 %v8417_v46  ;;  %6059 = vmatprep.subr.bf16.mxu1 %v8422_v47  ;;  %v8497_v46 = vld [vmem:[#allocation2 + $0x1864] ss:$72 sps:$4 sm:$0xff]   ;;  %v8492_v47 = vld [vmem:[#allocation2 + $0x1858] ss:$72 sps:$4 sm:$0xff]  }
 0x2c7   :  { %6182 = vmatprep.subr.bf16.mxu0 %v8425_v48  ;;  %v8495_v48 = vld [vmem:[#allocation2 + $0x1860] ss:$72 sps:$4 sm:$0xff]  }
 0x2c9   :  { %6060 = vmatpush1.bf16.msra.mxu1 %v8420_v51  ;;  %v8500_v51 = vld [vmem:[#allocation2 + $0x18ec] ss:$72 sps:$4 sm:$0xff]  }
 0x2ca   :  { %6183 = vmatpush1.bf16.msra.mxu0 %v8423_v52  ;;  %6070 = vmatprep.subr.bf16.mxu1 %v8428_v18  ;;  %v8503_v52 = vld [vmem:[#allocation2 + $0x18f4] ss:$72 sps:$4 sm:$0xff]   ;;  %v8498_v18 = vld [vmem:[#allocation2 + $0x18e8] ss:$72 sps:$4 sm:$0xff]  }
 0x2cb   :  { %6193 = vmatprep.subr.bf16.mxu0 %v8431_v53  ;;  %v8501_v53 = vld [vmem:[#allocation2 + $0x18f0] ss:$72 sps:$4 sm:$0xff]  }
 0x2cc   :  { %6062 = vmatmul.mubr.bf16.vlgmr.msra.gmra.mrb[12].mxu1 %v9007_v50 }
 0x2cd   :  { %6185 = vmatmul.mubr.bf16.vlgmr.msra.gmra.mrb[12].mxu0 %v9007_v50  ;;  %6071 = vmatpush1.bf16.msra.mxu1 %v8426_v27  ;;  %v8506_v27 = vld [vmem:[#allocation2 + $0x197c] ss:$72 sps:$4 sm:$0xff]  }
 0x2ce   :  { %6102 = vmatprep.mubr.bf16.mxu1 %v9019_v15  ;;  %6194 = vmatpush1.bf16.msra.mxu0 %v8429_v57  ;;  %v8509_v57 = vld [vmem:[#allocation2 + $0x1984] ss:$72 sps:$4 sm:$0xff]  }
 0x2cf   :  { %6225 = vmatprep.mubr.bf16.mxu0 %v9019_v15  ;;  %6072 = vmatprep.subr.bf16.mxu1 %v8434_v58  ;;  %v8504_v58 = vld [vmem:[#allocation2 + $0x1978] ss:$72 sps:$4 sm:$0xff]  }
 0x2d0   :  { %6195 = vmatprep.subr.bf16.mxu0 %v8437_v54  ;;  %v8507_v54 = vld [vmem:[#allocation2 + $0x1980] ss:$72 sps:$4 sm:$0xff]  }
 0x2d1   :  { %6073 = vmatpush1.bf16.msra.mxu1 %v8432_v59  ;;  %v8512_v59 = vld [vmem:[#allocation2 + $0x1a0c] ss:$72 sps:$4 sm:$0xff]  }
 0x2d2   :  { %6196 = vmatpush1.bf16.msra.mxu0 %v8435_v60  ;;  %6074 = vmatprep.subr.bf16.mxu1 %v8440_v61  ;;  %v8515_v60 = vld [vmem:[#allocation2 + $0x1a14] ss:$72 sps:$4 sm:$0xff]   ;;  %v8510_v61 = vld [vmem:[#allocation2 + $0x1a08] ss:$72 sps:$4 sm:$0xff]  }
 0x2d3   :  { %6197 = vmatprep.subr.bf16.mxu0 %v8443_v1  ;;  %v8513_v1 = vld [vmem:[#allocation2 + $0x1a10] ss:$72 sps:$4 sm:$0xff]  }
 0x2d5   :  { %6075 = vmatpush1.bf16.msra.mxu1 %v8438_v2  ;;  %v8518_v2 = vld [vmem:[#allocation2 + $0x1a9c] ss:$72 sps:$4 sm:$0xff]  }
 0x2d6   :  { %6198 = vmatpush1.bf16.msra.mxu0 %v8441_v4  ;;  %6076 = vmatprep.subr.bf16.mxu1 %v8446_v5  ;;  %v8521_v4 = vld [vmem:[#allocation2 + $0x1aa4] ss:$72 sps:$4 sm:$0xff]   ;;  %v8516_v5 = vld [vmem:[#allocation2 + $0x1a98] ss:$72 sps:$4 sm:$0xff]  }
 0x2d7   :  { %6199 = vmatprep.subr.bf16.mxu0 %v8449_v6  ;;  %v8519_v6 = vld [vmem:[#allocation2 + $0x1aa0] ss:$72 sps:$4 sm:$0xff]  }
 0x2d9   :  { %6077 = vmatpush1.bf16.msra.mxu1 %v8444_v7  ;;  %v8524_v7 = vld [vmem:[#allocation2 + $0x3c] ss:$72 sps:$4 sm:$0xff]  }
 0x2da   :  { %6200 = vmatpush1.bf16.msra.mxu0 %v8447_v8  ;;  %6078 = vmatprep.subr.bf16.mxu1 %v8452_v9  ;;  %v8527_v8 = vld [vmem:[#allocation2 + $0x44] ss:$72 sps:$4 sm:$0xff]   ;;  %v8522_v9 = vld [vmem:[#allocation2 + $0x38] ss:$72 sps:$4 sm:$0xff]  }
 0x2db   :  { %6201 = vmatprep.subr.bf16.mxu0 %v8455_v10  ;;  %v8525_v10 = vld [vmem:[#allocation2 + $0x40] ss:$72 sps:$4 sm:$0xff]  }
 0x2dd   :  { %6079 = vmatpush1.bf16.msra.mxu1 %v8450_v11  ;;  %v8530_v11 = vld [vmem:[#allocation2 + $0xcc] ss:$72 sps:$4 sm:$0xff]  }
 0x2de   :  { %6202 = vmatpush1.bf16.msra.mxu0 %v8453_v63  ;;  %6080 = vmatprep.subr.bf16.mxu1 %v8458_v12  ;;  %v8533_v63 = vld [vmem:[#allocation2 + $0xd4] ss:$72 sps:$4 sm:$0xff]   ;;  %v8528_v12 = vld [vmem:[#allocation2 + $0xc8] ss:$72 sps:$4 sm:$0xff]  }
 0x2df   :  { %6203 = vmatprep.subr.bf16.mxu0 %v8461_v0  ;;  %v8531_v0 = vld [vmem:[#allocation2 + $0xd0] ss:$72 sps:$4 sm:$0xff]  }
 0x2e1   :  { %6081 = vmatpush1.bf16.msra.mxu1 %v8456_v13  ;;  %v8536_v13 = vld [vmem:[#allocation2 + $0x15c] ss:$72 sps:$4 sm:$0xff]  }
 0x2e2   :  { %6204 = vmatpush1.bf16.msra.mxu0 %v8459_v14  ;;  %6082 = vmatprep.subr.bf16.mxu1 %v8464_v19  ;;  %v8539_v14 = vld [vmem:[#allocation2 + $0x164] ss:$72 sps:$4 sm:$0xff]   ;;  %v8534_v19 = vld [vmem:[#allocation2 + $0x158] ss:$72 sps:$4 sm:$0xff]  }
 0x2e3   :  { %6205 = vmatprep.subr.bf16.mxu0 %v8467_v20  ;;  %v8537_v20 = vld [vmem:[#allocation2 + $0x160] ss:$72 sps:$4 sm:$0xff]  }
 0x2e5   :  { %6083 = vmatpush1.bf16.msra.mxu1 %v8462_v23  ;;  %v8542_v23 = vld [vmem:[#allocation2 + $0x1ec] ss:$72 sps:$4 sm:$0xff]  }
 0x2e6   :  { %6206 = vmatpush1.bf16.msra.mxu0 %v8465_v24  ;;  %6084 = vmatprep.subr.bf16.mxu1 %v8470_v25  ;;  %v8545_v24 = vld [vmem:[#allocation2 + $0x1f4] ss:$72 sps:$4 sm:$0xff]   ;;  %v8540_v25 = vld [vmem:[#allocation2 + $0x1e8] ss:$72 sps:$4 sm:$0xff]  }
 0x2e7   :  { %6207 = vmatprep.subr.bf16.mxu0 %v8473_v26  ;;  %v8543_v26 = vld [vmem:[#allocation2 + $0x1f0] ss:$72 sps:$4 sm:$0xff]  }
 0x2e9   :  { %6085 = vmatpush1.bf16.msra.mxu1 %v8468_v28  ;;  %v8548_v28 = vld [vmem:[#allocation2 + $0x27c] ss:$72 sps:$4 sm:$0xff]  }
 0x2ea   :  { %6208 = vmatpush1.bf16.msra.mxu0 %v8471_v29  ;;  %6086 = vmatprep.subr.bf16.mxu1 %v8476_v30  ;;  %v8551_v29 = vld [vmem:[#allocation2 + $0x284] ss:$72 sps:$4 sm:$0xff]  }
 0x2eb   :  { %6209 = vmatprep.subr.bf16.mxu0 %v8479_v31  ;;  %v9041_v30 = vld [vmem:[#allocation4 + $0x6] sm:$0xff] }
 0x2ec   :  { %v8549_v31 = vld [vmem:[#allocation2 + $0x280] ss:$72 sps:$4 sm:$0xff]  }
 0x2ed   :  { %6087 = vmatpush1.bf16.msra.mxu1 %v8474_v32  ;;  %v8554_v32 = vld [vmem:[#allocation2 + $0x30c] ss:$72 sps:$4 sm:$0xff]  }
 0x2ee   :  { %6210 = vmatpush1.bf16.msra.mxu0 %v8477_v33  ;;  %6088 = vmatprep.subr.bf16.mxu1 %v8482_v34  ;;  %v8557_v33 = vld [vmem:[#allocation2 + $0x314] ss:$72 sps:$4 sm:$0xff]   ;;  %v2805_v34 = vrot.slane %v9041_v30, %v8976_v55 }
 0x2ef   :  { %6211 = vmatprep.subr.bf16.mxu0 %v8485_v35  ;;  %v2813_v35 = vrot.slane %v9041_v30, %v8996_v41 }
 0x2f1   :  { %6089 = vmatpush1.bf16.msra.mxu1 %v8480_v36  ;;  %v8552_v36 = vld [vmem:[#allocation2 + $0x308] ss:$72 sps:$4 sm:$0xff]  }
 0x2f2   :  { %6212 = vmatpush1.bf16.msra.mxu0 %v8483_v37  ;;  %6090 = vmatprep.subr.bf16.mxu1 %v8488_v38  ;;  %v2809_v37 = vrot.slane %v9041_v30, %v8979_v56  ;;  %v2817_v38 = vrot.slane %v9041_v30, %v8999_v42 }
 0x2f3   :  { %6213 = vmatprep.subr.bf16.mxu0 %v8491_v39  ;;  %v8555_v39 = vld [vmem:[#allocation2 + $0x310] ss:$72 sps:$4 sm:$0xff]  }
 0x2f5   :  { %6091 = vmatpush1.bf16.msra.mxu1 %v8486_v40  ;;  %v8560_v40 = vld [vmem:[#allocation2 + $0x39c] ss:$72 sps:$4 sm:$0xff]  }
 0x2f6   :  { %6214 = vmatpush1.bf16.msra.mxu0 %v8489_v62  ;;  %6092 = vmatprep.subr.bf16.mxu1 %v8494_v16 }
 0x2f7   :  { %6215 = vmatprep.subr.bf16.mxu0 %v8497_v46  ;;  %v8563_v46 = vld [vmem:[#allocation2 + $0x3a4] ss:$72 sps:$4 sm:$0xff]  }
 0x2f9   :  { %6093 = vmatpush1.bf16.msra.mxu1 %v8492_v47 }
 0x2fa   :  { %6216 = vmatpush1.bf16.msra.mxu0 %v8495_v48  ;;  %6094 = vmatprep.subr.bf16.mxu1 %v8500_v51 }
 0x2fb   :  { %6217 = vmatprep.subr.bf16.mxu0 %v8503_v52 }
 0x2fd   :  { %6095 = vmatpush1.bf16.msra.mxu1 %v8498_v18 }
 0x2fe   :  { %6218 = vmatpush1.bf16.msra.mxu0 %v8501_v53  ;;  %6096 = vmatprep.subr.bf16.mxu1 %v8506_v27 }
 0x2ff   :  { %6219 = vmatprep.subr.bf16.mxu0 %v8509_v57 }
 0x301   :  { %6097 = vmatpush1.bf16.msra.mxu1 %v8504_v58  ;;  %v8558_v58 = vld [vmem:[#allocation2 + $0x398] ss:$72 sps:$4 sm:$0xff]  }
 0x302   :  { %6220 = vmatpush1.bf16.msra.mxu0 %v8507_v54  ;;  %6098 = vmatprep.subr.bf16.mxu1 %v8512_v59 }
 0x303   :  { %6221 = vmatprep.subr.bf16.mxu0 %v8515_v60  ;;  %v8561_v60 = vld [vmem:[#allocation2 + $0x3a0] ss:$72 sps:$4 sm:$0xff]  }
 0x305   :  { %6099 = vmatpush1.bf16.msra.mxu1 %v8510_v61  ;;  %v8566_v61 = vld [vmem:[#allocation2 + $0x42c] ss:$72 sps:$4 sm:$0xff]  }
 0x306   :  { %6222 = vmatpush1.bf16.msra.mxu0 %v8513_v1  ;;  %6100 = vmatprep.subr.bf16.mxu1 %v8518_v2 }
 0x307   :  { %6223 = vmatprep.subr.bf16.mxu0 %v8521_v4  ;;  %v8569_v4 = vld [vmem:[#allocation2 + $0x434] ss:$72 sps:$4 sm:$0xff]  }
 0x309   :  { %6101 = vmatpush1.bf16.msra.mxu1 %v8516_v5 }
 0x30a   :  { %6224 = vmatpush1.bf16.msra.mxu0 %v8519_v6  ;;  %6234 = vmatprep.subr.bf16.mxu1 %v8524_v7  ;;  %v8564_v7 = vld [vmem:[#allocation2 + $0x428] ss:$72 sps:$4 sm:$0xff]  }
 0x30b   :  { %6357 = vmatprep.subr.bf16.mxu0 %v8527_v8  ;;  %v8567_v8 = vld [vmem:[#allocation2 + $0x430] ss:$72 sps:$4 sm:$0xff]  }
 0x30c   :  { %6103 = vmatmul.mubr.bf16.vlgmr.msra.gmra.mrb[12].mxu1 %v9021_v22 }
 0x30d   :  { %6226 = vmatmul.mubr.bf16.vlgmr.msra.gmra.mrb[12].mxu0 %v9021_v22  ;;  %6235 = vmatpush1.bf16.msra.mxu1 %v8522_v9  ;;  %v8572_v9 = vld [vmem:[#allocation2 + $0x4bc] ss:$72 sps:$4 sm:$0xff]  }
 0x30e   :  { %6266 = vmatprep.mubr.bf16.mxu1 %v8987_v17  ;;  %6358 = vmatpush1.bf16.msra.mxu0 %v8525_v10 }
 0x30f   :  { %6389 = vmatprep.mubr.bf16.mxu0 %v8987_v17  ;;  %6236 = vmatprep.subr.bf16.mxu1 %v8530_v11  ;;  %v8546_v17 = vld [vmem:[#allocation2 + $0x278] ss:$72 sps:$4 sm:$0xff]   ;;  %v8575_v11 = vld [vmem:[#allocation2 + $0x4c4] ss:$72 sps:$4 sm:$0xff]  }
 0x310   :  { %6359 = vmatprep.subr.bf16.mxu0 %v8533_v63  ;;  %v8570_v63 = vld [vmem:[#allocation2 + $0x4b8] ss:$72 sps:$4 sm:$0xff]  }
 0x311   :  { %6237 = vmatpush1.bf16.msra.mxu1 %v8528_v12  ;;  %v8573_v12 = vld [vmem:[#allocation2 + $0x4c0] ss:$72 sps:$4 sm:$0xff]  }
 0x312   :  { %6360 = vmatpush1.bf16.msra.mxu0 %v8531_v0  ;;  %6238 = vmatprep.subr.bf16.mxu1 %v8536_v13  ;;  %v8578_v0 = vld [vmem:[#allocation2 + $0x54c] ss:$72 sps:$4 sm:$0xff]  }
 0x313   :  { %6361 = vmatprep.subr.bf16.mxu0 %v8539_v14  ;;  %v8581_v13 = vld [vmem:[#allocation2 + $0x554] ss:$72 sps:$4 sm:$0xff]   ;;  %v8576_v14 = vld [vmem:[#allocation2 + $0x548] ss:$72 sps:$4 sm:$0xff]  }
 0x315   :  { %6239 = vmatpush1.bf16.msra.mxu1 %v8534_v19  ;;  %v8579_v19 = vld [vmem:[#allocation2 + $0x550] ss:$72 sps:$4 sm:$0xff]  }
 0x316   :  { %6362 = vmatpush1.bf16.msra.mxu0 %v8537_v20  ;;  %6240 = vmatprep.subr.bf16.mxu1 %v8542_v23  ;;  %v8584_v20 = vld [vmem:[#allocation2 + $0x5dc] ss:$72 sps:$4 sm:$0xff]  }
 0x317   :  { %6363 = vmatprep.subr.bf16.mxu0 %v8545_v24  ;;  %v8587_v23 = vld [vmem:[#allocation2 + $0x5e4] ss:$72 sps:$4 sm:$0xff]   ;;  %v8582_v24 = vld [vmem:[#allocation2 + $0x5d8] ss:$72 sps:$4 sm:$0xff]  }
 0x319   :  { %6241 = vmatpush1.bf16.msra.mxu1 %v8540_v25  ;;  %v8585_v25 = vld [vmem:[#allocation2 + $0x5e0] ss:$72 sps:$4 sm:$0xff]  }
 0x31a   :  { %6364 = vmatpush1.bf16.msra.mxu0 %v8543_v26  ;;  %6242 = vmatprep.subr.bf16.mxu1 %v8548_v28  ;;  %v8590_v26 = vld [vmem:[#allocation2 + $0x66c] ss:$72 sps:$4 sm:$0xff]  }
 0x31b   :  { %6365 = vmatprep.subr.bf16.mxu0 %v8551_v29  ;;  %v8593_v28 = vld [vmem:[#allocation2 + $0x674] ss:$72 sps:$4 sm:$0xff]   ;;  %v8588_v29 = vld [vmem:[#allocation2 + $0x668] ss:$72 sps:$4 sm:$0xff]  }
 0x31d   :  { %6243 = vmatpush1.bf16.msra.mxu1 %v8546_v17  ;;  %v8591_v17 = vld [vmem:[#allocation2 + $0x670] ss:$72 sps:$4 sm:$0xff]  }
 0x31e   :  { %6366 = vmatpush1.bf16.msra.mxu0 %v8549_v31  ;;  %6244 = vmatprep.subr.bf16.mxu1 %v8554_v32  ;;  %v8596_v31 = vld [vmem:[#allocation2 + $0x6fc] ss:$72 sps:$4 sm:$0xff]  }
 0x31f   :  { %v5858_v62 = vpop.f32.mrb[8].mxu1  ;;  %v5981_v16 = vpop.f32.mrb[8].mxu0  ;;  %6367 = vmatprep.subr.bf16.mxu0 %v8557_v33  ;;  %v8599_v32 = vld [vmem:[#allocation2 + $0x704] ss:$72 sps:$4 sm:$0xff]   ;;  %v8594_v33 = vld [vmem:[#allocation2 + $0x6f8] ss:$72 sps:$4 sm:$0xff]  }
 0x320   :  { %v7428_v47 = vadd.f32 %v5858_v62, %v2805_v34  ;;  %v7430_v48 = vadd.f32 %v5981_v16, %v2813_v35  ;;  %v5860_v51 = vpop.f32.mrb[9].mxu1  ;;  %v5983_v52 = vpop.f32.mrb[9].mxu0  ;;  %v8597_v34 = vld [vmem:[#allocation2 + $0x700] ss:$72 sps:$4 sm:$0xff]   ;;  %v8602_v35 = vld [vmem:[#allocation2 + $0x78c] ss:$72 sps:$4 sm:$0xff]  }
 0x321   :  { %v7429_v18 = vadd.f32 %v5860_v51, %v2809_v37  ;;  %v7431_v53 = vadd.f32 %v5983_v52, %v2817_v38  ;;  %6245 = vmatpush1.bf16.msra.mxu1 %v8552_v36  ;;  %v5862_v27 = vpop.f32.mrb[10].mxu1  ;;  %v5985_v57 = vpop.f32.mrb[10].mxu0  ;;  %v8605_v36 = vld [vmem:[#allocation2 + $0x794] ss:$72 sps:$4 sm:$0xff]   ;;  %v8600_v37 = vld [vmem:[#allocation2 + $0x788] ss:$72 sps:$4 sm:$0xff]  }
 0x322   :  { %6368 = vmatpush1.bf16.msra.mxu0 %v8555_v39  ;;  %v5863_v54 = vpop.f32.mrb[11].mxu1  ;;  %v5986_v59 = vpop.f32.mrb[11].mxu0  ;;  %6246 = vmatprep.subr.bf16.mxu1 %v8560_v40  ;;  %v8603_v38 = vld [vmem:[#allocation2 + $0x790] ss:$72 sps:$4 sm:$0xff]   ;;  %v8608_v39 = vld [vmem:[#allocation2 + $0x81c] ss:$72 sps:$4 sm:$0xff]  }
 0x323   :  { %v6492_v1 = vcombine.low %v7428_v47, %v7429_v18  ;;  %v6493_v2 = vcombine.low %v7430_v48, %v7431_v53  ;;  %6369 = vmatprep.subr.bf16.mxu0 %v8563_v46  ;;  %v8611_v40 = vld [vmem:[#allocation2 + $0x824] ss:$72 sps:$4 sm:$0xff]   ;;  %v8606_v62 = vld [vmem:[#allocation2 + $0x818] ss:$72 sps:$4 sm:$0xff]   ;;  %v8617_v47 = vld [vmem:[#allocation2 + $0x8b4] ss:$72 sps:$4 sm:$0xff]  }
 0x324   :  { %v8609_v16 = vld [vmem:[#allocation2 + $0x820] ss:$72 sps:$4 sm:$0xff]   ;;  %v8614_v46 = vld [vmem:[#allocation2 + $0x8ac] ss:$72 sps:$4 sm:$0xff]   ;;  %v8615_v51 = vld [vmem:[#allocation2 + $0x8b0] ss:$72 sps:$4 sm:$0xff]  }
 0x325   :  { %v6500_v5 = vrot.slane %v6492_v1, %v8923_v49  ;;  %v6507_v6 = vrot.slane %v6493_v2, %v8923_v49  ;;  %6247 = vmatpush1.bf16.msra.mxu1 %v8558_v58  ;;  %v8612_v48 = vld [vmem:[#allocation2 + $0x8a8] ss:$72 sps:$4 sm:$0xff]   ;;  %v8620_v52 = vld [vmem:[#allocation2 + $0x93c] ss:$72 sps:$4 sm:$0xff]   ;;  %v8618_v53 = vld [vmem:[#allocation2 + $0x938] ss:$72 sps:$4 sm:$0xff]  }
 0x326   :  { %6370 = vmatpush1.bf16.msra.mxu0 %v8561_v60  ;;  %6248 = vmatprep.subr.bf16.mxu1 %v8566_v61  ;;  %v8623_v18 = vld [vmem:[#allocation2 + $0x944] ss:$72 sps:$4 sm:$0xff]   ;;  %v8621_v27 = vld [vmem:[#allocation2 + $0x940] ss:$72 sps:$4 sm:$0xff]   ;;  %v8629_v58 = vld [vmem:[#allocation2 + $0x9d4] ss:$72 sps:$4 sm:$0xff]  }
 0x327   :  { %v6508_v10 = vcombine.low %v6500_v5, %v6507_v6  ;;  %6371 = vmatprep.subr.bf16.mxu0 %v8569_v4  ;;  %v8626_v57 = vld [vmem:[#allocation2 + $0x9cc] ss:$72 sps:$4 sm:$0xff]   ;;  %v8624_v54 = vld [vmem:[#allocation2 + $0x9c8] ss:$72 sps:$4 sm:$0xff]   ;;  %v8632_v60 = vld [vmem:[#allocation2 + $0xa5c] ss:$72 sps:$4 sm:$0xff]  }
 0x328   :  { %v8627_v59 = vld [vmem:[#allocation2 + $0x9d0] ss:$72 sps:$4 sm:$0xff]   ;;  %v8635_v61 = vld [vmem:[#allocation2 + $0xa64] ss:$72 sps:$4 sm:$0xff]   ;;  %v8633_v2 = vld [vmem:[#allocation2 + $0xa60] ss:$72 sps:$4 sm:$0xff]  }
 0x329   :  { %6546 = vst [vmem:[%s9093_s3] sm:$0xff] %v6508_v10  ;;  %6249 = vmatpush1.bf16.msra.mxu1 %v8564_v7  ;;  %v8630_v1 = vld [vmem:[#allocation2 + $0xa58] ss:$72 sps:$4 sm:$0xff]   ;;  %v8638_v4 = vld [vmem:[#allocation2 + $0xaec] ss:$72 sps:$4 sm:$0xff]   ;;  %v8636_v5 = vld [vmem:[#allocation2 + $0xae8] ss:$72 sps:$4 sm:$0xff]  }
 0x32a   :  { %6372 = vmatpush1.bf16.msra.mxu0 %v8567_v8  ;;  %6250 = vmatprep.subr.bf16.mxu1 %v8572_v9  ;;  %v8639_v6 = vld [vmem:[#allocation2 + $0xaf0] ss:$72 sps:$4 sm:$0xff]   ;;  %v8644_v7 = vld [vmem:[#allocation2 + $0xb7c] ss:$72 sps:$4 sm:$0xff]   ;;  %v8645_v9 = vld [vmem:[#allocation2 + $0xb80] ss:$72 sps:$4 sm:$0xff]  }
 0x32b   :  { %6373 = vmatprep.subr.bf16.mxu0 %v8575_v11  ;;  %v8647_v8 = vld [vmem:[#allocation2 + $0xb84] ss:$72 sps:$4 sm:$0xff]   ;;  %v8653_v11 = vld [vmem:[#allocation2 + $0xc14] ss:$72 sps:$4 sm:$0xff]  }
 0x32c   :  { %v8650_v10 = vld [vmem:[#allocation2 + $0xc0c] ss:$72 sps:$4 sm:$0xff]  }
 0x32d   :  { %6251 = vmatpush1.bf16.msra.mxu1 %v8570_v63  ;;  %v8648_v63 = vld [vmem:[#allocation2 + $0xc08] ss:$72 sps:$4 sm:$0xff]  }
 0x32e   :  { %6374 = vmatpush1.bf16.msra.mxu0 %v8573_v12  ;;  %6252 = vmatprep.subr.bf16.mxu1 %v8578_v0  ;;  %v8651_v12 = vld [vmem:[#allocation2 + $0xc10] ss:$72 sps:$4 sm:$0xff]   ;;  %v8656_v0 = vld [vmem:[#allocation2 + $0xc9c] ss:$72 sps:$4 sm:$0xff]  }
 0x32f   :  { %6375 = vmatprep.subr.bf16.mxu0 %v8581_v13  ;;  %v8659_v13 = vld [vmem:[#allocation2 + $0xca4] ss:$72 sps:$4 sm:$0xff]  }
 0x331   :  { %6253 = vmatpush1.bf16.msra.mxu1 %v8576_v14  ;;  %v8654_v14 = vld [vmem:[#allocation2 + $0xc98] ss:$72 sps:$4 sm:$0xff]  }
 0x332   :  { %6376 = vmatpush1.bf16.msra.mxu0 %v8579_v19  ;;  %6254 = vmatprep.subr.bf16.mxu1 %v8584_v20  ;;  %v8657_v19 = vld [vmem:[#allocation2 + $0xca0] ss:$72 sps:$4 sm:$0xff]   ;;  %v8662_v20 = vld [vmem:[#allocation2 + $0xd2c] ss:$72 sps:$4 sm:$0xff]  }
 0x333   :  { %6377 = vmatprep.subr.bf16.mxu0 %v8587_v23  ;;  %v8665_v23 = vld [vmem:[#allocation2 + $0xd34] ss:$72 sps:$4 sm:$0xff]  }
 0x335   :  { %6255 = vmatpush1.bf16.msra.mxu1 %v8582_v24  ;;  %v8660_v24 = vld [vmem:[#allocation2 + $0xd28] ss:$72 sps:$4 sm:$0xff]  }
 0x336   :  { %6378 = vmatpush1.bf16.msra.mxu0 %v8585_v25  ;;  %6256 = vmatprep.subr.bf16.mxu1 %v8590_v26  ;;  %v8663_v25 = vld [vmem:[#allocation2 + $0xd30] ss:$72 sps:$4 sm:$0xff]   ;;  %v8668_v26 = vld [vmem:[#allocation2 + $0xdbc] ss:$72 sps:$4 sm:$0xff]  }
 0x337   :  { %6379 = vmatprep.subr.bf16.mxu0 %v8593_v28  ;;  %v8671_v28 = vld [vmem:[#allocation2 + $0xdc4] ss:$72 sps:$4 sm:$0xff]  }
 0x339   :  { %6257 = vmatpush1.bf16.msra.mxu1 %v8588_v29  ;;  %v8666_v29 = vld [vmem:[#allocation2 + $0xdb8] ss:$72 sps:$4 sm:$0xff]  }
 0x33a   :  { %6380 = vmatpush1.bf16.msra.mxu0 %v8591_v17  ;;  %6258 = vmatprep.subr.bf16.mxu1 %v8596_v31  ;;  %v8669_v17 = vld [vmem:[#allocation2 + $0xdc0] ss:$72 sps:$4 sm:$0xff]   ;;  %v8674_v31 = vld [vmem:[#allocation2 + $0xe4c] ss:$72 sps:$4 sm:$0xff]  }
 0x33b   :  { %6381 = vmatprep.subr.bf16.mxu0 %v8599_v32  ;;  %v8677_v32 = vld [vmem:[#allocation2 + $0xe54] ss:$72 sps:$4 sm:$0xff]  }
 0x33d   :  { %6259 = vmatpush1.bf16.msra.mxu1 %v8594_v33  ;;  %v8672_v33 = vld [vmem:[#allocation2 + $0xe48] ss:$72 sps:$4 sm:$0xff]  }
 0x33e   :  { %6382 = vmatpush1.bf16.msra.mxu0 %v8597_v34  ;;  %6260 = vmatprep.subr.bf16.mxu1 %v8602_v35  ;;  %v8675_v34 = vld [vmem:[#allocation2 + $0xe50] ss:$72 sps:$4 sm:$0xff]   ;;  %v8680_v35 = vld [vmem:[#allocation2 + $0xedc] ss:$72 sps:$4 sm:$0xff]  }
 0x33f   :  { %6383 = vmatprep.subr.bf16.mxu0 %v8605_v36  ;;  %v8683_v36 = vld [vmem:[#allocation2 + $0xee4] ss:$72 sps:$4 sm:$0xff]  }
 0x341   :  { %6261 = vmatpush1.bf16.msra.mxu1 %v8600_v37  ;;  %v8678_v37 = vld [vmem:[#allocation2 + $0xed8] ss:$72 sps:$4 sm:$0xff]  }
 0x342   :  { %6384 = vmatpush1.bf16.msra.mxu0 %v8603_v38  ;;  %6262 = vmatprep.subr.bf16.mxu1 %v8608_v39  ;;  %v8681_v38 = vld [vmem:[#allocation2 + $0xee0] ss:$72 sps:$4 sm:$0xff]   ;;  %v8686_v39 = vld [vmem:[#allocation2 + $0xf6c] ss:$72 sps:$4 sm:$0xff]  }
 0x343   :  { %6385 = vmatprep.subr.bf16.mxu0 %v8611_v40  ;;  %v8689_v40 = vld [vmem:[#allocation2 + $0xf74] ss:$72 sps:$4 sm:$0xff]  }
 0x345   :  { %6263 = vmatpush1.bf16.msra.mxu1 %v8606_v62  ;;  %v8684_v62 = vld [vmem:[#allocation2 + $0xf68] ss:$72 sps:$4 sm:$0xff]  }
 0x346   :  { %6386 = vmatpush1.bf16.msra.mxu0 %v8609_v16  ;;  %6264 = vmatprep.subr.bf16.mxu1 %v8614_v46  ;;  %v8687_v16 = vld [vmem:[#allocation2 + $0xf70] ss:$72 sps:$4 sm:$0xff]   ;;  %v8692_v46 = vld [vmem:[#allocation2 + $0xffc] ss:$72 sps:$4 sm:$0xff]  }
 0x347   :  { %6387 = vmatprep.subr.bf16.mxu0 %v8617_v47  ;;  %v8695_v47 = vld [vmem:[#allocation2 + $0x1004] ss:$72 sps:$4 sm:$0xff]  }
 0x349   :  { %6265 = vmatpush1.bf16.msra.mxu1 %v8612_v48  ;;  %v8690_v48 = vld [vmem:[#allocation2 + $0xff8] ss:$72 sps:$4 sm:$0xff]  }
 0x34a   :  { %6388 = vmatpush1.bf16.msra.mxu0 %v8615_v51  ;;  %6275 = vmatprep.subr.bf16.mxu1 %v8620_v52  ;;  %v8693_v51 = vld [vmem:[#allocation2 + $0x1000] ss:$72 sps:$4 sm:$0xff]   ;;  %v8698_v52 = vld [vmem:[#allocation2 + $0x108c] ss:$72 sps:$4 sm:$0xff]  }
 0x34b   :  { %6398 = vmatprep.subr.bf16.mxu0 %v8623_v18  ;;  %v8701_v18 = vld [vmem:[#allocation2 + $0x1094] ss:$72 sps:$4 sm:$0xff]  }
 0x34c   :  { %6267 = vmatmul.mubr.bf16.vlgmr.msra.gmra.mrb[16].mxu1 %v8989_v21 }
 0x34d   :  { %6390 = vmatmul.mubr.bf16.vlgmr.msra.gmra.mrb[16].mxu0 %v8989_v21  ;;  %6276 = vmatpush1.bf16.msra.mxu1 %v8618_v53  ;;  %v8641_v21 = vld [vmem:[#allocation2 + $0xaf4] ss:$72 sps:$4 sm:$0xff]   ;;  %v8696_v53 = vld [vmem:[#allocation2 + $0x1088] ss:$72 sps:$4 sm:$0xff]  }
 0x34e   :  { %6307 = vmatprep.mubr.bf16.mxu1 %v9005_v3  ;;  %6399 = vmatpush1.bf16.msra.mxu0 %v8621_v27  ;;  %v8699_v27 = vld [vmem:[#allocation2 + $0x1090] ss:$72 sps:$4 sm:$0xff]  }
 0x34f   :  { %6430 = vmatprep.mubr.bf16.mxu0 %v9005_v3  ;;  %6277 = vmatprep.subr.bf16.mxu1 %v8626_v57  ;;  %v8642_v3 = vld [vmem:[#allocation2 + $0xb78] ss:$72 sps:$4 sm:$0xff]   ;;  %v8704_v57 = vld [vmem:[#allocation2 + $0x111c] ss:$72 sps:$4 sm:$0xff]  }
 0x350   :  { %6400 = vmatprep.subr.bf16.mxu0 %v8629_v58  ;;  %v8707_v58 = vld [vmem:[#allocation2 + $0x1124] ss:$72 sps:$4 sm:$0xff]  }
 0x351   :  { %6278 = vmatpush1.bf16.msra.mxu1 %v8624_v54  ;;  %v8702_v54 = vld [vmem:[#allocation2 + $0x1118] ss:$72 sps:$4 sm:$0xff]  }
 0x352   :  { %6401 = vmatpush1.bf16.msra.mxu0 %v8627_v59  ;;  %6279 = vmatprep.subr.bf16.mxu1 %v8632_v60  ;;  %v8705_v59 = vld [vmem:[#allocation2 + $0x1120] ss:$72 sps:$4 sm:$0xff]   ;;  %v8710_v60 = vld [vmem:[#allocation2 + $0x11ac] ss:$72 sps:$4 sm:$0xff]  }
 0x353   :  { %6402 = vmatprep.subr.bf16.mxu0 %v8635_v61  ;;  %v8713_v61 = vld [vmem:[#allocation2 + $0x11b4] ss:$72 sps:$4 sm:$0xff]  }
 0x355   :  { %6280 = vmatpush1.bf16.msra.mxu1 %v8630_v1  ;;  %v8708_v1 = vld [vmem:[#allocation2 + $0x11a8] ss:$72 sps:$4 sm:$0xff]  }
 0x356   :  { %6403 = vmatpush1.bf16.msra.mxu0 %v8633_v2  ;;  %6281 = vmatprep.subr.bf16.mxu1 %v8638_v4  ;;  %v8711_v2 = vld [vmem:[#allocation2 + $0x11b0] ss:$72 sps:$4 sm:$0xff]   ;;  %v8716_v4 = vld [vmem:[#allocation2 + $0x123c] ss:$72 sps:$4 sm:$0xff]  }
 0x357   :  { %6404 = vmatprep.subr.bf16.mxu0 %v8641_v21  ;;  %v8719_v21 = vld [vmem:[#allocation2 + $0x1244] ss:$72 sps:$4 sm:$0xff]  }
 0x359   :  { %6282 = vmatpush1.bf16.msra.mxu1 %v8636_v5  ;;  %v8714_v5 = vld [vmem:[#allocation2 + $0x1238] ss:$72 sps:$4 sm:$0xff]  }
 0x35a   :  { %6405 = vmatpush1.bf16.msra.mxu0 %v8639_v6  ;;  %6283 = vmatprep.subr.bf16.mxu1 %v8644_v7  ;;  %v8717_v6 = vld [vmem:[#allocation2 + $0x1240] ss:$72 sps:$4 sm:$0xff]   ;;  %v8722_v7 = vld [vmem:[#allocation2 + $0x12cc] ss:$72 sps:$4 sm:$0xff]  }
 0x35b   :  { %6406 = vmatprep.subr.bf16.mxu0 %v8647_v8  ;;  %v8725_v8 = vld [vmem:[#allocation2 + $0x12d4] ss:$72 sps:$4 sm:$0xff]  }
 0x35d   :  { %6284 = vmatpush1.bf16.msra.mxu1 %v8642_v3  ;;  %v8720_v3 = vld [vmem:[#allocation2 + $0x12c8] ss:$72 sps:$4 sm:$0xff]  }
 0x35e   :  { %6407 = vmatpush1.bf16.msra.mxu0 %v8645_v9  ;;  %6285 = vmatprep.subr.bf16.mxu1 %v8650_v10  ;;  %v8723_v9 = vld [vmem:[#allocation2 + $0x12d0] ss:$72 sps:$4 sm:$0xff]   ;;  %v8728_v10 = vld [vmem:[#allocation2 + $0x135c] ss:$72 sps:$4 sm:$0xff]  }
 0x35f   :  { %6408 = vmatprep.subr.bf16.mxu0 %v8653_v11  ;;  %v8731_v11 = vld [vmem:[#allocation2 + $0x1364] ss:$72 sps:$4 sm:$0xff]  }
 0x361   :  { %6286 = vmatpush1.bf16.msra.mxu1 %v8648_v63  ;;  %v8726_v63 = vld [vmem:[#allocation2 + $0x1358] ss:$72 sps:$4 sm:$0xff]  }
 0x362   :  { %6409 = vmatpush1.bf16.msra.mxu0 %v8651_v12  ;;  %6287 = vmatprep.subr.bf16.mxu1 %v8656_v0  ;;  %v8729_v12 = vld [vmem:[#allocation2 + $0x1360] ss:$72 sps:$4 sm:$0xff]   ;;  %v8734_v0 = vld [vmem:[#allocation2 + $0x13ec] ss:$72 sps:$4 sm:$0xff]  }
 0x363   :  { %6410 = vmatprep.subr.bf16.mxu0 %v8659_v13  ;;  %v8732_v13 = vld [vmem:[#allocation2 + $0x13e8] ss:$72 sps:$4 sm:$0xff]  }
 0x365   :  { %6288 = vmatpush1.bf16.msra.mxu1 %v8654_v14  ;;  %v8735_v14 = vld [vmem:[#allocation2 + $0x13f0] ss:$72 sps:$4 sm:$0xff]  }
 0x366   :  { %6411 = vmatpush1.bf16.msra.mxu0 %v8657_v19  ;;  %6289 = vmatprep.subr.bf16.mxu1 %v8662_v20  ;;  %v8740_v19 = vld [vmem:[#allocation2 + $0x147c] ss:$72 sps:$4 sm:$0xff]  }
 0x367   :  { %6412 = vmatprep.subr.bf16.mxu0 %v8665_v23  ;;  %v8743_v20 = vld [vmem:[#allocation2 + $0x1484] ss:$72 sps:$4 sm:$0xff]   ;;  %v8741_v23 = vld [vmem:[#allocation2 + $0x1480] ss:$72 sps:$4 sm:$0xff]  }
 0x369   :  { %6290 = vmatpush1.bf16.msra.mxu1 %v8660_v24  ;;  %v8746_v24 = vld [vmem:[#allocation2 + $0x150c] ss:$72 sps:$4 sm:$0xff]  }
 0x36a   :  { %6413 = vmatpush1.bf16.msra.mxu0 %v8663_v25  ;;  %6291 = vmatprep.subr.bf16.mxu1 %v8668_v26  ;;  %v8749_v25 = vld [vmem:[#allocation2 + $0x1514] ss:$72 sps:$4 sm:$0xff]   ;;  %v8744_v26 = vld [vmem:[#allocation2 + $0x1508] ss:$72 sps:$4 sm:$0xff]  }
 0x36b   :  { %6414 = vmatprep.subr.bf16.mxu0 %v8671_v28  ;;  %v8747_v28 = vld [vmem:[#allocation2 + $0x1510] ss:$72 sps:$4 sm:$0xff]  }
 0x36d   :  { %6292 = vmatpush1.bf16.msra.mxu1 %v8666_v29  ;;  %v8752_v29 = vld [vmem:[#allocation2 + $0x159c] ss:$72 sps:$4 sm:$0xff]  }
 0x36e   :  { %6415 = vmatpush1.bf16.msra.mxu0 %v8669_v17  ;;  %6293 = vmatprep.subr.bf16.mxu1 %v8674_v31  ;;  %v8755_v17 = vld [vmem:[#allocation2 + $0x15a4] ss:$72 sps:$4 sm:$0xff]   ;;  %v8750_v31 = vld [vmem:[#allocation2 + $0x1598] ss:$72 sps:$4 sm:$0xff]  }
 0x36f   :  { %6416 = vmatprep.subr.bf16.mxu0 %v8677_v32  ;;  %v8753_v32 = vld [vmem:[#allocation2 + $0x15a0] ss:$72 sps:$4 sm:$0xff]  }
 0x371   :  { %6294 = vmatpush1.bf16.msra.mxu1 %v8672_v33  ;;  %v8758_v33 = vld [vmem:[#allocation2 + $0x162c] ss:$72 sps:$4 sm:$0xff]  }
 0x372   :  { %6417 = vmatpush1.bf16.msra.mxu0 %v8675_v34  ;;  %6295 = vmatprep.subr.bf16.mxu1 %v8680_v35  ;;  %v8761_v34 = vld [vmem:[#allocation2 + $0x1634] ss:$72 sps:$4 sm:$0xff]   ;;  %v8756_v35 = vld [vmem:[#allocation2 + $0x1628] ss:$72 sps:$4 sm:$0xff]  }
 0x373   :  { %6418 = vmatprep.subr.bf16.mxu0 %v8683_v36  ;;  %v8759_v36 = vld [vmem:[#allocation2 + $0x1630] ss:$72 sps:$4 sm:$0xff]  }
 0x375   :  { %6296 = vmatpush1.bf16.msra.mxu1 %v8678_v37  ;;  %v8764_v37 = vld [vmem:[#allocation2 + $0x16bc] ss:$72 sps:$4 sm:$0xff]  }
 0x376   :  { %6419 = vmatpush1.bf16.msra.mxu0 %v8681_v38  ;;  %6297 = vmatprep.subr.bf16.mxu1 %v8686_v39  ;;  %v8767_v38 = vld [vmem:[#allocation2 + $0x16c4] ss:$72 sps:$4 sm:$0xff]   ;;  %v8762_v39 = vld [vmem:[#allocation2 + $0x16b8] ss:$72 sps:$4 sm:$0xff]  }
 0x377   :  { %6420 = vmatprep.subr.bf16.mxu0 %v8689_v40  ;;  %v8765_v40 = vld [vmem:[#allocation2 + $0x16c0] ss:$72 sps:$4 sm:$0xff]  }
 0x379   :  { %6298 = vmatpush1.bf16.msra.mxu1 %v8684_v62  ;;  %v8770_v62 = vld [vmem:[#allocation2 + $0x174c] ss:$72 sps:$4 sm:$0xff]  }
 0x37a   :  { %6421 = vmatpush1.bf16.msra.mxu0 %v8687_v16  ;;  %6299 = vmatprep.subr.bf16.mxu1 %v8692_v46  ;;  %v8773_v16 = vld [vmem:[#allocation2 + $0x1754] ss:$72 sps:$4 sm:$0xff]   ;;  %v8768_v46 = vld [vmem:[#allocation2 + $0x1748] ss:$72 sps:$4 sm:$0xff]  }
 0x37b   :  { %6422 = vmatprep.subr.bf16.mxu0 %v8695_v47  ;;  %v8771_v47 = vld [vmem:[#allocation2 + $0x1750] ss:$72 sps:$4 sm:$0xff]  }
 0x37d   :  { %6300 = vmatpush1.bf16.msra.mxu1 %v8690_v48  ;;  %v8776_v48 = vld [vmem:[#allocation2 + $0x17dc] ss:$72 sps:$4 sm:$0xff]  }
 0x37e   :  { %6423 = vmatpush1.bf16.msra.mxu0 %v8693_v51  ;;  %6301 = vmatprep.subr.bf16.mxu1 %v8698_v52  ;;  %v8779_v51 = vld [vmem:[#allocation2 + $0x17e4] ss:$72 sps:$4 sm:$0xff]   ;;  %v8774_v52 = vld [vmem:[#allocation2 + $0x17d8] ss:$72 sps:$4 sm:$0xff]  }
 0x37f   :  { %6424 = vmatprep.subr.bf16.mxu0 %v8701_v18  ;;  %v8777_v18 = vld [vmem:[#allocation2 + $0x17e0] ss:$72 sps:$4 sm:$0xff]  }
 0x381   :  { %6302 = vmatpush1.bf16.msra.mxu1 %v8696_v53  ;;  %v8782_v53 = vld [vmem:[#allocation2 + $0x186c] ss:$72 sps:$4 sm:$0xff]  }
 0x382   :  { %6425 = vmatpush1.bf16.msra.mxu0 %v8699_v27  ;;  %6303 = vmatprep.subr.bf16.mxu1 %v8704_v57  ;;  %v8785_v27 = vld [vmem:[#allocation2 + $0x1874] ss:$72 sps:$4 sm:$0xff]   ;;  %v8780_v57 = vld [vmem:[#allocation2 + $0x1868] ss:$72 sps:$4 sm:$0xff]  }
 0x383   :  { %6426 = vmatprep.subr.bf16.mxu0 %v8707_v58  ;;  %v8783_v58 = vld [vmem:[#allocation2 + $0x1870] ss:$72 sps:$4 sm:$0xff]  }
 0x385   :  { %6304 = vmatpush1.bf16.msra.mxu1 %v8702_v54  ;;  %v8788_v54 = vld [vmem:[#allocation2 + $0x18fc] ss:$72 sps:$4 sm:$0xff]  }
 0x386   :  { %6427 = vmatpush1.bf16.msra.mxu0 %v8705_v59  ;;  %6305 = vmatprep.subr.bf16.mxu1 %v8710_v60  ;;  %v8791_v59 = vld [vmem:[#allocation2 + $0x1904] ss:$72 sps:$4 sm:$0xff]   ;;  %v8786_v60 = vld [vmem:[#allocation2 + $0x18f8] ss:$72 sps:$4 sm:$0xff]  }
 0x387   :  { %6428 = vmatprep.subr.bf16.mxu0 %v8713_v61  ;;  %v8789_v61 = vld [vmem:[#allocation2 + $0x1900] ss:$72 sps:$4 sm:$0xff]  }
 0x389   :  { %6306 = vmatpush1.bf16.msra.mxu1 %v8708_v1  ;;  %v8794_v1 = vld [vmem:[#allocation2 + $0x198c] ss:$72 sps:$4 sm:$0xff]  }
 0x38a   :  { %6429 = vmatpush1.bf16.msra.mxu0 %v8711_v2  ;;  %6316 = vmatprep.subr.bf16.mxu1 %v8716_v4  ;;  %v8797_v2 = vld [vmem:[#allocation2 + $0x1994] ss:$72 sps:$4 sm:$0xff]   ;;  %v8792_v4 = vld [vmem:[#allocation2 + $0x1988] ss:$72 sps:$4 sm:$0xff]  }
 0x38b   :  { %6439 = vmatprep.subr.bf16.mxu0 %v8719_v21  ;;  %v8795_v21 = vld [vmem:[#allocation2 + $0x1990] ss:$72 sps:$4 sm:$0xff]  }
 0x38c   :  { %6308 = vmatmul.mubr.bf16.vlgmr.msra.gmra.mrb[16].mxu1 %v9007_v50 }
 0x38d   :  { %6431 = vmatmul.mubr.bf16.vlgmr.msra.gmra.mrb[16].mxu0 %v9007_v50  ;;  %6317 = vmatpush1.bf16.msra.mxu1 %v8714_v5  ;;  %v8737_v50 = vld [vmem:[#allocation2 + $0x13f4] ss:$72 sps:$4 sm:$0xff]  }
 0x38e   :  { %6348 = vmatprep.mubr.bf16.mxu1 %v9019_v15  ;;  %6440 = vmatpush1.bf16.msra.mxu0 %v8717_v6  ;;  %v8800_v5 = vld [vmem:[#allocation2 + $0x1a1c] ss:$72 sps:$4 sm:$0xff]  }
 0x38f   :  { %6471 = vmatprep.mubr.bf16.mxu0 %v9019_v15  ;;  %6318 = vmatprep.subr.bf16.mxu1 %v8722_v7  ;;  %v8738_v15 = vld [vmem:[#allocation2 + $0x1478] ss:$72 sps:$4 sm:$0xff]   ;;  %v8803_v6 = vld [vmem:[#allocation2 + $0x1a24] ss:$72 sps:$4 sm:$0xff]  }
 0x390   :  { %6441 = vmatprep.subr.bf16.mxu0 %v8725_v8  ;;  %v8798_v7 = vld [vmem:[#allocation2 + $0x1a18] ss:$72 sps:$4 sm:$0xff]  }
 0x391   :  { %6319 = vmatpush1.bf16.msra.mxu1 %v8720_v3  ;;  %v8801_v8 = vld [vmem:[#allocation2 + $0x1a20] ss:$72 sps:$4 sm:$0xff]   ;;  %v8806_v3 = vld [vmem:[#allocation2 + $0x1aac] ss:$72 sps:$4 sm:$0xff]  }
 0x392   :  { %6442 = vmatpush1.bf16.msra.mxu0 %v8723_v9  ;;  %6320 = vmatprep.subr.bf16.mxu1 %v8728_v10  ;;  %v8809_v9 = vld [vmem:[#allocation2 + $0x1ab4] ss:$72 sps:$4 sm:$0xff]   ;;  %v8804_v10 = vld [vmem:[#allocation2 + $0x1aa8] ss:$72 sps:$4 sm:$0xff]  }
 0x393   :  { %6443 = vmatprep.subr.bf16.mxu0 %v8731_v11  ;;  %v8807_v11 = vld [vmem:[#allocation2 + $0x1ab0] ss:$72 sps:$4 sm:$0xff]  }
 0x395   :  { %6321 = vmatpush1.bf16.msra.mxu1 %v8726_v63  ;;  %v2828_v63 = vsub.s32 6, %v8920_v43 }
 0x396   :  { %6444 = vmatpush1.bf16.msra.mxu0 %v8729_v12  ;;  %6322 = vmatprep.subr.bf16.mxu1 %v8734_v0  ;;  %v2832_v12 = vsub.s32 7, %v8920_v43  ;;  %v2821_v0 = vrot.slane %v9041_v30, %v389_v44 }
 0x397   :  { %6445 = vmatprep.subr.bf16.mxu0 %v8737_v50  ;;  %v2829_v50 = vrot.slane %v9041_v30, %v2828_v63 }
 0x399   :  { %6323 = vmatpush1.bf16.msra.mxu1 %v8732_v13  ;;  %v2825_v13 = vrot.slane %v9041_v30, %v393_v45 }
 0x39a   :  { %6446 = vmatpush1.bf16.msra.mxu0 %v8735_v14  ;;  %6324 = vmatprep.subr.bf16.mxu1 %v8740_v19  ;;  %v2833_v14 = vrot.slane %v9041_v30, %v2832_v12  ;;  %v2793_v30 = vld [vmem:[#allocation4 + $0xe] sm:$0xf] }
 0x39b   :  { %6447 = vmatprep.subr.bf16.mxu0 %v8743_v20 }
 0x39d   :  { %6325 = vmatpush1.bf16.msra.mxu1 %v8738_v15 }
 0x39e   :  { %6448 = vmatpush1.bf16.msra.mxu0 %v8741_v23  ;;  %6326 = vmatprep.subr.bf16.mxu1 %v8746_v24 }
 0x39f   :  { %6449 = vmatprep.subr.bf16.mxu0 %v8749_v25 }
 0x3a1   :  { %6327 = vmatpush1.bf16.msra.mxu1 %v8744_v26 }
 0x3a2   :  { %6450 = vmatpush1.bf16.msra.mxu0 %v8747_v28  ;;  %6328 = vmatprep.subr.bf16.mxu1 %v8752_v29 }
 0x3a3   :  { %6451 = vmatprep.subr.bf16.mxu0 %v8755_v17 }
 0x3a5   :  { %6329 = vmatpush1.bf16.msra.mxu1 %v8750_v31 }
 0x3a6   :  { %6452 = vmatpush1.bf16.msra.mxu0 %v8753_v32  ;;  %6330 = vmatprep.subr.bf16.mxu1 %v8758_v33 }
 0x3a7   :  { %6453 = vmatprep.subr.bf16.mxu0 %v8761_v34  ;;  %v2837_v34 = vrot.slane %v2793_v30, %v8976_v55 }
 0x3a9   :  { %6331 = vmatpush1.bf16.msra.mxu1 %v8756_v35  ;;  %v2845_v35 = vrot.slane %v2793_v30, %v8996_v41 }
 0x3aa   :  { %6454 = vmatpush1.bf16.msra.mxu0 %v8759_v36  ;;  %6332 = vmatprep.subr.bf16.mxu1 %v8764_v37  ;;  %v2841_v36 = vrot.slane %v2793_v30, %v8979_v56  ;;  %v2849_v37 = vrot.slane %v2793_v30, %v8999_v42 }
 0x3ab   :  { %6455 = vmatprep.subr.bf16.mxu0 %v8767_v38 }
 0x3ad   :  { %6333 = vmatpush1.bf16.msra.mxu1 %v8762_v39 }
 0x3ae   :  { %6456 = vmatpush1.bf16.msra.mxu0 %v8765_v40  ;;  %6334 = vmatprep.subr.bf16.mxu1 %v8770_v62 }
 0x3af   :  { %6457 = vmatprep.subr.bf16.mxu0 %v8773_v16 }
 0x3b1   :  { %6335 = vmatpush1.bf16.msra.mxu1 %v8768_v46 }
 0x3b2   :  { %6458 = vmatpush1.bf16.msra.mxu0 %v8771_v47  ;;  %6336 = vmatprep.subr.bf16.mxu1 %v8776_v48 }
 0x3b3   :  { %6459 = vmatprep.subr.bf16.mxu0 %v8779_v51 }
 0x3b5   :  { %6337 = vmatpush1.bf16.msra.mxu1 %v8774_v52 }
 0x3b6   :  { %6460 = vmatpush1.bf16.msra.mxu0 %v8777_v18  ;;  %6338 = vmatprep.subr.bf16.mxu1 %v8782_v53 }
 0x3b7   :  { %6461 = vmatprep.subr.bf16.mxu0 %v8785_v27 }
 0x3b9   :  { %6339 = vmatpush1.bf16.msra.mxu1 %v8780_v57 }
 0x3ba   :  { %6462 = vmatpush1.bf16.msra.mxu0 %v8783_v58  ;;  %6340 = vmatprep.subr.bf16.mxu1 %v8788_v54 }
 0x3bb   :  { %6463 = vmatprep.subr.bf16.mxu0 %v8791_v59 }
 0x3bd   :  { %6341 = vmatpush1.bf16.msra.mxu1 %v8786_v60 }
 0x3be   :  { %6464 = vmatpush1.bf16.msra.mxu0 %v8789_v61  ;;  %6342 = vmatprep.subr.bf16.mxu1 %v8794_v1 }
 0x3bf   :  { %6465 = vmatprep.subr.bf16.mxu0 %v8797_v2 }
 0x3c1   :  { %6343 = vmatpush1.bf16.msra.mxu1 %v8792_v4 }
 0x3c2   :  { %6466 = vmatpush1.bf16.msra.mxu0 %v8795_v21  ;;  %6344 = vmatprep.subr.bf16.mxu1 %v8800_v5 }
 0x3c3   :  { %6467 = vmatprep.subr.bf16.mxu0 %v8803_v6 }
 0x3c5   :  { %6345 = vmatpush1.bf16.msra.mxu1 %v8798_v7 }
 0x3c6   :  { %6468 = vmatpush1.bf16.msra.mxu0 %v8801_v8  ;;  %6346 = vmatprep.subr.bf16.mxu1 %v8806_v3 }
 0x3c7   :  { %6469 = vmatprep.subr.bf16.mxu0 %v8809_v9 }
 0x3c9   :  { %6347 = vmatpush1.bf16.msra.mxu1 %v8804_v10 }
 0x3ca   :  { %6470 = vmatpush1.bf16.msra.mxu0 %v8807_v11 }
 0x3cc   :  { %6349 = vmatmul.mubr.bf16.vlgmr.msra.gmra.mrb[16].mxu1 %v9021_v22 }
 0x3cd   :  { %6472 = vmatmul.mubr.bf16.vlgmr.msra.gmra.mrb[16].mxu0 %v9021_v22 }
 0x3df   :  { %v6104_v19 = vpop.f32.mrb[12].mxu1 }
 0x3e0   :  { %v7432_v20 = vadd.f32 %v6104_v19, %v2821_v0  ;;  %v6227_v15 = vpop.f32.mrb[12].mxu0  ;;  %v6106_v22 = vpop.f32.mrb[13].mxu1 }
 0x3e1   :  { %v7434_v23 = vadd.f32 %v6227_v15, %v2829_v50  ;;  %v7433_v24 = vadd.f32 %v6106_v22, %v2825_v13  ;;  %v6229_v25 = vpop.f32.mrb[13].mxu0  ;;  %v6108_v26 = vpop.f32.mrb[14].mxu1 }
 0x3e2   :  { %v7435_v28 = vadd.f32 %v6229_v25, %v2833_v14  ;;  %v6231_v29 = vpop.f32.mrb[14].mxu0  ;;  %v6109_v17 = vpop.f32.mrb[15].mxu1 }
 0x3e3   :  { %v6509_v44 = vcombine.low %v7432_v20, %v7433_v24  ;;  %v6232_v31 = vpop.f32.mrb[15].mxu0 }
 0x3e4   :  { %v6510_v32 = vcombine.low %v7434_v23, %v7435_v28 }
 0x3e5   :  { %v6517_v43 = vrot.slane %v6509_v44, %v8923_v49 }
 0x3e6   :  { %v6524_v45 = vrot.slane %v6510_v32, %v8923_v49 }
 0x3e8   :  { %v6525_v33 = vcombine.low %v6517_v43, %v6524_v45 }
 0x3ea   :  { %6547 = vst [vmem:[%s9093_s3 + $0x8] sm:$0xff] %v6525_v33 }
 0x49f   :  { %v6350_v38 = vpop.f32.mrb[16].mxu1 }
 0x4a0   :  { %v7436_v39 = vadd.f32 %v6350_v38, %v2837_v34  ;;  %v6473_v40 = vpop.f32.mrb[16].mxu0  ;;  %v6352_v62 = vpop.f32.mrb[17].mxu1 }
 0x4a1   :  { %v7438_v16 = vadd.f32 %v6473_v40, %v2845_v35  ;;  %v7437_v46 = vadd.f32 %v6352_v62, %v2841_v36  ;;  %v6475_v47 = vpop.f32.mrb[17].mxu0  ;;  %v6354_v48 = vpop.f32.mrb[18].mxu1 }
 0x4a2   :  { %v7439_v51 = vadd.f32 %v6475_v47, %v2849_v37  ;;  %v6477_v52 = vpop.f32.mrb[18].mxu0  ;;  %v6355_v18 = vpop.f32.mrb[19].mxu1 }
 0x4a3   :  { %v6526_v53 = vcombine.low %v7436_v39, %v7437_v46  ;;  %v6478_v27 = vpop.f32.mrb[19].mxu0 }
 0x4a4   :  { %v6527_v55 = vcombine.low %v7438_v16, %v7439_v51 }
 0x4a5   :  { %v6534_v41 = vrot.slane %v6526_v53, %v8923_v49 }
 0x4a6   :  { %v6541_v56 = vrot.slane %v6527_v55, %v8923_v49 }
 0x4a8   :  { %v6542_v57 = vcombine.low %v6534_v41, %v6541_v56 }
 0x4aa   :  { %6548 = vst [vmem:[%s9093_s3 + $0x10] sm:$0xff] %v6542_v57 }
 0x4ab   :  { %6553 = vsyncpa [#allocation3], 1 }
 0x4ac   :  { %6554 = vsyncpa [#allocation5], 1 }

</bundles_post_ra>
